<compile_context>
chip_gen: v7x
topology: tpu7x:2x2x1
jax: 0.10.0
libtpu: 0.0.40
codegen_flags: <defaults>
</compile_context>

<pallas_src>
import functools
import math

import jax
import jax.numpy as jnp
from jax.experimental import pallas as pl
from jax.experimental.pallas import tpu as pltpu

# ----------------------------- config (small) --------------------------------
VOCAB = 128        # n_tokens_hf
HIDDEN = 32
N_LAYERS = 2
N_HEADS = 4
HEAD_DIM = HIDDEN // N_HEADS
INTERMEDIATE = 64
MAX_POS = 64
LN_EPS = 1e-12     # HF BERT default


# ------------------------------ fused Pallas kernel ---------------------------
def _geneformer_kernel(
    ids_ref, pos_ids_ref, mask_ref,
    word_emb_ref, pos_emb_ref, tok_type_ref, emb_ln_g_ref, emb_ln_b_ref,
    w_qkv_ref, b_qkv_ref, wo_ref, bo_ref, ln1_g_ref, ln1_b_ref,
    wi_ref, bi_ref, wo2_ref, bo2_ref, ln2_g_ref, ln2_b_ref,
    head_w_ref, head_b_ref, head_ln_g_ref, head_ln_b_ref,
    dec_w_ref, dec_b_ref,
    o_ref,
    qkv_scratch, ctx_scratch,
    *, batch, seq, n_heads, head_dim, n_layers, eps,
):
    M = batch * seq
    H = n_heads * head_dim
    vocab = word_emb_ref.shape[0]
    max_pos = pos_emb_ref.shape[0]
    scale = 1.0 / math.sqrt(head_dim)

    def layer_norm(x, g, b):
        mean = jnp.mean(x, axis=-1, keepdims=True)
        cen = x - mean
        var = jnp.mean(cen * cen, axis=-1, keepdims=True)
        return cen * jax.lax.rsqrt(var + eps) * g + b

    # ---- embeddings: one-hot gathers on the MXU, fused with the embedding LN ----
    word_oh = (jax.lax.broadcasted_iota(jnp.int32, (M, vocab), 1)
               == ids_ref[...]).astype(jnp.float32)
    pos_oh = (jax.lax.broadcasted_iota(jnp.int32, (M, max_pos), 1)
              == pos_ids_ref[...]).astype(jnp.float32)
    x = (jnp.dot(word_oh, word_emb_ref[...], preferred_element_type=jnp.float32)
         + jnp.dot(pos_oh, pos_emb_ref[...], preferred_element_type=jnp.float32)
         + tok_type_ref[0:1, :])                     # token_type_ids == 0
    x = layer_norm(x, emb_ln_g_ref[...], emb_ln_b_ref[...])

    # ---- transformer layers (statically unrolled, all VMEM resident) ----
    for layer in range(n_layers):
        # fused QKV projection: one (M,H) @ (H,3H) matmul
        qkv_scratch[...] = (
            jnp.dot(x, w_qkv_ref[layer], preferred_element_type=jnp.float32)
            + b_qkv_ref[layer])

        for b in range(batch):
            r0 = b * seq
            bias_b = (1.0 - mask_ref[b:b + 1, :]) * (-1e9)      # (1, S)
            for h in range(n_heads):
                c = h * head_dim
                q_h = qkv_scratch[r0:r0 + seq, c:c + head_dim]
                k_h = qkv_scratch[r0:r0 + seq, H + c:H + c + head_dim]
                v_h = qkv_scratch[r0:r0 + seq, 2 * H + c:2 * H + c + head_dim]

                s = jax.lax.dot_general(
                    q_h, k_h, (((1,), (1,)), ((), ())),
                    preferred_element_type=jnp.float32) * scale
                s = s + bias_b
                m = jnp.max(s, axis=-1, keepdims=True)
                p = jnp.exp(s - m)
                denom = jnp.maximum(jnp.sum(p, axis=-1, keepdims=True), 1e-30)
                p = p * pl.reciprocal(denom, approx=True)
                ctx_scratch[r0:r0 + seq, c:c + head_dim] = jnp.dot(
                    p, v_h, preferred_element_type=jnp.float32)

        attn_out = (jnp.dot(ctx_scratch[...], wo_ref[layer],
                            preferred_element_type=jnp.float32)
                    + bo_ref[layer])
        x = layer_norm(attn_out + x, ln1_g_ref[layer], ln1_b_ref[layer])

        hmid = jnp.maximum(
            jnp.dot(x, wi_ref[layer], preferred_element_type=jnp.float32)
            + bi_ref[layer], 0.0)                               # hidden_act=relu
        ffn_out = (jnp.dot(hmid, wo2_ref[layer],
                           preferred_element_type=jnp.float32)
                   + bo2_ref[layer])
        x = layer_norm(ffn_out + x, ln2_g_ref[layer], ln2_b_ref[layer])

    # ---- MLM head: dense + relu + LN + (tied) decoder; lane-dense output ----
    t = jnp.maximum(
        jnp.dot(x, head_w_ref[...], preferred_element_type=jnp.float32)
        + head_b_ref[...], 0.0)
    t = layer_norm(t, head_ln_g_ref[...], head_ln_b_ref[...])
    o_ref[...] = (jnp.dot(t, dec_w_ref[...], preferred_element_type=jnp.float32)
                  + dec_b_ref[...]).astype(o_ref.dtype)


# --------------------------- parameter construction --------------------------
def init_params(key):
    def nrm(k, shape):
        return 0.02 * jax.random.normal(k, shape, dtype=jnp.float32)

    keys = iter(jax.random.split(key, 32))
    H, I, L = HIDDEN, INTERMEDIATE, N_LAYERS
    word_emb = nrm(next(keys), (VOCAB, H))
    return {
        "word_emb": word_emb,
        "pos_emb": nrm(next(keys), (MAX_POS, H)),
        "tok_type": nrm(next(keys), (2, H)),
        "emb_ln_g": jnp.ones((1, H), jnp.float32),
        "emb_ln_b": jnp.zeros((1, H), jnp.float32),
        # per-layer weights stacked along a leading layer axis; QKV fused -> (H, 3H)
        "w_qkv": nrm(next(keys), (L, H, 3 * H)),
        "b_qkv": jnp.zeros((L, 1, 3 * H), jnp.float32),
        "wo": nrm(next(keys), (L, H, H)),
        "bo": jnp.zeros((L, 1, H), jnp.float32),
        "ln1_g": jnp.ones((L, 1, H), jnp.float32),
        "ln1_b": jnp.zeros((L, 1, H), jnp.float32),
        "wi": nrm(next(keys), (L, H, I)),
        "bi": jnp.zeros((L, 1, I), jnp.float32),
        "wo2": nrm(next(keys), (L, I, H)),
        "bo2": jnp.zeros((L, 1, H), jnp.float32),
        "ln2_g": jnp.ones((L, 1, H), jnp.float32),
        "ln2_b": jnp.zeros((L, 1, H), jnp.float32),
        "head_w": nrm(next(keys), (H, H)),
        "head_b": jnp.zeros((1, H), jnp.float32),
        "head_ln_g": jnp.ones((1, H), jnp.float32),
        "head_ln_b": jnp.zeros((1, H), jnp.float32),
        "dec_w": word_emb.T,                       # HF BERT-MLM weight tying
        "dec_b": jnp.zeros((1, VOCAB), jnp.float32),
    }


# --------------------------------- forward -----------------------------------
def geneformer_hf_adapter_forward(params, input_ids, attention_mask):
    """Adapter.forward: run the (synthetic) HF Geneformer model, return logits."""
    B, S = input_ids.shape
    M = B * S

    ids = input_ids.reshape(M, 1).astype(jnp.int32)
    pos_ids = jnp.tile(jnp.arange(S, dtype=jnp.int32), B).reshape(M, 1)
    mask = attention_mask.astype(jnp.float32)

    inputs = (
        ids, pos_ids, mask,
        params["word_emb"], params["pos_emb"], params["tok_type"],
        params["emb_ln_g"], params["emb_ln_b"],
        params["w_qkv"], params["b_qkv"], params["wo"], params["bo"],
        params["ln1_g"], params["ln1_b"],
        params["wi"], params["bi"], params["wo2"], params["bo2"],
        params["ln2_g"], params["ln2_b"],
        params["head_w"], params["head_b"],
        params["head_ln_g"], params["head_ln_b"],
        params["dec_w"], params["dec_b"],
    )

    kernel = functools.partial(
        _geneformer_kernel, batch=B, seq=S, n_heads=N_HEADS,
        head_dim=HEAD_DIM, n_layers=N_LAYERS, eps=LN_EPS)

    logits = pl.pallas_call(
        kernel,
        out_shape=jax.ShapeDtypeStruct((M, VOCAB), jnp.float32),
        in_specs=[pl.BlockSpec(memory_space=pltpu.MemorySpace.VMEM)] * len(inputs),
        out_specs=pl.BlockSpec(memory_space=pltpu.MemorySpace.VMEM),
        scratch_shapes=[
            pltpu.VMEM((M, 3 * HIDDEN), jnp.float32),   # fused QKV
            pltpu.VMEM((M, HIDDEN), jnp.float32),       # attention context
        ],
    )(*inputs)
    return logits.reshape(B, S, VOCAB)

# TODO(synk): tokenizer re-ordering / missing_nv_tokens bookkeeping in __init__
# is pure Python dict manipulation with no tensor compute; not represented here.


# ----------------------------------- main -------------------------------------
if __name__ == "__main__":
    key = jax.random.PRNGKey(0)
    k_param, k_ids = jax.random.split(key)

    params = init_params(k_param)

    B, S = 2, 8
    input_ids = jax.random.randint(k_ids, (B, S), 0, VOCAB, dtype=jnp.int32)
    attention_mask = jnp.ones((B, S), dtype=jnp.int32).at[1, -2:].set(0)  # pad tail of seq 1

    logits = jax.jit(geneformer_hf_adapter_forward)(params, input_ids, attention_mask)
    jax.block_until_ready(logits)

    assert logits.shape == (B, S, VOCAB), logits.shape
    assert logits.dtype == jnp.float32
    assert bool(jnp.all(jnp.isfinite(logits)))
    print("KERNEL_OK")
</pallas_src>

<mosaic_0001>
module attributes {stable_mosaic.version = 11 : i64} {
  func.func @_geneformer_kernel(%arg0: memref<16x1xi32, #tpu.memory_space<vmem>>, %arg1: memref<16x1xi32, #tpu.memory_space<vmem>>, %arg2: memref<2x8xf32, #tpu.memory_space<vmem>>, %arg3: memref<128x32xf32, #tpu.memory_space<vmem>>, %arg4: memref<64x32xf32, #tpu.memory_space<vmem>>, %arg5: memref<2x32xf32, #tpu.memory_space<vmem>>, %arg6: memref<1x32xf32, #tpu.memory_space<vmem>>, %arg7: memref<1x32xf32, #tpu.memory_space<vmem>>, %arg8: memref<2x32x96xf32, #tpu.memory_space<vmem>>, %arg9: memref<2x1x96xf32, #tpu.memory_space<vmem>>, %arg10: memref<2x32x32xf32, #tpu.memory_space<vmem>>, %arg11: memref<2x1x32xf32, #tpu.memory_space<vmem>>, %arg12: memref<2x1x32xf32, #tpu.memory_space<vmem>>, %arg13: memref<2x1x32xf32, #tpu.memory_space<vmem>>, %arg14: memref<2x32x64xf32, #tpu.memory_space<vmem>>, %arg15: memref<2x1x64xf32, #tpu.memory_space<vmem>>, %arg16: memref<2x64x32xf32, #tpu.memory_space<vmem>>, %arg17: memref<2x1x32xf32, #tpu.memory_space<vmem>>, %arg18: memref<2x1x32xf32, #tpu.memory_space<vmem>>, %arg19: memref<2x1x32xf32, #tpu.memory_space<vmem>>, %arg20: memref<32x32xf32, #tpu.memory_space<vmem>>, %arg21: memref<1x32xf32, #tpu.memory_space<vmem>>, %arg22: memref<1x32xf32, #tpu.memory_space<vmem>>, %arg23: memref<1x32xf32, #tpu.memory_space<vmem>>, %arg24: memref<32x128xf32, #tpu.memory_space<vmem>>, %arg25: memref<1x128xf32, #tpu.memory_space<vmem>>, %arg26: memref<16x128xf32, #tpu.memory_space<vmem>>, %arg27: memref<16x96xf32, #tpu.memory_space<vmem>>, %arg28: memref<16x32xf32, #tpu.memory_space<vmem>>) attributes {dimension_semantics = [], scalar_prefetch = 0 : i64, scratch_operands = 2 : i64, tpu.core_type = #tpu.core_type<tc>} {
    %0 = tpu.iota {dimensions = array<i32: 1>} : vector<16x128xi32>
    %c0 = arith.constant 0 : index
    %c0_0 = arith.constant 0 : index
    %1 = vector.load %arg0[%c0, %c0_0] : memref<16x1xi32, #tpu.memory_space<vmem>>, vector<16x1xi32>
    %2 = vector.broadcast %1 : vector<16x1xi32> to vector<16x128xi32>
    %3 = arith.cmpi eq, %0, %2 : vector<16x128xi32>
    %4 = arith.extui %3 : vector<16x128xi1> to vector<16x128xi32>
    %5 = arith.sitofp %4 : vector<16x128xi32> to vector<16x128xf32>
    %6 = tpu.iota {dimensions = array<i32: 1>} : vector<16x64xi32>
    %c0_1 = arith.constant 0 : index
    %c0_2 = arith.constant 0 : index
    %7 = vector.load %arg1[%c0_1, %c0_2] : memref<16x1xi32, #tpu.memory_space<vmem>>, vector<16x1xi32>
    %8 = vector.broadcast %7 : vector<16x1xi32> to vector<16x64xi32>
    %9 = arith.cmpi eq, %6, %8 : vector<16x64xi32>
    %10 = arith.extui %9 : vector<16x64xi1> to vector<16x64xi32>
    %11 = arith.sitofp %10 : vector<16x64xi32> to vector<16x64xf32>
    %c0_3 = arith.constant 0 : index
    %c0_4 = arith.constant 0 : index
    %12 = vector.load %arg3[%c0_3, %c0_4] : memref<128x32xf32, #tpu.memory_space<vmem>>, vector<128x32xf32>
    %cst = arith.constant dense<0.000000e+00> : vector<16x32xf32>
    %13 = tpu.matmul %5, %12, %cst {dimension_numbers = #tpu.dot_dimension_numbers<[1], [0], [0], [1], [0, 0, 1, 1], [], []>} : vector<16x128xf32>, vector<128x32xf32>, vector<16x32xf32> -> vector<16x32xf32>
    %c0_5 = arith.constant 0 : index
    %c0_6 = arith.constant 0 : index
    %14 = vector.load %arg4[%c0_5, %c0_6] : memref<64x32xf32, #tpu.memory_space<vmem>>, vector<64x32xf32>
    %cst_7 = arith.constant dense<0.000000e+00> : vector<16x32xf32>
    %15 = tpu.matmul %11, %14, %cst_7 {dimension_numbers = #tpu.dot_dimension_numbers<[1], [0], [0], [1], [0, 0, 1, 1], [], []>} : vector<16x64xf32>, vector<64x32xf32>, vector<16x32xf32> -> vector<16x32xf32>
    %16 = arith.addf %13, %15 : vector<16x32xf32>
    %c0_8 = arith.constant 0 : index
    %c0_9 = arith.constant 0 : index
    %17 = vector.load %arg5[%c0_8, %c0_9] : memref<2x32xf32, #tpu.memory_space<vmem>>, vector<1x32xf32>
    %18 = vector.broadcast %17 : vector<1x32xf32> to vector<16x32xf32>
    %19 = arith.addf %16, %18 : vector<16x32xf32>
    %c0_10 = arith.constant 0 : index
    %c0_11 = arith.constant 0 : index
    %20 = vector.load %arg6[%c0_10, %c0_11] : memref<1x32xf32, #tpu.memory_space<vmem>>, vector<1x32xf32>
    %c0_12 = arith.constant 0 : index
    %c0_13 = arith.constant 0 : index
    %21 = vector.load %arg7[%c0_12, %c0_13] : memref<1x32xf32, #tpu.memory_space<vmem>>, vector<1x32xf32>
    %cst_14 = arith.constant dense<0.000000e+00> : vector<16xf32>
    %22 = vector.multi_reduction <add>, %19, %cst_14 [1] : vector<16x32xf32> to vector<16xf32>
    %23 = vector.shape_cast %22 : vector<16xf32> to vector<16x1xf32>
    %cst_15 = arith.constant 3.200000e+01 : f32
    %24 = vector.broadcast %cst_15 : f32 to vector<16x1xf32>
    %25 = arith.divf %23, %24 : vector<16x1xf32>
    %26 = vector.broadcast %25 : vector<16x1xf32> to vector<16x32xf32>
    %27 = arith.subf %19, %26 : vector<16x32xf32>
    %28 = arith.mulf %27, %27 : vector<16x32xf32>
    %cst_16 = arith.constant dense<0.000000e+00> : vector<16xf32>
    %29 = vector.multi_reduction <add>, %28, %cst_16 [1] : vector<16x32xf32> to vector<16xf32>
    %30 = vector.shape_cast %29 : vector<16xf32> to vector<16x1xf32>
    %cst_17 = arith.constant 3.200000e+01 : f32
    %31 = vector.broadcast %cst_17 : f32 to vector<16x1xf32>
    %32 = arith.divf %30, %31 : vector<16x1xf32>
    %cst_18 = arith.constant 9.99999996E-13 : f32
    %33 = vector.broadcast %cst_18 : f32 to vector<16x1xf32>
    %34 = arith.addf %32, %33 : vector<16x1xf32>
    %35 = math.rsqrt %34 : vector<16x1xf32>
    %36 = vector.broadcast %35 : vector<16x1xf32> to vector<16x32xf32>
    %37 = arith.mulf %27, %36 : vector<16x32xf32>
    %38 = vector.broadcast %20 : vector<1x32xf32> to vector<16x32xf32>
    %39 = arith.mulf %37, %38 : vector<16x32xf32>
    %40 = vector.broadcast %21 : vector<1x32xf32> to vector<16x32xf32>
    %41 = arith.addf %39, %40 : vector<16x32xf32>
    %c0_19 = arith.constant 0 : index
    %c0_20 = arith.constant 0 : index
    %c0_21 = arith.constant 0 : index
    %42 = vector.load %arg8[%c0_19, %c0_20, %c0_21] : memref<2x32x96xf32, #tpu.memory_space<vmem>>, vector<1x32x96xf32>
    %43 = vector.shape_cast %42 : vector<1x32x96xf32> to vector<32x96xf32>
    %cst_22 = arith.constant dense<0.000000e+00> : vector<16x96xf32>
    %44 = tpu.matmul %41, %43, %cst_22 {dimension_numbers = #tpu.dot_dimension_numbers<[1], [0], [0], [1], [0, 0, 1, 1], [], []>} : vector<16x32xf32>, vector<32x96xf32>, vector<16x96xf32> -> vector<16x96xf32>
    %c0_23 = arith.constant 0 : index
    %c0_24 = arith.constant 0 : index
    %c0_25 = arith.constant 0 : index
    %45 = vector.load %arg9[%c0_23, %c0_24, %c0_25] : memref<2x1x96xf32, #tpu.memory_space<vmem>>, vector<1x1x96xf32>
    %46 = vector.shape_cast %45 : vector<1x1x96xf32> to vector<1x96xf32>
    %47 = vector.broadcast %46 : vector<1x96xf32> to vector<16x96xf32>
    %48 = arith.addf %44, %47 : vector<16x96xf32>
    %c0_26 = arith.constant 0 : index
    %c0_27 = arith.constant 0 : index
    %49 = vector.load %arg27[%c0_26, %c0_27] : memref<16x96xf32, #tpu.memory_space<vmem>>, vector<16x96xf32>
    tpu.vector_store %arg27[%c0_26, %c0_27], %48 {strides = array<i32>} : memref<16x96xf32, #tpu.memory_space<vmem>>, vector<16x96xf32>,
    %c0_28 = arith.constant 0 : index
    %c0_29 = arith.constant 0 : index
    %50 = vector.load %arg2[%c0_28, %c0_29] : memref<2x8xf32, #tpu.memory_space<vmem>>, vector<1x8xf32>
    %cst_30 = arith.constant 1.000000e+00 : f32
    %51 = vector.broadcast %cst_30 : f32 to vector<1x8xf32>
    %52 = arith.subf %51, %50 : vector<1x8xf32>
    %cst_31 = arith.constant -1.000000e+09 : f32
    %53 = vector.broadcast %cst_31 : f32 to vector<1x8xf32>
    %54 = arith.mulf %52, %53 : vector<1x8xf32>
    %c0_32 = arith.constant 0 : index
    %c0_33 = arith.constant 0 : index
    %55 = vector.load %arg27[%c0_32, %c0_33] : memref<16x96xf32, #tpu.memory_space<vmem>>, vector<8x8xf32>
    %c0_34 = arith.constant 0 : index
    %c32 = arith.constant 32 : index
    %56 = vector.load %arg27[%c0_34, %c32] : memref<16x96xf32, #tpu.memory_space<vmem>>, vector<8x8xf32>
    %c0_35 = arith.constant 0 : index
    %c64 = arith.constant 64 : index
    %57 = vector.load %arg27[%c0_35, %c64] : memref<16x96xf32, #tpu.memory_space<vmem>>, vector<8x8xf32>
    %cst_36 = arith.constant dense<0.000000e+00> : vector<8x8xf32>
    %58 = tpu.matmul %55, %56, %cst_36 {dimension_numbers = #tpu.dot_dimension_numbers<[1], [1], [0], [0], [0, 0, 1, 0], [], []>} : vector<8x8xf32>, vector<8x8xf32>, vector<8x8xf32> -> vector<8x8xf32>
    %cst_37 = arith.constant 0.353553385 : f32
    %59 = vector.broadcast %cst_37 : f32 to vector<8x8xf32>
    %60 = arith.mulf %58, %59 : vector<8x8xf32>
    %61 = vector.broadcast %54 : vector<1x8xf32> to vector<8x8xf32>
    %62 = arith.addf %60, %61 : vector<8x8xf32>
    %cst_38 = arith.constant dense<0xFF800000> : vector<8xf32>
    %63 = vector.multi_reduction <maximumf>, %62, %cst_38 [1] : vector<8x8xf32> to vector<8xf32>
    %64 = vector.shape_cast %63 : vector<8xf32> to vector<8x1xf32>
    %65 = vector.broadcast %64 : vector<8x1xf32> to vector<8x8xf32>
    %66 = arith.subf %62, %65 : vector<8x8xf32>
    %67 = math.exp %66 : vector<8x8xf32>
    %cst_39 = arith.constant dense<0.000000e+00> : vector<8xf32>
    %68 = vector.multi_reduction <add>, %67, %cst_39 [1] : vector<8x8xf32> to vector<8xf32>
    %69 = vector.shape_cast %68 : vector<8xf32> to vector<8x1xf32>
    %cst_40 = arith.constant 1.000000e-30 : f32
    %70 = vector.broadcast %cst_40 : f32 to vector<8x1xf32>
    %71 = arith.maximumf %69, %70 : vector<8x1xf32>
    %72 = tpu.reciprocal %71 {approx = true} : vector<8x1xf32> -> vector<8x1xf32>
    %73 = vector.broadcast %72 : vector<8x1xf32> to vector<8x8xf32>
    %74 = arith.mulf %67, %73 : vector<8x8xf32>
    %cst_41 = arith.constant dense<0.000000e+00> : vector<8x8xf32>
    %75 = tpu.matmul %74, %57, %cst_41 {dimension_numbers = #tpu.dot_dimension_numbers<[1], [0], [0], [1], [0, 0, 1, 1], [], []>} : vector<8x8xf32>, vector<8x8xf32>, vector<8x8xf32> -> vector<8x8xf32>
    %c0_42 = arith.constant 0 : index
    %c0_43 = arith.constant 0 : index
    %76 = vector.load %arg28[%c0_42, %c0_43] : memref<16x32xf32, #tpu.memory_space<vmem>>, vector<8x8xf32>
    tpu.vector_store %arg28[%c0_42, %c0_43], %75 {strides = array<i32>} : memref<16x32xf32, #tpu.memory_space<vmem>>, vector<8x8xf32>,
    %c0_44 = arith.constant 0 : index
    %c8 = arith.constant 8 : index
    %77 = vector.load %arg27[%c0_44, %c8] : memref<16x96xf32, #tpu.memory_space<vmem>>, vector<8x8xf32>
    %c0_45 = arith.constant 0 : index
    %c40 = arith.constant 40 : index
    %78 = vector.load %arg27[%c0_45, %c40] : memref<16x96xf32, #tpu.memory_space<vmem>>, vector<8x8xf32>
    %c0_46 = arith.constant 0 : index
    %c72 = arith.constant 72 : index
    %79 = vector.load %arg27[%c0_46, %c72] : memref<16x96xf32, #tpu.memory_space<vmem>>, vector<8x8xf32>
    %cst_47 = arith.constant dense<0.000000e+00> : vector<8x8xf32>
    %80 = tpu.matmul %77, %78, %cst_47 {dimension_numbers = #tpu.dot_dimension_numbers<[1], [1], [0], [0], [0, 0, 1, 0], [], []>} : vector<8x8xf32>, vector<8x8xf32>, vector<8x8xf32> -> vector<8x8xf32>
    %cst_48 = arith.constant 0.353553385 : f32
    %81 = vector.broadcast %cst_48 : f32 to vector<8x8xf32>
    %82 = arith.mulf %80, %81 : vector<8x8xf32>
    %83 = vector.broadcast %54 : vector<1x8xf32> to vector<8x8xf32>
    %84 = arith.addf %82, %83 : vector<8x8xf32>
    %cst_49 = arith.constant dense<0xFF800000> : vector<8xf32>
    %85 = vector.multi_reduction <maximumf>, %84, %cst_49 [1] : vector<8x8xf32> to vector<8xf32>
    %86 = vector.shape_cast %85 : vector<8xf32> to vector<8x1xf32>
    %87 = vector.broadcast %86 : vector<8x1xf32> to vector<8x8xf32>
    %88 = arith.subf %84, %87 : vector<8x8xf32>
    %89 = math.exp %88 : vector<8x8xf32>
    %cst_50 = arith.constant dense<0.000000e+00> : vector<8xf32>
    %90 = vector.multi_reduction <add>, %89, %cst_50 [1] : vector<8x8xf32> to vector<8xf32>
    %91 = vector.shape_cast %90 : vector<8xf32> to vector<8x1xf32>
    %cst_51 = arith.constant 1.000000e-30 : f32
    %92 = vector.broadcast %cst_51 : f32 to vector<8x1xf32>
    %93 = arith.maximumf %91, %92 : vector<8x1xf32>
    %94 = tpu.reciprocal %93 {approx = true} : vector<8x1xf32> -> vector<8x1xf32>
    %95 = vector.broadcast %94 : vector<8x1xf32> to vector<8x8xf32>
    %96 = arith.mulf %89, %95 : vector<8x8xf32>
    %cst_52 = arith.constant dense<0.000000e+00> : vector<8x8xf32>
    %97 = tpu.matmul %96, %79, %cst_52 {dimension_numbers = #tpu.dot_dimension_numbers<[1], [0], [0], [1], [0, 0, 1, 1], [], []>} : vector<8x8xf32>, vector<8x8xf32>, vector<8x8xf32> -> vector<8x8xf32>
    %c0_53 = arith.constant 0 : index
    %c8_54 = arith.constant 8 : index
    %98 = vector.load %arg28[%c0_53, %c8_54] : memref<16x32xf32, #tpu.memory_space<vmem>>, vector<8x8xf32>
    tpu.vector_store %arg28[%c0_53, %c8_54], %97 {strides = array<i32>} : memref<16x32xf32, #tpu.memory_space<vmem>>, vector<8x8xf32>,
    %c0_55 = arith.constant 0 : index
    %c16 = arith.constant 16 : index
    %99 = vector.load %arg27[%c0_55, %c16] : memref<16x96xf32, #tpu.memory_space<vmem>>, vector<8x8xf32>
    %c0_56 = arith.constant 0 : index
    %c48 = arith.constant 48 : index
    %100 = vector.load %arg27[%c0_56, %c48] : memref<16x96xf32, #tpu.memory_space<vmem>>, vector<8x8xf32>
    %c0_57 = arith.constant 0 : index
    %c80 = arith.constant 80 : index
    %101 = vector.load %arg27[%c0_57, %c80] : memref<16x96xf32, #tpu.memory_space<vmem>>, vector<8x8xf32>
    %cst_58 = arith.constant dense<0.000000e+00> : vector<8x8xf32>
    %102 = tpu.matmul %99, %100, %cst_58 {dimension_numbers = #tpu.dot_dimension_numbers<[1], [1], [0], [0], [0, 0, 1, 0], [], []>} : vector<8x8xf32>, vector<8x8xf32>, vector<8x8xf32> -> vector<8x8xf32>
    %cst_59 = arith.constant 0.353553385 : f32
    %103 = vector.broadcast %cst_59 : f32 to vector<8x8xf32>
    %104 = arith.mulf %102, %103 : vector<8x8xf32>
    %105 = vector.broadcast %54 : vector<1x8xf32> to vector<8x8xf32>
    %106 = arith.addf %104, %105 : vector<8x8xf32>
    %cst_60 = arith.constant dense<0xFF800000> : vector<8xf32>
    %107 = vector.multi_reduction <maximumf>, %106, %cst_60 [1] : vector<8x8xf32> to vector<8xf32>
    %108 = vector.shape_cast %107 : vector<8xf32> to vector<8x1xf32>
    %109 = vector.broadcast %108 : vector<8x1xf32> to vector<8x8xf32>
    %110 = arith.subf %106, %109 : vector<8x8xf32>
    %111 = math.exp %110 : vector<8x8xf32>
    %cst_61 = arith.constant dense<0.000000e+00> : vector<8xf32>
    %112 = vector.multi_reduction <add>, %111, %cst_61 [1] : vector<8x8xf32> to vector<8xf32>
    %113 = vector.shape_cast %112 : vector<8xf32> to vector<8x1xf32>
    %cst_62 = arith.constant 1.000000e-30 : f32
    %114 = vector.broadcast %cst_62 : f32 to vector<8x1xf32>
    %115 = arith.maximumf %113, %114 : vector<8x1xf32>
    %116 = tpu.reciprocal %115 {approx = true} : vector<8x1xf32> -> vector<8x1xf32>
    %117 = vector.broadcast %116 : vector<8x1xf32> to vector<8x8xf32>
    %118 = arith.mulf %111, %117 : vector<8x8xf32>
    %cst_63 = arith.constant dense<0.000000e+00> : vector<8x8xf32>
    %119 = tpu.matmul %118, %101, %cst_63 {dimension_numbers = #tpu.dot_dimension_numbers<[1], [0], [0], [1], [0, 0, 1, 1], [], []>} : vector<8x8xf32>, vector<8x8xf32>, vector<8x8xf32> -> vector<8x8xf32>
    %c0_64 = arith.constant 0 : index
    %c16_65 = arith.constant 16 : index
    %120 = vector.load %arg28[%c0_64, %c16_65] : memref<16x32xf32, #tpu.memory_space<vmem>>, vector<8x8xf32>
    tpu.vector_store %arg28[%c0_64, %c16_65], %119 {strides = array<i32>} : memref<16x32xf32, #tpu.memory_space<vmem>>, vector<8x8xf32>,
    %c0_66 = arith.constant 0 : index
    %c24 = arith.constant 24 : index
    %121 = vector.load %arg27[%c0_66, %c24] : memref<16x96xf32, #tpu.memory_space<vmem>>, vector<8x8xf32>
    %c0_67 = arith.constant 0 : index
    %c56 = arith.constant 56 : index
    %122 = vector.load %arg27[%c0_67, %c56] : memref<16x96xf32, #tpu.memory_space<vmem>>, vector<8x8xf32>
    %c0_68 = arith.constant 0 : index
    %c88 = arith.constant 88 : index
    %123 = vector.load %arg27[%c0_68, %c88] : memref<16x96xf32, #tpu.memory_space<vmem>>, vector<8x8xf32>
    %cst_69 = arith.constant dense<0.000000e+00> : vector<8x8xf32>
    %124 = tpu.matmul %121, %122, %cst_69 {dimension_numbers = #tpu.dot_dimension_numbers<[1], [1], [0], [0], [0, 0, 1, 0], [], []>} : vector<8x8xf32>, vector<8x8xf32>, vector<8x8xf32> -> vector<8x8xf32>
    %cst_70 = arith.constant 0.353553385 : f32
    %125 = vector.broadcast %cst_70 : f32 to vector<8x8xf32>
    %126 = arith.mulf %124, %125 : vector<8x8xf32>
    %127 = vector.broadcast %54 : vector<1x8xf32> to vector<8x8xf32>
    %128 = arith.addf %126, %127 : vector<8x8xf32>
    %cst_71 = arith.constant dense<0xFF800000> : vector<8xf32>
    %129 = vector.multi_reduction <maximumf>, %128, %cst_71 [1] : vector<8x8xf32> to vector<8xf32>
    %130 = vector.shape_cast %129 : vector<8xf32> to vector<8x1xf32>
    %131 = vector.broadcast %130 : vector<8x1xf32> to vector<8x8xf32>
    %132 = arith.subf %128, %131 : vector<8x8xf32>
    %133 = math.exp %132 : vector<8x8xf32>
    %cst_72 = arith.constant dense<0.000000e+00> : vector<8xf32>
    %134 = vector.multi_reduction <add>, %133, %cst_72 [1] : vector<8x8xf32> to vector<8xf32>
    %135 = vector.shape_cast %134 : vector<8xf32> to vector<8x1xf32>
    %cst_73 = arith.constant 1.000000e-30 : f32
    %136 = vector.broadcast %cst_73 : f32 to vector<8x1xf32>
    %137 = arith.maximumf %135, %136 : vector<8x1xf32>
    %138 = tpu.reciprocal %137 {approx = true} : vector<8x1xf32> -> vector<8x1xf32>
    %139 = vector.broadcast %138 : vector<8x1xf32> to vector<8x8xf32>
    %140 = arith.mulf %133, %139 : vector<8x8xf32>
    %cst_74 = arith.constant dense<0.000000e+00> : vector<8x8xf32>
    %141 = tpu.matmul %140, %123, %cst_74 {dimension_numbers = #tpu.dot_dimension_numbers<[1], [0], [0], [1], [0, 0, 1, 1], [], []>} : vector<8x8xf32>, vector<8x8xf32>, vector<8x8xf32> -> vector<8x8xf32>
    %c0_75 = arith.constant 0 : index
    %c24_76 = arith.constant 24 : index
    %142 = vector.load %arg28[%c0_75, %c24_76] : memref<16x32xf32, #tpu.memory_space<vmem>>, vector<8x8xf32>
    tpu.vector_store %arg28[%c0_75, %c24_76], %141 {strides = array<i32>} : memref<16x32xf32, #tpu.memory_space<vmem>>, vector<8x8xf32>,
    %c1 = arith.constant 1 : index
    %c0_77 = arith.constant 0 : index
    %143 = vector.load %arg2[%c1, %c0_77] : memref<2x8xf32, #tpu.memory_space<vmem>>, vector<1x8xf32>
    %cst_78 = arith.constant 1.000000e+00 : f32
    %144 = vector.broadcast %cst_78 : f32 to vector<1x8xf32>
    %145 = arith.subf %144, %143 : vector<1x8xf32>
    %cst_79 = arith.constant -1.000000e+09 : f32
    %146 = vector.broadcast %cst_79 : f32 to vector<1x8xf32>
    %147 = arith.mulf %145, %146 : vector<1x8xf32>
    %c8_80 = arith.constant 8 : index
    %c0_81 = arith.constant 0 : index
    %148 = vector.load %arg27[%c8_80, %c0_81] : memref<16x96xf32, #tpu.memory_space<vmem>>, vector<8x8xf32>
    %c8_82 = arith.constant 8 : index
    %c32_83 = arith.constant 32 : index
    %149 = vector.load %arg27[%c8_82, %c32_83] : memref<16x96xf32, #tpu.memory_space<vmem>>, vector<8x8xf32>
    %c8_84 = arith.constant 8 : index
    %c64_85 = arith.constant 64 : index
    %150 = vector.load %arg27[%c8_84, %c64_85] : memref<16x96xf32, #tpu.memory_space<vmem>>, vector<8x8xf32>
    %cst_86 = arith.constant dense<0.000000e+00> : vector<8x8xf32>
    %151 = tpu.matmul %148, %149, %cst_86 {dimension_numbers = #tpu.dot_dimension_numbers<[1], [1], [0], [0], [0, 0, 1, 0], [], []>} : vector<8x8xf32>, vector<8x8xf32>, vector<8x8xf32> -> vector<8x8xf32>
    %cst_87 = arith.constant 0.353553385 : f32
    %152 = vector.broadcast %cst_87 : f32 to vector<8x8xf32>
    %153 = arith.mulf %151, %152 : vector<8x8xf32>
    %154 = vector.broadcast %147 : vector<1x8xf32> to vector<8x8xf32>
    %155 = arith.addf %153, %154 : vector<8x8xf32>
    %cst_88 = arith.constant dense<0xFF800000> : vector<8xf32>
    %156 = vector.multi_reduction <maximumf>, %155, %cst_88 [1] : vector<8x8xf32> to vector<8xf32>
    %157 = vector.shape_cast %156 : vector<8xf32> to vector<8x1xf32>
    %158 = vector.broadcast %157 : vector<8x1xf32> to vector<8x8xf32>
    %159 = arith.subf %155, %158 : vector<8x8xf32>
    %160 = math.exp %159 : vector<8x8xf32>
    %cst_89 = arith.constant dense<0.000000e+00> : vector<8xf32>
    %161 = vector.multi_reduction <add>, %160, %cst_89 [1] : vector<8x8xf32> to vector<8xf32>
    %162 = vector.shape_cast %161 : vector<8xf32> to vector<8x1xf32>
    %cst_90 = arith.constant 1.000000e-30 : f32
    %163 = vector.broadcast %cst_90 : f32 to vector<8x1xf32>
    %164 = arith.maximumf %162, %163 : vector<8x1xf32>
    %165 = tpu.reciprocal %164 {approx = true} : vector<8x1xf32> -> vector<8x1xf32>
    %166 = vector.broadcast %165 : vector<8x1xf32> to vector<8x8xf32>
    %167 = arith.mulf %160, %166 : vector<8x8xf32>
    %cst_91 = arith.constant dense<0.000000e+00> : vector<8x8xf32>
    %168 = tpu.matmul %167, %150, %cst_91 {dimension_numbers = #tpu.dot_dimension_numbers<[1], [0], [0], [1], [0, 0, 1, 1], [], []>} : vector<8x8xf32>, vector<8x8xf32>, vector<8x8xf32> -> vector<8x8xf32>
    %c8_92 = arith.constant 8 : index
    %c0_93 = arith.constant 0 : index
    %169 = vector.load %arg28[%c8_92, %c0_93] : memref<16x32xf32, #tpu.memory_space<vmem>>, vector<8x8xf32>
    tpu.vector_store %arg28[%c8_92, %c0_93], %168 {strides = array<i32>} : memref<16x32xf32, #tpu.memory_space<vmem>>, vector<8x8xf32>,
    %c8_94 = arith.constant 8 : index
    %c8_95 = arith.constant 8 : index
    %170 = vector.load %arg27[%c8_94, %c8_95] : memref<16x96xf32, #tpu.memory_space<vmem>>, vector<8x8xf32>
    %c8_96 = arith.constant 8 : index
    %c40_97 = arith.constant 40 : index
    %171 = vector.load %arg27[%c8_96, %c40_97] : memref<16x96xf32, #tpu.memory_space<vmem>>, vector<8x8xf32>
    %c8_98 = arith.constant 8 : index
    %c72_99 = arith.constant 72 : index
    %172 = vector.load %arg27[%c8_98, %c72_99] : memref<16x96xf32, #tpu.memory_space<vmem>>, vector<8x8xf32>
    %cst_100 = arith.constant dense<0.000000e+00> : vector<8x8xf32>
    %173 = tpu.matmul %170, %171, %cst_100 {dimension_numbers = #tpu.dot_dimension_numbers<[1], [1], [0], [0], [0, 0, 1, 0], [], []>} : vector<8x8xf32>, vector<8x8xf32>, vector<8x8xf32> -> vector<8x8xf32>
    %cst_101 = arith.constant 0.353553385 : f32
    %174 = vector.broadcast %cst_101 : f32 to vector<8x8xf32>
    %175 = arith.mulf %173, %174 : vector<8x8xf32>
    %176 = vector.broadcast %147 : vector<1x8xf32> to vector<8x8xf32>
    %177 = arith.addf %175, %176 : vector<8x8xf32>
    %cst_102 = arith.constant dense<0xFF800000> : vector<8xf32>
    %178 = vector.multi_reduction <maximumf>, %177, %cst_102 [1] : vector<8x8xf32> to vector<8xf32>
    %179 = vector.shape_cast %178 : vector<8xf32> to vector<8x1xf32>
    %180 = vector.broadcast %179 : vector<8x1xf32> to vector<8x8xf32>
    %181 = arith.subf %177, %180 : vector<8x8xf32>
    %182 = math.exp %181 : vector<8x8xf32>
    %cst_103 = arith.constant dense<0.000000e+00> : vector<8xf32>
    %183 = vector.multi_reduction <add>, %182, %cst_103 [1] : vector<8x8xf32> to vector<8xf32>
    %184 = vector.shape_cast %183 : vector<8xf32> to vector<8x1xf32>
    %cst_104 = arith.constant 1.000000e-30 : f32
    %185 = vector.broadcast %cst_104 : f32 to vector<8x1xf32>
    %186 = arith.maximumf %184, %185 : vector<8x1xf32>
    %187 = tpu.reciprocal %186 {approx = true} : vector<8x1xf32> -> vector<8x1xf32>
    %188 = vector.broadcast %187 : vector<8x1xf32> to vector<8x8xf32>
    %189 = arith.mulf %182, %188 : vector<8x8xf32>
    %cst_105 = arith.constant dense<0.000000e+00> : vector<8x8xf32>
    %190 = tpu.matmul %189, %172, %cst_105 {dimension_numbers = #tpu.dot_dimension_numbers<[1], [0], [0], [1], [0, 0, 1, 1], [], []>} : vector<8x8xf32>, vector<8x8xf32>, vector<8x8xf32> -> vector<8x8xf32>
    %c8_106 = arith.constant 8 : index
    %c8_107 = arith.constant 8 : index
    %191 = vector.load %arg28[%c8_106, %c8_107] : memref<16x32xf32, #tpu.memory_space<vmem>>, vector<8x8xf32>
    tpu.vector_store %arg28[%c8_106, %c8_107], %190 {strides = array<i32>} : memref<16x32xf32, #tpu.memory_space<vmem>>, vector<8x8xf32>,
    %c8_108 = arith.constant 8 : index
    %c16_109 = arith.constant 16 : index
    %192 = vector.load %arg27[%c8_108, %c16_109] : memref<16x96xf32, #tpu.memory_space<vmem>>, vector<8x8xf32>
    %c8_110 = arith.constant 8 : index
    %c48_111 = arith.constant 48 : index
    %193 = vector.load %arg27[%c8_110, %c48_111] : memref<16x96xf32, #tpu.memory_space<vmem>>, vector<8x8xf32>
    %c8_112 = arith.constant 8 : index
    %c80_113 = arith.constant 80 : index
    %194 = vector.load %arg27[%c8_112, %c80_113] : memref<16x96xf32, #tpu.memory_space<vmem>>, vector<8x8xf32>
    %cst_114 = arith.constant dense<0.000000e+00> : vector<8x8xf32>
    %195 = tpu.matmul %192, %193, %cst_114 {dimension_numbers = #tpu.dot_dimension_numbers<[1], [1], [0], [0], [0, 0, 1, 0], [], []>} : vector<8x8xf32>, vector<8x8xf32>, vector<8x8xf32> -> vector<8x8xf32>
    %cst_115 = arith.constant 0.353553385 : f32
    %196 = vector.broadcast %cst_115 : f32 to vector<8x8xf32>
    %197 = arith.mulf %195, %196 : vector<8x8xf32>
    %198 = vector.broadcast %147 : vector<1x8xf32> to vector<8x8xf32>
    %199 = arith.addf %197, %198 : vector<8x8xf32>
    %cst_116 = arith.constant dense<0xFF800000> : vector<8xf32>
    %200 = vector.multi_reduction <maximumf>, %199, %cst_116 [1] : vector<8x8xf32> to vector<8xf32>
    %201 = vector.shape_cast %200 : vector<8xf32> to vector<8x1xf32>
    %202 = vector.broadcast %201 : vector<8x1xf32> to vector<8x8xf32>
    %203 = arith.subf %199, %202 : vector<8x8xf32>
    %204 = math.exp %203 : vector<8x8xf32>
    %cst_117 = arith.constant dense<0.000000e+00> : vector<8xf32>
    %205 = vector.multi_reduction <add>, %204, %cst_117 [1] : vector<8x8xf32> to vector<8xf32>
    %206 = vector.shape_cast %205 : vector<8xf32> to vector<8x1xf32>
    %cst_118 = arith.constant 1.000000e-30 : f32
    %207 = vector.broadcast %cst_118 : f32 to vector<8x1xf32>
    %208 = arith.maximumf %206, %207 : vector<8x1xf32>
    %209 = tpu.reciprocal %208 {approx = true} : vector<8x1xf32> -> vector<8x1xf32>
    %210 = vector.broadcast %209 : vector<8x1xf32> to vector<8x8xf32>
    %211 = arith.mulf %204, %210 : vector<8x8xf32>
    %cst_119 = arith.constant dense<0.000000e+00> : vector<8x8xf32>
    %212 = tpu.matmul %211, %194, %cst_119 {dimension_numbers = #tpu.dot_dimension_numbers<[1], [0], [0], [1], [0, 0, 1, 1], [], []>} : vector<8x8xf32>, vector<8x8xf32>, vector<8x8xf32> -> vector<8x8xf32>
    %c8_120 = arith.constant 8 : index
    %c16_121 = arith.constant 16 : index
    %213 = vector.load %arg28[%c8_120, %c16_121] : memref<16x32xf32, #tpu.memory_space<vmem>>, vector<8x8xf32>
    tpu.vector_store %arg28[%c8_120, %c16_121], %212 {strides = array<i32>} : memref<16x32xf32, #tpu.memory_space<vmem>>, vector<8x8xf32>,
    %c8_122 = arith.constant 8 : index
    %c24_123 = arith.constant 24 : index
    %214 = vector.load %arg27[%c8_122, %c24_123] : memref<16x96xf32, #tpu.memory_space<vmem>>, vector<8x8xf32>
    %c8_124 = arith.constant 8 : index
    %c56_125 = arith.constant 56 : index
    %215 = vector.load %arg27[%c8_124, %c56_125] : memref<16x96xf32, #tpu.memory_space<vmem>>, vector<8x8xf32>
    %c8_126 = arith.constant 8 : index
    %c88_127 = arith.constant 88 : index
    %216 = vector.load %arg27[%c8_126, %c88_127] : memref<16x96xf32, #tpu.memory_space<vmem>>, vector<8x8xf32>
    %cst_128 = arith.constant dense<0.000000e+00> : vector<8x8xf32>
    %217 = tpu.matmul %214, %215, %cst_128 {dimension_numbers = #tpu.dot_dimension_numbers<[1], [1], [0], [0], [0, 0, 1, 0], [], []>} : vector<8x8xf32>, vector<8x8xf32>, vector<8x8xf32> -> vector<8x8xf32>
    %cst_129 = arith.constant 0.353553385 : f32
    %218 = vector.broadcast %cst_129 : f32 to vector<8x8xf32>
    %219 = arith.mulf %217, %218 : vector<8x8xf32>
    %220 = vector.broadcast %147 : vector<1x8xf32> to vector<8x8xf32>
    %221 = arith.addf %219, %220 : vector<8x8xf32>
    %cst_130 = arith.constant dense<0xFF800000> : vector<8xf32>
    %222 = vector.multi_reduction <maximumf>, %221, %cst_130 [1] : vector<8x8xf32> to vector<8xf32>
    %223 = vector.shape_cast %222 : vector<8xf32> to vector<8x1xf32>
    %224 = vector.broadcast %223 : vector<8x1xf32> to vector<8x8xf32>
    %225 = arith.subf %221, %224 : vector<8x8xf32>
    %226 = math.exp %225 : vector<8x8xf32>
    %cst_131 = arith.constant dense<0.000000e+00> : vector<8xf32>
    %227 = vector.multi_reduction <add>, %226, %cst_131 [1] : vector<8x8xf32> to vector<8xf32>
    %228 = vector.shape_cast %227 : vector<8xf32> to vector<8x1xf32>
    %cst_132 = arith.constant 1.000000e-30 : f32
    %229 = vector.broadcast %cst_132 : f32 to vector<8x1xf32>
    %230 = arith.maximumf %228, %229 : vector<8x1xf32>
    %231 = tpu.reciprocal %230 {approx = true} : vector<8x1xf32> -> vector<8x1xf32>
    %232 = vector.broadcast %231 : vector<8x1xf32> to vector<8x8xf32>
    %233 = arith.mulf %226, %232 : vector<8x8xf32>
    %cst_133 = arith.constant dense<0.000000e+00> : vector<8x8xf32>
    %234 = tpu.matmul %233, %216, %cst_133 {dimension_numbers = #tpu.dot_dimension_numbers<[1], [0], [0], [1], [0, 0, 1, 1], [], []>} : vector<8x8xf32>, vector<8x8xf32>, vector<8x8xf32> -> vector<8x8xf32>
    %c8_134 = arith.constant 8 : index
    %c24_135 = arith.constant 24 : index
    %235 = vector.load %arg28[%c8_134, %c24_135] : memref<16x32xf32, #tpu.memory_space<vmem>>, vector<8x8xf32>
    tpu.vector_store %arg28[%c8_134, %c24_135], %234 {strides = array<i32>} : memref<16x32xf32, #tpu.memory_space<vmem>>, vector<8x8xf32>,
    %c0_136 = arith.constant 0 : index
    %c0_137 = arith.constant 0 : index
    %236 = vector.load %arg28[%c0_136, %c0_137] : memref<16x32xf32, #tpu.memory_space<vmem>>, vector<16x32xf32>
    %c0_138 = arith.constant 0 : index
    %c0_139 = arith.constant 0 : index
    %c0_140 = arith.constant 0 : index
    %237 = vector.load %arg10[%c0_138, %c0_139, %c0_140] : memref<2x32x32xf32, #tpu.memory_space<vmem>>, vector<1x32x32xf32>
    %238 = vector.shape_cast %237 : vector<1x32x32xf32> to vector<32x32xf32>
    %cst_141 = arith.constant dense<0.000000e+00> : vector<16x32xf32>
    %239 = tpu.matmul %236, %238, %cst_141 {dimension_numbers = #tpu.dot_dimension_numbers<[1], [0], [0], [1], [0, 0, 1, 1], [], []>} : vector<16x32xf32>, vector<32x32xf32>, vector<16x32xf32> -> vector<16x32xf32>
    %c0_142 = arith.constant 0 : index
    %c0_143 = arith.constant 0 : index
    %c0_144 = arith.constant 0 : index
    %240 = vector.load %arg11[%c0_142, %c0_143, %c0_144] : memref<2x1x32xf32, #tpu.memory_space<vmem>>, vector<1x1x32xf32>
    %241 = vector.shape_cast %240 : vector<1x1x32xf32> to vector<1x32xf32>
    %242 = vector.broadcast %241 : vector<1x32xf32> to vector<16x32xf32>
    %243 = arith.addf %239, %242 : vector<16x32xf32>
    %244 = arith.addf %243, %41 : vector<16x32xf32>
    %c0_145 = arith.constant 0 : index
    %c0_146 = arith.constant 0 : index
    %c0_147 = arith.constant 0 : index
    %245 = vector.load %arg12[%c0_145, %c0_146, %c0_147] : memref<2x1x32xf32, #tpu.memory_space<vmem>>, vector<1x1x32xf32>
    %246 = vector.shape_cast %245 : vector<1x1x32xf32> to vector<1x32xf32>
    %c0_148 = arith.constant 0 : index
    %c0_149 = arith.constant 0 : index
    %c0_150 = arith.constant 0 : index
    %247 = vector.load %arg13[%c0_148, %c0_149, %c0_150] : memref<2x1x32xf32, #tpu.memory_space<vmem>>, vector<1x1x32xf32>
    %248 = vector.shape_cast %247 : vector<1x1x32xf32> to vector<1x32xf32>
    %cst_151 = arith.constant dense<0.000000e+00> : vector<16xf32>
    %249 = vector.multi_reduction <add>, %244, %cst_151 [1] : vector<16x32xf32> to vector<16xf32>
    %250 = vector.shape_cast %249 : vector<16xf32> to vector<16x1xf32>
    %cst_152 = arith.constant 3.200000e+01 : f32
    %251 = vector.broadcast %cst_152 : f32 to vector<16x1xf32>
    %252 = arith.divf %250, %251 : vector<16x1xf32>
    %253 = vector.broadcast %252 : vector<16x1xf32> to vector<16x32xf32>
    %254 = arith.subf %244, %253 : vector<16x32xf32>
    %255 = arith.mulf %254, %254 : vector<16x32xf32>
    %cst_153 = arith.constant dense<0.000000e+00> : vector<16xf32>
    %256 = vector.multi_reduction <add>, %255, %cst_153 [1] : vector<16x32xf32> to vector<16xf32>
    %257 = vector.shape_cast %256 : vector<16xf32> to vector<16x1xf32>
    %cst_154 = arith.constant 3.200000e+01 : f32
    %258 = vector.broadcast %cst_154 : f32 to vector<16x1xf32>
    %259 = arith.divf %257, %258 : vector<16x1xf32>
    %cst_155 = arith.constant 9.99999996E-13 : f32
    %260 = vector.broadcast %cst_155 : f32 to vector<16x1xf32>
    %261 = arith.addf %259, %260 : vector<16x1xf32>
    %262 = math.rsqrt %261 : vector<16x1xf32>
    %263 = vector.broadcast %262 : vector<16x1xf32> to vector<16x32xf32>
    %264 = arith.mulf %254, %263 : vector<16x32xf32>
    %265 = vector.broadcast %246 : vector<1x32xf32> to vector<16x32xf32>
    %266 = arith.mulf %264, %265 : vector<16x32xf32>
    %267 = vector.broadcast %248 : vector<1x32xf32> to vector<16x32xf32>
    %268 = arith.addf %266, %267 : vector<16x32xf32>
    %c0_156 = arith.constant 0 : index
    %c0_157 = arith.constant 0 : index
    %c0_158 = arith.constant 0 : index
    %269 = vector.load %arg14[%c0_156, %c0_157, %c0_158] : memref<2x32x64xf32, #tpu.memory_space<vmem>>, vector<1x32x64xf32>
    %270 = vector.shape_cast %269 : vector<1x32x64xf32> to vector<32x64xf32>
    %cst_159 = arith.constant dense<0.000000e+00> : vector<16x64xf32>
    %271 = tpu.matmul %268, %270, %cst_159 {dimension_numbers = #tpu.dot_dimension_numbers<[1], [0], [0], [1], [0, 0, 1, 1], [], []>} : vector<16x32xf32>, vector<32x64xf32>, vector<16x64xf32> -> vector<16x64xf32>
    %c0_160 = arith.constant 0 : index
    %c0_161 = arith.constant 0 : index
    %c0_162 = arith.constant 0 : index
    %272 = vector.load %arg15[%c0_160, %c0_161, %c0_162] : memref<2x1x64xf32, #tpu.memory_space<vmem>>, vector<1x1x64xf32>
    %273 = vector.shape_cast %272 : vector<1x1x64xf32> to vector<1x64xf32>
    %274 = vector.broadcast %273 : vector<1x64xf32> to vector<16x64xf32>
    %275 = arith.addf %271, %274 : vector<16x64xf32>
    %cst_163 = arith.constant 0.000000e+00 : f32
    %276 = vector.broadcast %cst_163 : f32 to vector<16x64xf32>
    %277 = arith.maximumf %275, %276 : vector<16x64xf32>
    %c0_164 = arith.constant 0 : index
    %c0_165 = arith.constant 0 : index
    %c0_166 = arith.constant 0 : index
    %278 = vector.load %arg16[%c0_164, %c0_165, %c0_166] : memref<2x64x32xf32, #tpu.memory_space<vmem>>, vector<1x64x32xf32>
    %279 = vector.shape_cast %278 : vector<1x64x32xf32> to vector<64x32xf32>
    %cst_167 = arith.constant dense<0.000000e+00> : vector<16x32xf32>
    %280 = tpu.matmul %277, %279, %cst_167 {dimension_numbers = #tpu.dot_dimension_numbers<[1], [0], [0], [1], [0, 0, 1, 1], [], []>} : vector<16x64xf32>, vector<64x32xf32>, vector<16x32xf32> -> vector<16x32xf32>
    %c0_168 = arith.constant 0 : index
    %c0_169 = arith.constant 0 : index
    %c0_170 = arith.constant 0 : index
    %281 = vector.load %arg17[%c0_168, %c0_169, %c0_170] : memref<2x1x32xf32, #tpu.memory_space<vmem>>, vector<1x1x32xf32>
    %282 = vector.shape_cast %281 : vector<1x1x32xf32> to vector<1x32xf32>
    %283 = vector.broadcast %282 : vector<1x32xf32> to vector<16x32xf32>
    %284 = arith.addf %280, %283 : vector<16x32xf32>
    %285 = arith.addf %284, %268 : vector<16x32xf32>
    %c0_171 = arith.constant 0 : index
    %c0_172 = arith.constant 0 : index
    %c0_173 = arith.constant 0 : index
    %286 = vector.load %arg18[%c0_171, %c0_172, %c0_173] : memref<2x1x32xf32, #tpu.memory_space<vmem>>, vector<1x1x32xf32>
    %287 = vector.shape_cast %286 : vector<1x1x32xf32> to vector<1x32xf32>
    %c0_174 = arith.constant 0 : index
    %c0_175 = arith.constant 0 : index
    %c0_176 = arith.constant 0 : index
    %288 = vector.load %arg19[%c0_174, %c0_175, %c0_176] : memref<2x1x32xf32, #tpu.memory_space<vmem>>, vector<1x1x32xf32>
    %289 = vector.shape_cast %288 : vector<1x1x32xf32> to vector<1x32xf32>
    %cst_177 = arith.constant dense<0.000000e+00> : vector<16xf32>
    %290 = vector.multi_reduction <add>, %285, %cst_177 [1] : vector<16x32xf32> to vector<16xf32>
    %291 = vector.shape_cast %290 : vector<16xf32> to vector<16x1xf32>
    %cst_178 = arith.constant 3.200000e+01 : f32
    %292 = vector.broadcast %cst_178 : f32 to vector<16x1xf32>
    %293 = arith.divf %291, %292 : vector<16x1xf32>
    %294 = vector.broadcast %293 : vector<16x1xf32> to vector<16x32xf32>
    %295 = arith.subf %285, %294 : vector<16x32xf32>
    %296 = arith.mulf %295, %295 : vector<16x32xf32>
    %cst_179 = arith.constant dense<0.000000e+00> : vector<16xf32>
    %297 = vector.multi_reduction <add>, %296, %cst_179 [1] : vector<16x32xf32> to vector<16xf32>
    %298 = vector.shape_cast %297 : vector<16xf32> to vector<16x1xf32>
    %cst_180 = arith.constant 3.200000e+01 : f32
    %299 = vector.broadcast %cst_180 : f32 to vector<16x1xf32>
    %300 = arith.divf %298, %299 : vector<16x1xf32>
    %cst_181 = arith.constant 9.99999996E-13 : f32
    %301 = vector.broadcast %cst_181 : f32 to vector<16x1xf32>
    %302 = arith.addf %300, %301 : vector<16x1xf32>
    %303 = math.rsqrt %302 : vector<16x1xf32>
    %304 = vector.broadcast %303 : vector<16x1xf32> to vector<16x32xf32>
    %305 = arith.mulf %295, %304 : vector<16x32xf32>
    %306 = vector.broadcast %287 : vector<1x32xf32> to vector<16x32xf32>
    %307 = arith.mulf %305, %306 : vector<16x32xf32>
    %308 = vector.broadcast %289 : vector<1x32xf32> to vector<16x32xf32>
    %309 = arith.addf %307, %308 : vector<16x32xf32>
    %c1_182 = arith.constant 1 : index
    %c0_183 = arith.constant 0 : index
    %c0_184 = arith.constant 0 : index
    %310 = vector.load %arg8[%c1_182, %c0_183, %c0_184] : memref<2x32x96xf32, #tpu.memory_space<vmem>>, vector<1x32x96xf32>
    %311 = vector.shape_cast %310 : vector<1x32x96xf32> to vector<32x96xf32>
    %cst_185 = arith.constant dense<0.000000e+00> : vector<16x96xf32>
    %312 = tpu.matmul %309, %311, %cst_185 {dimension_numbers = #tpu.dot_dimension_numbers<[1], [0], [0], [1], [0, 0, 1, 1], [], []>} : vector<16x32xf32>, vector<32x96xf32>, vector<16x96xf32> -> vector<16x96xf32>
    %c1_186 = arith.constant 1 : index
    %c0_187 = arith.constant 0 : index
    %c0_188 = arith.constant 0 : index
    %313 = vector.load %arg9[%c1_186, %c0_187, %c0_188] : memref<2x1x96xf32, #tpu.memory_space<vmem>>, vector<1x1x96xf32>
    %314 = vector.shape_cast %313 : vector<1x1x96xf32> to vector<1x96xf32>
    %315 = vector.broadcast %314 : vector<1x96xf32> to vector<16x96xf32>
    %316 = arith.addf %312, %315 : vector<16x96xf32>
    %c0_189 = arith.constant 0 : index
    %c0_190 = arith.constant 0 : index
    %317 = vector.load %arg27[%c0_189, %c0_190] : memref<16x96xf32, #tpu.memory_space<vmem>>, vector<16x96xf32>
    tpu.vector_store %arg27[%c0_189, %c0_190], %316 {strides = array<i32>} : memref<16x96xf32, #tpu.memory_space<vmem>>, vector<16x96xf32>,
    %c0_191 = arith.constant 0 : index
    %c0_192 = arith.constant 0 : index
    %318 = vector.load %arg2[%c0_191, %c0_192] : memref<2x8xf32, #tpu.memory_space<vmem>>, vector<1x8xf32>
    %cst_193 = arith.constant 1.000000e+00 : f32
    %319 = vector.broadcast %cst_193 : f32 to vector<1x8xf32>
    %320 = arith.subf %319, %318 : vector<1x8xf32>
    %cst_194 = arith.constant -1.000000e+09 : f32
    %321 = vector.broadcast %cst_194 : f32 to vector<1x8xf32>
    %322 = arith.mulf %320, %321 : vector<1x8xf32>
    %c0_195 = arith.constant 0 : index
    %c0_196 = arith.constant 0 : index
    %323 = vector.load %arg27[%c0_195, %c0_196] : memref<16x96xf32, #tpu.memory_space<vmem>>, vector<8x8xf32>
    %c0_197 = arith.constant 0 : index
    %c32_198 = arith.constant 32 : index
    %324 = vector.load %arg27[%c0_197, %c32_198] : memref<16x96xf32, #tpu.memory_space<vmem>>, vector<8x8xf32>
    %c0_199 = arith.constant 0 : index
    %c64_200 = arith.constant 64 : index
    %325 = vector.load %arg27[%c0_199, %c64_200] : memref<16x96xf32, #tpu.memory_space<vmem>>, vector<8x8xf32>
    %cst_201 = arith.constant dense<0.000000e+00> : vector<8x8xf32>
    %326 = tpu.matmul %323, %324, %cst_201 {dimension_numbers = #tpu.dot_dimension_numbers<[1], [1], [0], [0], [0, 0, 1, 0], [], []>} : vector<8x8xf32>, vector<8x8xf32>, vector<8x8xf32> -> vector<8x8xf32>
    %cst_202 = arith.constant 0.353553385 : f32
    %327 = vector.broadcast %cst_202 : f32 to vector<8x8xf32>
    %328 = arith.mulf %326, %327 : vector<8x8xf32>
    %329 = vector.broadcast %322 : vector<1x8xf32> to vector<8x8xf32>
    %330 = arith.addf %328, %329 : vector<8x8xf32>
    %cst_203 = arith.constant dense<0xFF800000> : vector<8xf32>
    %331 = vector.multi_reduction <maximumf>, %330, %cst_203 [1] : vector<8x8xf32> to vector<8xf32>
    %332 = vector.shape_cast %331 : vector<8xf32> to vector<8x1xf32>
    %333 = vector.broadcast %332 : vector<8x1xf32> to vector<8x8xf32>
    %334 = arith.subf %330, %333 : vector<8x8xf32>
    %335 = math.exp %334 : vector<8x8xf32>
    %cst_204 = arith.constant dense<0.000000e+00> : vector<8xf32>
    %336 = vector.multi_reduction <add>, %335, %cst_204 [1] : vector<8x8xf32> to vector<8xf32>
    %337 = vector.shape_cast %336 : vector<8xf32> to vector<8x1xf32>
    %cst_205 = arith.constant 1.000000e-30 : f32
    %338 = vector.broadcast %cst_205 : f32 to vector<8x1xf32>
    %339 = arith.maximumf %337, %338 : vector<8x1xf32>
    %340 = tpu.reciprocal %339 {approx = true} : vector<8x1xf32> -> vector<8x1xf32>
    %341 = vector.broadcast %340 : vector<8x1xf32> to vector<8x8xf32>
    %342 = arith.mulf %335, %341 : vector<8x8xf32>
    %cst_206 = arith.constant dense<0.000000e+00> : vector<8x8xf32>
    %343 = tpu.matmul %342, %325, %cst_206 {dimension_numbers = #tpu.dot_dimension_numbers<[1], [0], [0], [1], [0, 0, 1, 1], [], []>} : vector<8x8xf32>, vector<8x8xf32>, vector<8x8xf32> -> vector<8x8xf32>
    %c0_207 = arith.constant 0 : index
    %c0_208 = arith.constant 0 : index
    %344 = vector.load %arg28[%c0_207, %c0_208] : memref<16x32xf32, #tpu.memory_space<vmem>>, vector<8x8xf32>
    tpu.vector_store %arg28[%c0_207, %c0_208], %343 {strides = array<i32>} : memref<16x32xf32, #tpu.memory_space<vmem>>, vector<8x8xf32>,
    %c0_209 = arith.constant 0 : index
    %c8_210 = arith.constant 8 : index
    %345 = vector.load %arg27[%c0_209, %c8_210] : memref<16x96xf32, #tpu.memory_space<vmem>>, vector<8x8xf32>
    %c0_211 = arith.constant 0 : index
    %c40_212 = arith.constant 40 : index
    %346 = vector.load %arg27[%c0_211, %c40_212] : memref<16x96xf32, #tpu.memory_space<vmem>>, vector<8x8xf32>
    %c0_213 = arith.constant 0 : index
    %c72_214 = arith.constant 72 : index
    %347 = vector.load %arg27[%c0_213, %c72_214] : memref<16x96xf32, #tpu.memory_space<vmem>>, vector<8x8xf32>
    %cst_215 = arith.constant dense<0.000000e+00> : vector<8x8xf32>
    %348 = tpu.matmul %345, %346, %cst_215 {dimension_numbers = #tpu.dot_dimension_numbers<[1], [1], [0], [0], [0, 0, 1, 0], [], []>} : vector<8x8xf32>, vector<8x8xf32>, vector<8x8xf32> -> vector<8x8xf32>
    %cst_216 = arith.constant 0.353553385 : f32
    %349 = vector.broadcast %cst_216 : f32 to vector<8x8xf32>
    %350 = arith.mulf %348, %349 : vector<8x8xf32>
    %351 = vector.broadcast %322 : vector<1x8xf32> to vector<8x8xf32>
    %352 = arith.addf %350, %351 : vector<8x8xf32>
    %cst_217 = arith.constant dense<0xFF800000> : vector<8xf32>
    %353 = vector.multi_reduction <maximumf>, %352, %cst_217 [1] : vector<8x8xf32> to vector<8xf32>
    %354 = vector.shape_cast %353 : vector<8xf32> to vector<8x1xf32>
    %355 = vector.broadcast %354 : vector<8x1xf32> to vector<8x8xf32>
    %356 = arith.subf %352, %355 : vector<8x8xf32>
    %357 = math.exp %356 : vector<8x8xf32>
    %cst_218 = arith.constant dense<0.000000e+00> : vector<8xf32>
    %358 = vector.multi_reduction <add>, %357, %cst_218 [1] : vector<8x8xf32> to vector<8xf32>
    %359 = vector.shape_cast %358 : vector<8xf32> to vector<8x1xf32>
    %cst_219 = arith.constant 1.000000e-30 : f32
    %360 = vector.broadcast %cst_219 : f32 to vector<8x1xf32>
    %361 = arith.maximumf %359, %360 : vector<8x1xf32>
    %362 = tpu.reciprocal %361 {approx = true} : vector<8x1xf32> -> vector<8x1xf32>
    %363 = vector.broadcast %362 : vector<8x1xf32> to vector<8x8xf32>
    %364 = arith.mulf %357, %363 : vector<8x8xf32>
    %cst_220 = arith.constant dense<0.000000e+00> : vector<8x8xf32>
    %365 = tpu.matmul %364, %347, %cst_220 {dimension_numbers = #tpu.dot_dimension_numbers<[1], [0], [0], [1], [0, 0, 1, 1], [], []>} : vector<8x8xf32>, vector<8x8xf32>, vector<8x8xf32> -> vector<8x8xf32>
    %c0_221 = arith.constant 0 : index
    %c8_222 = arith.constant 8 : index
    %366 = vector.load %arg28[%c0_221, %c8_222] : memref<16x32xf32, #tpu.memory_space<vmem>>, vector<8x8xf32>
    tpu.vector_store %arg28[%c0_221, %c8_222], %365 {strides = array<i32>} : memref<16x32xf32, #tpu.memory_space<vmem>>, vector<8x8xf32>,
    %c0_223 = arith.constant 0 : index
    %c16_224 = arith.constant 16 : index
    %367 = vector.load %arg27[%c0_223, %c16_224] : memref<16x96xf32, #tpu.memory_space<vmem>>, vector<8x8xf32>
    %c0_225 = arith.constant 0 : index
    %c48_226 = arith.constant 48 : index
    %368 = vector.load %arg27[%c0_225, %c48_226] : memref<16x96xf32, #tpu.memory_space<vmem>>, vector<8x8xf32>
    %c0_227 = arith.constant 0 : index
    %c80_228 = arith.constant 80 : index
    %369 = vector.load %arg27[%c0_227, %c80_228] : memref<16x96xf32, #tpu.memory_space<vmem>>, vector<8x8xf32>
    %cst_229 = arith.constant dense<0.000000e+00> : vector<8x8xf32>
    %370 = tpu.matmul %367, %368, %cst_229 {dimension_numbers = #tpu.dot_dimension_numbers<[1], [1], [0], [0], [0, 0, 1, 0], [], []>} : vector<8x8xf32>, vector<8x8xf32>, vector<8x8xf32> -> vector<8x8xf32>
    %cst_230 = arith.constant 0.353553385 : f32
    %371 = vector.broadcast %cst_230 : f32 to vector<8x8xf32>
    %372 = arith.mulf %370, %371 : vector<8x8xf32>
    %373 = vector.broadcast %322 : vector<1x8xf32> to vector<8x8xf32>
    %374 = arith.addf %372, %373 : vector<8x8xf32>
    %cst_231 = arith.constant dense<0xFF800000> : vector<8xf32>
    %375 = vector.multi_reduction <maximumf>, %374, %cst_231 [1] : vector<8x8xf32> to vector<8xf32>
    %376 = vector.shape_cast %375 : vector<8xf32> to vector<8x1xf32>
    %377 = vector.broadcast %376 : vector<8x1xf32> to vector<8x8xf32>
    %378 = arith.subf %374, %377 : vector<8x8xf32>
    %379 = math.exp %378 : vector<8x8xf32>
    %cst_232 = arith.constant dense<0.000000e+00> : vector<8xf32>
    %380 = vector.multi_reduction <add>, %379, %cst_232 [1] : vector<8x8xf32> to vector<8xf32>
    %381 = vector.shape_cast %380 : vector<8xf32> to vector<8x1xf32>
    %cst_233 = arith.constant 1.000000e-30 : f32
    %382 = vector.broadcast %cst_233 : f32 to vector<8x1xf32>
    %383 = arith.maximumf %381, %382 : vector<8x1xf32>
    %384 = tpu.reciprocal %383 {approx = true} : vector<8x1xf32> -> vector<8x1xf32>
    %385 = vector.broadcast %384 : vector<8x1xf32> to vector<8x8xf32>
    %386 = arith.mulf %379, %385 : vector<8x8xf32>
    %cst_234 = arith.constant dense<0.000000e+00> : vector<8x8xf32>
    %387 = tpu.matmul %386, %369, %cst_234 {dimension_numbers = #tpu.dot_dimension_numbers<[1], [0], [0], [1], [0, 0, 1, 1], [], []>} : vector<8x8xf32>, vector<8x8xf32>, vector<8x8xf32> -> vector<8x8xf32>
    %c0_235 = arith.constant 0 : index
    %c16_236 = arith.constant 16 : index
    %388 = vector.load %arg28[%c0_235, %c16_236] : memref<16x32xf32, #tpu.memory_space<vmem>>, vector<8x8xf32>
    tpu.vector_store %arg28[%c0_235, %c16_236], %387 {strides = array<i32>} : memref<16x32xf32, #tpu.memory_space<vmem>>, vector<8x8xf32>,
    %c0_237 = arith.constant 0 : index
    %c24_238 = arith.constant 24 : index
    %389 = vector.load %arg27[%c0_237, %c24_238] : memref<16x96xf32, #tpu.memory_space<vmem>>, vector<8x8xf32>
    %c0_239 = arith.constant 0 : index
    %c56_240 = arith.constant 56 : index
    %390 = vector.load %arg27[%c0_239, %c56_240] : memref<16x96xf32, #tpu.memory_space<vmem>>, vector<8x8xf32>
    %c0_241 = arith.constant 0 : index
    %c88_242 = arith.constant 88 : index
    %391 = vector.load %arg27[%c0_241, %c88_242] : memref<16x96xf32, #tpu.memory_space<vmem>>, vector<8x8xf32>
    %cst_243 = arith.constant dense<0.000000e+00> : vector<8x8xf32>
    %392 = tpu.matmul %389, %390, %cst_243 {dimension_numbers = #tpu.dot_dimension_numbers<[1], [1], [0], [0], [0, 0, 1, 0], [], []>} : vector<8x8xf32>, vector<8x8xf32>, vector<8x8xf32> -> vector<8x8xf32>
    %cst_244 = arith.constant 0.353553385 : f32
    %393 = vector.broadcast %cst_244 : f32 to vector<8x8xf32>
    %394 = arith.mulf %392, %393 : vector<8x8xf32>
    %395 = vector.broadcast %322 : vector<1x8xf32> to vector<8x8xf32>
    %396 = arith.addf %394, %395 : vector<8x8xf32>
    %cst_245 = arith.constant dense<0xFF800000> : vector<8xf32>
    %397 = vector.multi_reduction <maximumf>, %396, %cst_245 [1] : vector<8x8xf32> to vector<8xf32>
    %398 = vector.shape_cast %397 : vector<8xf32> to vector<8x1xf32>
    %399 = vector.broadcast %398 : vector<8x1xf32> to vector<8x8xf32>
    %400 = arith.subf %396, %399 : vector<8x8xf32>
    %401 = math.exp %400 : vector<8x8xf32>
    %cst_246 = arith.constant dense<0.000000e+00> : vector<8xf32>
    %402 = vector.multi_reduction <add>, %401, %cst_246 [1] : vector<8x8xf32> to vector<8xf32>
    %403 = vector.shape_cast %402 : vector<8xf32> to vector<8x1xf32>
    %cst_247 = arith.constant 1.000000e-30 : f32
    %404 = vector.broadcast %cst_247 : f32 to vector<8x1xf32>
    %405 = arith.maximumf %403, %404 : vector<8x1xf32>
    %406 = tpu.reciprocal %405 {approx = true} : vector<8x1xf32> -> vector<8x1xf32>
    %407 = vector.broadcast %406 : vector<8x1xf32> to vector<8x8xf32>
    %408 = arith.mulf %401, %407 : vector<8x8xf32>
    %cst_248 = arith.constant dense<0.000000e+00> : vector<8x8xf32>
    %409 = tpu.matmul %408, %391, %cst_248 {dimension_numbers = #tpu.dot_dimension_numbers<[1], [0], [0], [1], [0, 0, 1, 1], [], []>} : vector<8x8xf32>, vector<8x8xf32>, vector<8x8xf32> -> vector<8x8xf32>
    %c0_249 = arith.constant 0 : index
    %c24_250 = arith.constant 24 : index
    %410 = vector.load %arg28[%c0_249, %c24_250] : memref<16x32xf32, #tpu.memory_space<vmem>>, vector<8x8xf32>
    tpu.vector_store %arg28[%c0_249, %c24_250], %409 {strides = array<i32>} : memref<16x32xf32, #tpu.memory_space<vmem>>, vector<8x8xf32>,
    %c1_251 = arith.constant 1 : index
    %c0_252 = arith.constant 0 : index
    %411 = vector.load %arg2[%c1_251, %c0_252] : memref<2x8xf32, #tpu.memory_space<vmem>>, vector<1x8xf32>
    %cst_253 = arith.constant 1.000000e+00 : f32
    %412 = vector.broadcast %cst_253 : f32 to vector<1x8xf32>
    %413 = arith.subf %412, %411 : vector<1x8xf32>
    %cst_254 = arith.constant -1.000000e+09 : f32
    %414 = vector.broadcast %cst_254 : f32 to vector<1x8xf32>
    %415 = arith.mulf %413, %414 : vector<1x8xf32>
    %c8_255 = arith.constant 8 : index
    %c0_256 = arith.constant 0 : index
    %416 = vector.load %arg27[%c8_255, %c0_256] : memref<16x96xf32, #tpu.memory_space<vmem>>, vector<8x8xf32>
    %c8_257 = arith.constant 8 : index
    %c32_258 = arith.constant 32 : index
    %417 = vector.load %arg27[%c8_257, %c32_258] : memref<16x96xf32, #tpu.memory_space<vmem>>, vector<8x8xf32>
    %c8_259 = arith.constant 8 : index
    %c64_260 = arith.constant 64 : index
    %418 = vector.load %arg27[%c8_259, %c64_260] : memref<16x96xf32, #tpu.memory_space<vmem>>, vector<8x8xf32>
    %cst_261 = arith.constant dense<0.000000e+00> : vector<8x8xf32>
    %419 = tpu.matmul %416, %417, %cst_261 {dimension_numbers = #tpu.dot_dimension_numbers<[1], [1], [0], [0], [0, 0, 1, 0], [], []>} : vector<8x8xf32>, vector<8x8xf32>, vector<8x8xf32> -> vector<8x8xf32>
    %cst_262 = arith.constant 0.353553385 : f32
    %420 = vector.broadcast %cst_262 : f32 to vector<8x8xf32>
    %421 = arith.mulf %419, %420 : vector<8x8xf32>
    %422 = vector.broadcast %415 : vector<1x8xf32> to vector<8x8xf32>
    %423 = arith.addf %421, %422 : vector<8x8xf32>
    %cst_263 = arith.constant dense<0xFF800000> : vector<8xf32>
    %424 = vector.multi_reduction <maximumf>, %423, %cst_263 [1] : vector<8x8xf32> to vector<8xf32>
    %425 = vector.shape_cast %424 : vector<8xf32> to vector<8x1xf32>
    %426 = vector.broadcast %425 : vector<8x1xf32> to vector<8x8xf32>
    %427 = arith.subf %423, %426 : vector<8x8xf32>
    %428 = math.exp %427 : vector<8x8xf32>
    %cst_264 = arith.constant dense<0.000000e+00> : vector<8xf32>
    %429 = vector.multi_reduction <add>, %428, %cst_264 [1] : vector<8x8xf32> to vector<8xf32>
    %430 = vector.shape_cast %429 : vector<8xf32> to vector<8x1xf32>
    %cst_265 = arith.constant 1.000000e-30 : f32
    %431 = vector.broadcast %cst_265 : f32 to vector<8x1xf32>
    %432 = arith.maximumf %430, %431 : vector<8x1xf32>
    %433 = tpu.reciprocal %432 {approx = true} : vector<8x1xf32> -> vector<8x1xf32>
    %434 = vector.broadcast %433 : vector<8x1xf32> to vector<8x8xf32>
    %435 = arith.mulf %428, %434 : vector<8x8xf32>
    %cst_266 = arith.constant dense<0.000000e+00> : vector<8x8xf32>
    %436 = tpu.matmul %435, %418, %cst_266 {dimension_numbers = #tpu.dot_dimension_numbers<[1], [0], [0], [1], [0, 0, 1, 1], [], []>} : vector<8x8xf32>, vector<8x8xf32>, vector<8x8xf32> -> vector<8x8xf32>
    %c8_267 = arith.constant 8 : index
    %c0_268 = arith.constant 0 : index
    %437 = vector.load %arg28[%c8_267, %c0_268] : memref<16x32xf32, #tpu.memory_space<vmem>>, vector<8x8xf32>
    tpu.vector_store %arg28[%c8_267, %c0_268], %436 {strides = array<i32>} : memref<16x32xf32, #tpu.memory_space<vmem>>, vector<8x8xf32>,
    %c8_269 = arith.constant 8 : index
    %c8_270 = arith.constant 8 : index
    %438 = vector.load %arg27[%c8_269, %c8_270] : memref<16x96xf32, #tpu.memory_space<vmem>>, vector<8x8xf32>
    %c8_271 = arith.constant 8 : index
    %c40_272 = arith.constant 40 : index
    %439 = vector.load %arg27[%c8_271, %c40_272] : memref<16x96xf32, #tpu.memory_space<vmem>>, vector<8x8xf32>
    %c8_273 = arith.constant 8 : index
    %c72_274 = arith.constant 72 : index
    %440 = vector.load %arg27[%c8_273, %c72_274] : memref<16x96xf32, #tpu.memory_space<vmem>>, vector<8x8xf32>
    %cst_275 = arith.constant dense<0.000000e+00> : vector<8x8xf32>
    %441 = tpu.matmul %438, %439, %cst_275 {dimension_numbers = #tpu.dot_dimension_numbers<[1], [1], [0], [0], [0, 0, 1, 0], [], []>} : vector<8x8xf32>, vector<8x8xf32>, vector<8x8xf32> -> vector<8x8xf32>
    %cst_276 = arith.constant 0.353553385 : f32
    %442 = vector.broadcast %cst_276 : f32 to vector<8x8xf32>
    %443 = arith.mulf %441, %442 : vector<8x8xf32>
    %444 = vector.broadcast %415 : vector<1x8xf32> to vector<8x8xf32>
    %445 = arith.addf %443, %444 : vector<8x8xf32>
    %cst_277 = arith.constant dense<0xFF800000> : vector<8xf32>
    %446 = vector.multi_reduction <maximumf>, %445, %cst_277 [1] : vector<8x8xf32> to vector<8xf32>
    %447 = vector.shape_cast %446 : vector<8xf32> to vector<8x1xf32>
    %448 = vector.broadcast %447 : vector<8x1xf32> to vector<8x8xf32>
    %449 = arith.subf %445, %448 : vector<8x8xf32>
    %450 = math.exp %449 : vector<8x8xf32>
    %cst_278 = arith.constant dense<0.000000e+00> : vector<8xf32>
    %451 = vector.multi_reduction <add>, %450, %cst_278 [1] : vector<8x8xf32> to vector<8xf32>
    %452 = vector.shape_cast %451 : vector<8xf32> to vector<8x1xf32>
    %cst_279 = arith.constant 1.000000e-30 : f32
    %453 = vector.broadcast %cst_279 : f32 to vector<8x1xf32>
    %454 = arith.maximumf %452, %453 : vector<8x1xf32>
    %455 = tpu.reciprocal %454 {approx = true} : vector<8x1xf32> -> vector<8x1xf32>
    %456 = vector.broadcast %455 : vector<8x1xf32> to vector<8x8xf32>
    %457 = arith.mulf %450, %456 : vector<8x8xf32>
    %cst_280 = arith.constant dense<0.000000e+00> : vector<8x8xf32>
    %458 = tpu.matmul %457, %440, %cst_280 {dimension_numbers = #tpu.dot_dimension_numbers<[1], [0], [0], [1], [0, 0, 1, 1], [], []>} : vector<8x8xf32>, vector<8x8xf32>, vector<8x8xf32> -> vector<8x8xf32>
    %c8_281 = arith.constant 8 : index
    %c8_282 = arith.constant 8 : index
    %459 = vector.load %arg28[%c8_281, %c8_282] : memref<16x32xf32, #tpu.memory_space<vmem>>, vector<8x8xf32>
    tpu.vector_store %arg28[%c8_281, %c8_282], %458 {strides = array<i32>} : memref<16x32xf32, #tpu.memory_space<vmem>>, vector<8x8xf32>,
    %c8_283 = arith.constant 8 : index
    %c16_284 = arith.constant 16 : index
    %460 = vector.load %arg27[%c8_283, %c16_284] : memref<16x96xf32, #tpu.memory_space<vmem>>, vector<8x8xf32>
    %c8_285 = arith.constant 8 : index
    %c48_286 = arith.constant 48 : index
    %461 = vector.load %arg27[%c8_285, %c48_286] : memref<16x96xf32, #tpu.memory_space<vmem>>, vector<8x8xf32>
    %c8_287 = arith.constant 8 : index
    %c80_288 = arith.constant 80 : index
    %462 = vector.load %arg27[%c8_287, %c80_288] : memref<16x96xf32, #tpu.memory_space<vmem>>, vector<8x8xf32>
    %cst_289 = arith.constant dense<0.000000e+00> : vector<8x8xf32>
    %463 = tpu.matmul %460, %461, %cst_289 {dimension_numbers = #tpu.dot_dimension_numbers<[1], [1], [0], [0], [0, 0, 1, 0], [], []>} : vector<8x8xf32>, vector<8x8xf32>, vector<8x8xf32> -> vector<8x8xf32>
    %cst_290 = arith.constant 0.353553385 : f32
    %464 = vector.broadcast %cst_290 : f32 to vector<8x8xf32>
    %465 = arith.mulf %463, %464 : vector<8x8xf32>
    %466 = vector.broadcast %415 : vector<1x8xf32> to vector<8x8xf32>
    %467 = arith.addf %465, %466 : vector<8x8xf32>
    %cst_291 = arith.constant dense<0xFF800000> : vector<8xf32>
    %468 = vector.multi_reduction <maximumf>, %467, %cst_291 [1] : vector<8x8xf32> to vector<8xf32>
    %469 = vector.shape_cast %468 : vector<8xf32> to vector<8x1xf32>
    %470 = vector.broadcast %469 : vector<8x1xf32> to vector<8x8xf32>
    %471 = arith.subf %467, %470 : vector<8x8xf32>
    %472 = math.exp %471 : vector<8x8xf32>
    %cst_292 = arith.constant dense<0.000000e+00> : vector<8xf32>
    %473 = vector.multi_reduction <add>, %472, %cst_292 [1] : vector<8x8xf32> to vector<8xf32>
    %474 = vector.shape_cast %473 : vector<8xf32> to vector<8x1xf32>
    %cst_293 = arith.constant 1.000000e-30 : f32
    %475 = vector.broadcast %cst_293 : f32 to vector<8x1xf32>
    %476 = arith.maximumf %474, %475 : vector<8x1xf32>
    %477 = tpu.reciprocal %476 {approx = true} : vector<8x1xf32> -> vector<8x1xf32>
    %478 = vector.broadcast %477 : vector<8x1xf32> to vector<8x8xf32>
    %479 = arith.mulf %472, %478 : vector<8x8xf32>
    %cst_294 = arith.constant dense<0.000000e+00> : vector<8x8xf32>
    %480 = tpu.matmul %479, %462, %cst_294 {dimension_numbers = #tpu.dot_dimension_numbers<[1], [0], [0], [1], [0, 0, 1, 1], [], []>} : vector<8x8xf32>, vector<8x8xf32>, vector<8x8xf32> -> vector<8x8xf32>
    %c8_295 = arith.constant 8 : index
    %c16_296 = arith.constant 16 : index
    %481 = vector.load %arg28[%c8_295, %c16_296] : memref<16x32xf32, #tpu.memory_space<vmem>>, vector<8x8xf32>
    tpu.vector_store %arg28[%c8_295, %c16_296], %480 {strides = array<i32>} : memref<16x32xf32, #tpu.memory_space<vmem>>, vector<8x8xf32>,
    %c8_297 = arith.constant 8 : index
    %c24_298 = arith.constant 24 : index
    %482 = vector.load %arg27[%c8_297, %c24_298] : memref<16x96xf32, #tpu.memory_space<vmem>>, vector<8x8xf32>
    %c8_299 = arith.constant 8 : index
    %c56_300 = arith.constant 56 : index
    %483 = vector.load %arg27[%c8_299, %c56_300] : memref<16x96xf32, #tpu.memory_space<vmem>>, vector<8x8xf32>
    %c8_301 = arith.constant 8 : index
    %c88_302 = arith.constant 88 : index
    %484 = vector.load %arg27[%c8_301, %c88_302] : memref<16x96xf32, #tpu.memory_space<vmem>>, vector<8x8xf32>
    %cst_303 = arith.constant dense<0.000000e+00> : vector<8x8xf32>
    %485 = tpu.matmul %482, %483, %cst_303 {dimension_numbers = #tpu.dot_dimension_numbers<[1], [1], [0], [0], [0, 0, 1, 0], [], []>} : vector<8x8xf32>, vector<8x8xf32>, vector<8x8xf32> -> vector<8x8xf32>
    %cst_304 = arith.constant 0.353553385 : f32
    %486 = vector.broadcast %cst_304 : f32 to vector<8x8xf32>
    %487 = arith.mulf %485, %486 : vector<8x8xf32>
    %488 = vector.broadcast %415 : vector<1x8xf32> to vector<8x8xf32>
    %489 = arith.addf %487, %488 : vector<8x8xf32>
    %cst_305 = arith.constant dense<0xFF800000> : vector<8xf32>
    %490 = vector.multi_reduction <maximumf>, %489, %cst_305 [1] : vector<8x8xf32> to vector<8xf32>
    %491 = vector.shape_cast %490 : vector<8xf32> to vector<8x1xf32>
    %492 = vector.broadcast %491 : vector<8x1xf32> to vector<8x8xf32>
    %493 = arith.subf %489, %492 : vector<8x8xf32>
    %494 = math.exp %493 : vector<8x8xf32>
    %cst_306 = arith.constant dense<0.000000e+00> : vector<8xf32>
    %495 = vector.multi_reduction <add>, %494, %cst_306 [1] : vector<8x8xf32> to vector<8xf32>
    %496 = vector.shape_cast %495 : vector<8xf32> to vector<8x1xf32>
    %cst_307 = arith.constant 1.000000e-30 : f32
    %497 = vector.broadcast %cst_307 : f32 to vector<8x1xf32>
    %498 = arith.maximumf %496, %497 : vector<8x1xf32>
    %499 = tpu.reciprocal %498 {approx = true} : vector<8x1xf32> -> vector<8x1xf32>
    %500 = vector.broadcast %499 : vector<8x1xf32> to vector<8x8xf32>
    %501 = arith.mulf %494, %500 : vector<8x8xf32>
    %cst_308 = arith.constant dense<0.000000e+00> : vector<8x8xf32>
    %502 = tpu.matmul %501, %484, %cst_308 {dimension_numbers = #tpu.dot_dimension_numbers<[1], [0], [0], [1], [0, 0, 1, 1], [], []>} : vector<8x8xf32>, vector<8x8xf32>, vector<8x8xf32> -> vector<8x8xf32>
    %c8_309 = arith.constant 8 : index
    %c24_310 = arith.constant 24 : index
    %503 = vector.load %arg28[%c8_309, %c24_310] : memref<16x32xf32, #tpu.memory_space<vmem>>, vector<8x8xf32>
    tpu.vector_store %arg28[%c8_309, %c24_310], %502 {strides = array<i32>} : memref<16x32xf32, #tpu.memory_space<vmem>>, vector<8x8xf32>,
    %c0_311 = arith.constant 0 : index
    %c0_312 = arith.constant 0 : index
    %504 = vector.load %arg28[%c0_311, %c0_312] : memref<16x32xf32, #tpu.memory_space<vmem>>, vector<16x32xf32>
    %c1_313 = arith.constant 1 : index
    %c0_314 = arith.constant 0 : index
    %c0_315 = arith.constant 0 : index
    %505 = vector.load %arg10[%c1_313, %c0_314, %c0_315] : memref<2x32x32xf32, #tpu.memory_space<vmem>>, vector<1x32x32xf32>
    %506 = vector.shape_cast %505 : vector<1x32x32xf32> to vector<32x32xf32>
    %cst_316 = arith.constant dense<0.000000e+00> : vector<16x32xf32>
    %507 = tpu.matmul %504, %506, %cst_316 {dimension_numbers = #tpu.dot_dimension_numbers<[1], [0], [0], [1], [0, 0, 1, 1], [], []>} : vector<16x32xf32>, vector<32x32xf32>, vector<16x32xf32> -> vector<16x32xf32>
    %c1_317 = arith.constant 1 : index
    %c0_318 = arith.constant 0 : index
    %c0_319 = arith.constant 0 : index
    %508 = vector.load %arg11[%c1_317, %c0_318, %c0_319] : memref<2x1x32xf32, #tpu.memory_space<vmem>>, vector<1x1x32xf32>
    %509 = vector.shape_cast %508 : vector<1x1x32xf32> to vector<1x32xf32>
    %510 = vector.broadcast %509 : vector<1x32xf32> to vector<16x32xf32>
    %511 = arith.addf %507, %510 : vector<16x32xf32>
    %512 = arith.addf %511, %309 : vector<16x32xf32>
    %c1_320 = arith.constant 1 : index
    %c0_321 = arith.constant 0 : index
    %c0_322 = arith.constant 0 : index
    %513 = vector.load %arg12[%c1_320, %c0_321, %c0_322] : memref<2x1x32xf32, #tpu.memory_space<vmem>>, vector<1x1x32xf32>
    %514 = vector.shape_cast %513 : vector<1x1x32xf32> to vector<1x32xf32>
    %c1_323 = arith.constant 1 : index
    %c0_324 = arith.constant 0 : index
    %c0_325 = arith.constant 0 : index
    %515 = vector.load %arg13[%c1_323, %c0_324, %c0_325] : memref<2x1x32xf32, #tpu.memory_space<vmem>>, vector<1x1x32xf32>
    %516 = vector.shape_cast %515 : vector<1x1x32xf32> to vector<1x32xf32>
    %cst_326 = arith.constant dense<0.000000e+00> : vector<16xf32>
    %517 = vector.multi_reduction <add>, %512, %cst_326 [1] : vector<16x32xf32> to vector<16xf32>
    %518 = vector.shape_cast %517 : vector<16xf32> to vector<16x1xf32>
    %cst_327 = arith.constant 3.200000e+01 : f32
    %519 = vector.broadcast %cst_327 : f32 to vector<16x1xf32>
    %520 = arith.divf %518, %519 : vector<16x1xf32>
    %521 = vector.broadcast %520 : vector<16x1xf32> to vector<16x32xf32>
    %522 = arith.subf %512, %521 : vector<16x32xf32>
    %523 = arith.mulf %522, %522 : vector<16x32xf32>
    %cst_328 = arith.constant dense<0.000000e+00> : vector<16xf32>
    %524 = vector.multi_reduction <add>, %523, %cst_328 [1] : vector<16x32xf32> to vector<16xf32>
    %525 = vector.shape_cast %524 : vector<16xf32> to vector<16x1xf32>
    %cst_329 = arith.constant 3.200000e+01 : f32
    %526 = vector.broadcast %cst_329 : f32 to vector<16x1xf32>
    %527 = arith.divf %525, %526 : vector<16x1xf32>
    %cst_330 = arith.constant 9.99999996E-13 : f32
    %528 = vector.broadcast %cst_330 : f32 to vector<16x1xf32>
    %529 = arith.addf %527, %528 : vector<16x1xf32>
    %530 = math.rsqrt %529 : vector<16x1xf32>
    %531 = vector.broadcast %530 : vector<16x1xf32> to vector<16x32xf32>
    %532 = arith.mulf %522, %531 : vector<16x32xf32>
    %533 = vector.broadcast %514 : vector<1x32xf32> to vector<16x32xf32>
    %534 = arith.mulf %532, %533 : vector<16x32xf32>
    %535 = vector.broadcast %516 : vector<1x32xf32> to vector<16x32xf32>
    %536 = arith.addf %534, %535 : vector<16x32xf32>
    %c1_331 = arith.constant 1 : index
    %c0_332 = arith.constant 0 : index
    %c0_333 = arith.constant 0 : index
    %537 = vector.load %arg14[%c1_331, %c0_332, %c0_333] : memref<2x32x64xf32, #tpu.memory_space<vmem>>, vector<1x32x64xf32>
    %538 = vector.shape_cast %537 : vector<1x32x64xf32> to vector<32x64xf32>
    %cst_334 = arith.constant dense<0.000000e+00> : vector<16x64xf32>
    %539 = tpu.matmul %536, %538, %cst_334 {dimension_numbers = #tpu.dot_dimension_numbers<[1], [0], [0], [1], [0, 0, 1, 1], [], []>} : vector<16x32xf32>, vector<32x64xf32>, vector<16x64xf32> -> vector<16x64xf32>
    %c1_335 = arith.constant 1 : index
    %c0_336 = arith.constant 0 : index
    %c0_337 = arith.constant 0 : index
    %540 = vector.load %arg15[%c1_335, %c0_336, %c0_337] : memref<2x1x64xf32, #tpu.memory_space<vmem>>, vector<1x1x64xf32>
    %541 = vector.shape_cast %540 : vector<1x1x64xf32> to vector<1x64xf32>
    %542 = vector.broadcast %541 : vector<1x64xf32> to vector<16x64xf32>
    %543 = arith.addf %539, %542 : vector<16x64xf32>
    %cst_338 = arith.constant 0.000000e+00 : f32
    %544 = vector.broadcast %cst_338 : f32 to vector<16x64xf32>
    %545 = arith.maximumf %543, %544 : vector<16x64xf32>
    %c1_339 = arith.constant 1 : index
    %c0_340 = arith.constant 0 : index
    %c0_341 = arith.constant 0 : index
    %546 = vector.load %arg16[%c1_339, %c0_340, %c0_341] : memref<2x64x32xf32, #tpu.memory_space<vmem>>, vector<1x64x32xf32>
    %547 = vector.shape_cast %546 : vector<1x64x32xf32> to vector<64x32xf32>
    %cst_342 = arith.constant dense<0.000000e+00> : vector<16x32xf32>
    %548 = tpu.matmul %545, %547, %cst_342 {dimension_numbers = #tpu.dot_dimension_numbers<[1], [0], [0], [1], [0, 0, 1, 1], [], []>} : vector<16x64xf32>, vector<64x32xf32>, vector<16x32xf32> -> vector<16x32xf32>
    %c1_343 = arith.constant 1 : index
    %c0_344 = arith.constant 0 : index
    %c0_345 = arith.constant 0 : index
    %549 = vector.load %arg17[%c1_343, %c0_344, %c0_345] : memref<2x1x32xf32, #tpu.memory_space<vmem>>, vector<1x1x32xf32>
    %550 = vector.shape_cast %549 : vector<1x1x32xf32> to vector<1x32xf32>
    %551 = vector.broadcast %550 : vector<1x32xf32> to vector<16x32xf32>
    %552 = arith.addf %548, %551 : vector<16x32xf32>
    %553 = arith.addf %552, %536 : vector<16x32xf32>
    %c1_346 = arith.constant 1 : index
    %c0_347 = arith.constant 0 : index
    %c0_348 = arith.constant 0 : index
    %554 = vector.load %arg18[%c1_346, %c0_347, %c0_348] : memref<2x1x32xf32, #tpu.memory_space<vmem>>, vector<1x1x32xf32>
    %555 = vector.shape_cast %554 : vector<1x1x32xf32> to vector<1x32xf32>
    %c1_349 = arith.constant 1 : index
    %c0_350 = arith.constant 0 : index
    %c0_351 = arith.constant 0 : index
    %556 = vector.load %arg19[%c1_349, %c0_350, %c0_351] : memref<2x1x32xf32, #tpu.memory_space<vmem>>, vector<1x1x32xf32>
    %557 = vector.shape_cast %556 : vector<1x1x32xf32> to vector<1x32xf32>
    %cst_352 = arith.constant dense<0.000000e+00> : vector<16xf32>
    %558 = vector.multi_reduction <add>, %553, %cst_352 [1] : vector<16x32xf32> to vector<16xf32>
    %559 = vector.shape_cast %558 : vector<16xf32> to vector<16x1xf32>
    %cst_353 = arith.constant 3.200000e+01 : f32
    %560 = vector.broadcast %cst_353 : f32 to vector<16x1xf32>
    %561 = arith.divf %559, %560 : vector<16x1xf32>
    %562 = vector.broadcast %561 : vector<16x1xf32> to vector<16x32xf32>
    %563 = arith.subf %553, %562 : vector<16x32xf32>
    %564 = arith.mulf %563, %563 : vector<16x32xf32>
    %cst_354 = arith.constant dense<0.000000e+00> : vector<16xf32>
    %565 = vector.multi_reduction <add>, %564, %cst_354 [1] : vector<16x32xf32> to vector<16xf32>
    %566 = vector.shape_cast %565 : vector<16xf32> to vector<16x1xf32>
    %cst_355 = arith.constant 3.200000e+01 : f32
    %567 = vector.broadcast %cst_355 : f32 to vector<16x1xf32>
    %568 = arith.divf %566, %567 : vector<16x1xf32>
    %cst_356 = arith.constant 9.99999996E-13 : f32
    %569 = vector.broadcast %cst_356 : f32 to vector<16x1xf32>
    %570 = arith.addf %568, %569 : vector<16x1xf32>
    %571 = math.rsqrt %570 : vector<16x1xf32>
    %572 = vector.broadcast %571 : vector<16x1xf32> to vector<16x32xf32>
    %573 = arith.mulf %563, %572 : vector<16x32xf32>
    %574 = vector.broadcast %555 : vector<1x32xf32> to vector<16x32xf32>
    %575 = arith.mulf %573, %574 : vector<16x32xf32>
    %576 = vector.broadcast %557 : vector<1x32xf32> to vector<16x32xf32>
    %577 = arith.addf %575, %576 : vector<16x32xf32>
    %c0_357 = arith.constant 0 : index
    %c0_358 = arith.constant 0 : index
    %578 = vector.load %arg20[%c0_357, %c0_358] : memref<32x32xf32, #tpu.memory_space<vmem>>, vector<32x32xf32>
    %cst_359 = arith.constant dense<0.000000e+00> : vector<16x32xf32>
    %579 = tpu.matmul %577, %578, %cst_359 {dimension_numbers = #tpu.dot_dimension_numbers<[1], [0], [0], [1], [0, 0, 1, 1], [], []>} : vector<16x32xf32>, vector<32x32xf32>, vector<16x32xf32> -> vector<16x32xf32>
    %c0_360 = arith.constant 0 : index
    %c0_361 = arith.constant 0 : index
    %580 = vector.load %arg21[%c0_360, %c0_361] : memref<1x32xf32, #tpu.memory_space<vmem>>, vector<1x32xf32>
    %581 = vector.broadcast %580 : vector<1x32xf32> to vector<16x32xf32>
    %582 = arith.addf %579, %581 : vector<16x32xf32>
    %cst_362 = arith.constant 0.000000e+00 : f32
    %583 = vector.broadcast %cst_362 : f32 to vector<16x32xf32>
    %584 = arith.maximumf %582, %583 : vector<16x32xf32>
    %c0_363 = arith.constant 0 : index
    %c0_364 = arith.constant 0 : index
    %585 = vector.load %arg22[%c0_363, %c0_364] : memref<1x32xf32, #tpu.memory_space<vmem>>, vector<1x32xf32>
    %c0_365 = arith.constant 0 : index
    %c0_366 = arith.constant 0 : index
    %586 = vector.load %arg23[%c0_365, %c0_366] : memref<1x32xf32, #tpu.memory_space<vmem>>, vector<1x32xf32>
    %cst_367 = arith.constant dense<0.000000e+00> : vector<16xf32>
    %587 = vector.multi_reduction <add>, %584, %cst_367 [1] : vector<16x32xf32> to vector<16xf32>
    %588 = vector.shape_cast %587 : vector<16xf32> to vector<16x1xf32>
    %cst_368 = arith.constant 3.200000e+01 : f32
    %589 = vector.broadcast %cst_368 : f32 to vector<16x1xf32>
    %590 = arith.divf %588, %589 : vector<16x1xf32>
    %591 = vector.broadcast %590 : vector<16x1xf32> to vector<16x32xf32>
    %592 = arith.subf %584, %591 : vector<16x32xf32>
    %593 = arith.mulf %592, %592 : vector<16x32xf32>
    %cst_369 = arith.constant dense<0.000000e+00> : vector<16xf32>
    %594 = vector.multi_reduction <add>, %593, %cst_369 [1] : vector<16x32xf32> to vector<16xf32>
    %595 = vector.shape_cast %594 : vector<16xf32> to vector<16x1xf32>
    %cst_370 = arith.constant 3.200000e+01 : f32
    %596 = vector.broadcast %cst_370 : f32 to vector<16x1xf32>
    %597 = arith.divf %595, %596 : vector<16x1xf32>
    %cst_371 = arith.constant 9.99999996E-13 : f32
    %598 = vector.broadcast %cst_371 : f32 to vector<16x1xf32>
    %599 = arith.addf %597, %598 : vector<16x1xf32>
    %600 = math.rsqrt %599 : vector<16x1xf32>
    %601 = vector.broadcast %600 : vector<16x1xf32> to vector<16x32xf32>
    %602 = arith.mulf %592, %601 : vector<16x32xf32>
    %603 = vector.broadcast %585 : vector<1x32xf32> to vector<16x32xf32>
    %604 = arith.mulf %602, %603 : vector<16x32xf32>
    %605 = vector.broadcast %586 : vector<1x32xf32> to vector<16x32xf32>
    %606 = arith.addf %604, %605 : vector<16x32xf32>
    %c0_372 = arith.constant 0 : index
    %c0_373 = arith.constant 0 : index
    %607 = vector.load %arg24[%c0_372, %c0_373] : memref<32x128xf32, #tpu.memory_space<vmem>>, vector<32x128xf32>
    %cst_374 = arith.constant dense<0.000000e+00> : vector<16x128xf32>
    %608 = tpu.matmul %606, %607, %cst_374 {dimension_numbers = #tpu.dot_dimension_numbers<[1], [0], [0], [1], [0, 0, 1, 1], [], []>} : vector<16x32xf32>, vector<32x128xf32>, vector<16x128xf32> -> vector<16x128xf32>
    %c0_375 = arith.constant 0 : index
    %c0_376 = arith.constant 0 : index
    %609 = vector.load %arg25[%c0_375, %c0_376] : memref<1x128xf32, #tpu.memory_space<vmem>>, vector<1x128xf32>
    %610 = vector.broadcast %609 : vector<1x128xf32> to vector<16x128xf32>
    %611 = arith.addf %608, %610 : vector<16x128xf32>
    %c0_377 = arith.constant 0 : index
    %c0_378 = arith.constant 0 : index
    %612 = vector.load %arg26[%c0_377, %c0_378] : memref<16x128xf32, #tpu.memory_space<vmem>>, vector<16x128xf32>
    tpu.vector_store %arg26[%c0_377, %c0_378], %611 {strides = array<i32>} : memref<16x128xf32, #tpu.memory_space<vmem>>, vector<16x128xf32>,
    return
  }
}

</mosaic_0001>

<bundles_post_ra>
// kernel: tile.0
= control target key start
LH: loop header
LB: loop body
LE: loop exit
PB: predicated region body
PF: predicated region fallthrough
CT: control target
= control target key end

     0   :  { %s66_s8 = smov 125   ;;  %vm7_vm0 = vcmask 7168   ;;  %s67_s11 = smov 126   ;;  %s117_s0 = inlined_call_operand.vmem [shape: s32[2,8], index: 0, kind: input, shape index: {}]   ;;  %s118_s1 = inlined_call_operand.vmem [shape: s32[16,1], index: 1, kind: output, shape index: {}]  }
   0x1   :  { %v4_v0 = vld [vmem:[%s117_s0] sm:$0x3]  ;;  %s65_s0 = smov 127   ;;  %s68_s12 = smov 124  }
   0x2   :  { %5 = vst [vmem:[#allocation0] sm:$0x3] %v4_v0  ;;  %s69_s13 = smov 123   ;;  %s70_s14 = smov 122  }
   0x3   :  { %s71_s15 = smov 121  }
   0x9   :  { %v9_v1 = vld [vmem:[#allocation0] sm:$0x3]  }
   0xa   :  { %v21_v2 = vld [vmem:[#allocation0] sm:$0x3]   ;;  %10 = vrot.lane.b32.xlu0 %v9_v1, %s65_s0 }
   0xb   :  { %22 = vrot.lane.b32.xlu1 %v21_v2, %s66_s8  ;;  %v15_v3 = vld [vmem:[#allocation0] sm:$0x3]  }
   0xc   :  { %v27_v4 = vld [vmem:[#allocation0] sm:$0x3]  }
   0xd   :  { %v6_v5 = vld [vmem:[#allocation0] sm:$0x3]  }
   0xe   :  { %8 = vst.msk [vmem:[%s118_s1] ss:$8 sm:$0x3] %vm7_vm0, %v6_v5   ;;  %16 = vrot.lane.b32.xlu0 %v15_v3, %s67_s11  ;;  %v33_v6 = vld [vmem:[#allocation0] sm:$0x3]  }
   0xf   :  { %28 = vrot.lane.b32.xlu1 %v27_v4, %s68_s12  ;;  %v39_v7 = vld [vmem:[#allocation0] sm:$0x3]  }
  0x10   :  { %v45_v8 = vld [vmem:[#allocation0] sm:$0x3]  }
  0x12   :  { %34 = vrot.lane.b32.xlu0 %v33_v6, %s69_s13 }
  0x13   :  { %40 = vrot.lane.b32.xlu1 %v39_v7, %s70_s14 }
  0x16   :  { %46 = vrot.lane.b32.xlu0 %v45_v8, %s71_s15 }
  0x7c   :  { %v11_v9 = vpop.permute.xlu0 %10  }
  0x7d   :  { %v23_v10 = vpop.permute.xlu1 %22   ;;  %51 = vst.msk [vmem:[%s118_s1 + $0x1] ss:$8 sm:$0x3] %vm7_vm0, %v11_v9  }
  0x7e   :  { %53 = vst.msk [vmem:[%s118_s1 + $0x3] ss:$8 sm:$0x3] %vm7_vm0, %v23_v10  }
  0x80   :  { %v17_v11 = vpop.permute.xlu0 %16  }
  0x81   :  { %v29_v12 = vpop.permute.xlu1 %28   ;;  %52 = vst.msk [vmem:[%s118_s1 + $0x2] ss:$8 sm:$0x3] %vm7_vm0, %v17_v11  }
  0x82   :  { %54 = vst.msk [vmem:[%s118_s1 + $0x4] ss:$8 sm:$0x3] %vm7_vm0, %v29_v12  }
  0x84   :  { %v35_v13 = vpop.permute.xlu0 %34  }
  0x85   :  { %v41_v14 = vpop.permute.xlu1 %40   ;;  %55 = vst.msk [vmem:[%s118_s1 + $0x5] ss:$8 sm:$0x3] %vm7_vm0, %v35_v13  }
  0x86   :  { %56 = vst.msk [vmem:[%s118_s1 + $0x6] ss:$8 sm:$0x3] %vm7_vm0, %v41_v14  }
  0x88   :  { %v47_v15 = vpop.permute.xlu0 %46  }
  0x89   :  { %57 = vst.msk [vmem:[%s118_s1 + $0x7] ss:$8 sm:$0x3] %vm7_vm0, %v47_v15  }

// kernel: geneformer_hf_adapter_forward.1
= control target key start
LH: loop header
LB: loop body
LE: loop exit
PB: predicated region body
PF: predicated region fallthrough
CT: control target
= control target key end

     0   :  { %s6181_s0 = inlined_call_operand.vmem [shape: s32[16,1], index: 0, kind: input, shape index: {}]   ;;  %s6182_s1 = inlined_call_operand.vmem [shape: s32[16,1], index: 1, kind: input, shape index: {}]   ;;  %s6183_s2 = inlined_call_operand.vmem [shape: f32[2,8], index: 2, kind: input, shape index: {}]   ;;  %s6184_s3 = inlined_call_operand.vmem [shape: f32[128,32], index: 3, kind: input, shape index: {}]   ;;  %s6185_s4 = inlined_call_operand.vmem [shape: f32[64,32], index: 4, kind: input, shape index: {}]   ;;  %s6186_s5 = inlined_call_operand.vmem [shape: f32[2,32], index: 5, kind: input, shape index: {}]   ;;  %s6187_s6 = inlined_call_operand.vmem [shape: f32[1,32], index: 6, kind: input, shape index: {}]   ;;  %s6188_s7 = inlined_call_operand.vmem [shape: f32[1,32], index: 7, kind: input, shape index: {}]   ;;  %s6189_s8 = inlined_call_operand.vmem [shape: f32[2,32,96], index: 8, kind: input, shape index: {}]   ;;  %s6190_s9 = inlined_call_operand.vmem [shape: f32[2,1,96], index: 9, kind: input, shape index: {}]   ;;  %s6191_s10 = inlined_call_operand.vmem [shape: f32[2,32,32], index: 10, kind: input, shape index: {}]   ;;  %s6192_s11 = inlined_call_operand.vmem [shape: f32[2,1,32], index: 11, kind: input, shape index: {}]   ;;  %s6193_s12 = inlined_call_operand.vmem [shape: f32[2,1,32], index: 12, kind: input, shape index: {}]   ;;  %s6194_s13 = inlined_call_operand.vmem [shape: f32[2,1,32], index: 13, kind: input, shape index: {}]   ;;  %s6195_s14 = inlined_call_operand.vmem [shape: f32[2,32,64], index: 14, kind: input, shape index: {}]   ;;  %s6196_s15 = inlined_call_operand.vmem [shape: f32[2,1,64], index: 15, kind: input, shape index: {}]   ;;  %s6197_s16 = inlined_call_operand.vmem [shape: f32[2,64,32], index: 16, kind: input, shape index: {}]   ;;  %s6198_s17 = inlined_call_operand.vmem [shape: f32[2,1,32], index: 17, kind: input, shape index: {}]   ;;  %s6199_s18 = inlined_call_operand.vmem [shape: f32[2,1,32], index: 18, kind: input, shape index: {}]   ;;  %s6200_s19 = inlined_call_operand.vmem [shape: f32[2,1,32], index: 19, kind: input, shape index: {}]   ;;  %s6201_s20 = inlined_call_operand.vmem [shape: f32[32,32], index: 20, kind: input, shape index: {}]   ;;  %s6202_s21 = inlined_call_operand.vmem [shape: f32[1,32], index: 21, kind: input, shape index: {}]   ;;  %s6203_s22 = inlined_call_operand.vmem [shape: f32[1,32], index: 22, kind: input, shape index: {}]   ;;  %s6204_s23 = inlined_call_operand.vmem [shape: f32[1,32], index: 23, kind: input, shape index: {}]   ;;  %s6205_s24 = inlined_call_operand.vmem [shape: f32[32,128], index: 24, kind: input, shape index: {}]   ;;  %s6206_s25 = inlined_call_operand.vmem [shape: f32[1,128], index: 25, kind: input, shape index: {}]   ;;  %s6207_s26 = inlined_call_operand.hbm [shape: f32[16,128], index: 26, kind: output, shape index: {}]  }
   0x1   :  { %6240 = sst [smem:[#allocation7_spill]] %s6181_s0 }
   0x2   :  { %6241 = sst [smem:[#allocation8_spill]] %s6182_s1 }
   0x3   :  { %6242 = sst [smem:[#allocation9_spill]] %s6183_s2 }
   0x4   :  { %6243 = sst [smem:[#allocation10_spill]] %s6184_s3 }
   0x5   :  { %6244 = sst [smem:[#allocation11_spill]] %s6185_s4 }
   0x6   :  { %6245 = sst [smem:[#allocation12_spill]] %s6186_s5 }
   0x7   :  { %6246 = sst [smem:[#allocation13_spill]] %s6187_s6 }
   0x8   :  { %6247 = sst [smem:[#allocation14_spill]] %s6188_s7 }
   0x9   :  { %6248 = sst [smem:[#allocation15_spill]] %s6189_s8 }
   0xa   :  { %6249 = sst [smem:[#allocation16_spill]] %s6190_s9 }
   0xb   :  { %6250 = sst [smem:[#allocation17_spill]] %s6191_s10 }
   0xc   :  { %6251 = sst [smem:[#allocation18_spill]] %s6202_s21 }
   0xd   :  { %s6252_s7 = sld [smem:[#allocation8_spill]]  ;;  %s6253_s21 = sld [smem:[#allocation7_spill]]  ;;  %v5264_v2 = vmov 0  }
   0xe   :  { %5150 = vset.pattern.permute.xlu0 %v5264_v2  ;;  %5151 = vset.pattern.permute.xlu1 %v5264_v2  ;;  %s6254_s0 = sld [smem:[#allocation11_spill]] }
  0x13   :  { %v100_v0 = vld [vmem:[%s6252_s7] sm:$0xff]  ;;  %v101_v5 = vld [vmem:[%s6252_s7 + $0x8] sm:$0xff] }
  0x14   :  { %v86_v1 = vld [vmem:[%s6253_s21] sm:$0xff]  ;;  %v131_v4 = vld [vmem:[%s6254_s0 + $0x8] sm:$0xff]  ;;  %103 = vperm.xlu0 %5150, %v100_v0   ;;  %v132_v7 = vld [vmem:[%s6254_s0 + $0x10] sm:$0xff] }
  0x15   :  { %v130_v3 = vld [vmem:[%s6254_s0] sm:$0xff]  ;;  %89 = vperm.xlu1 %5151, %v86_v1   ;;  %v133_v8 = vld [vmem:[%s6254_s0 + $0x18] sm:$0xff]  ;;  %v87_v9 = vld [vmem:[%s6253_s21 + $0x8] sm:$0xff] }
  0x16   :  { %v4984_v6 = vpack.c.bf16 %v131_v4, %v130_v3  ;;  %v4988_v10 = vpack.c.bf16 %v133_v8, %v132_v7  ;;  %v134_v11 = vld [vmem:[%s6254_s0 + $0x20] sm:$0xff]  ;;  %v135_v12 = vld [vmem:[%s6254_s0 + $0x28] sm:$0xff] }
  0x18   :  { %4985 = vmatprep.subr.bf16.mxu0 %v4984_v6 }
  0x19   :  { %31 = vsyncpa [#allocation5], 0  ;;  %4987 = vmatpush3.bf16.msra.mxu0 %v4984_v6  ;;  %106 = vperm.xlu0 %5150, %v101_v5   ;;  %v4992_v13 = vpack.c.bf16 %v135_v12, %v134_v11  ;;  %v136_v14 = vld [vmem:[%s6254_s0 + $0x30] sm:$0xff]  ;;  %v137_v15 = vld [vmem:[%s6254_s0 + $0x38] sm:$0xff]  ;;  %s6255_s6 = sld [smem:[#allocation10_spill]]  ;;  %v84_v20 = vlaneseq  ;;  %vm138_vm0 = vcmask 523264  }
  0x1a   :  { %92 = vperm.xlu1 %5151, %v87_v9   ;;  %4989 = vmatprep.subr.bf16.mxu0 %v4988_v10  ;;  %v4996_v16 = vpack.c.bf16 %v137_v15, %v136_v14  ;;  %v5265_v23 = vmov 0.0   ;;  %v5266_v33 = vmov 1.0   ;;  %s6256_s0 = sld [smem:[#allocation12_spill]]  ;;  %vm304_vm5 = vcmask 261120   ;;  %s6257_s28 = sld [smem:[#allocation15_spill]] }
  0x1b   :  { %v85_v21 = vand.u32 127, %v84_v20  ;;  %s6258_s5 = sld [smem:[#allocation13_spill]]  ;;  %s6259_s27 = sld [smem:[#allocation14_spill]]  ;;  %vm440_vm6 = vcmask 785408   ;;  %vm5267_vm7 = vmmov 0   ;;  %vm450_vm8 = vcmask 64512  }
  0x1c   :  { %s6260_s3 = sld [smem:[#allocation16_spill]]  ;;  %s6234_s8 = smov 96   ;;  %vm794_vm9 = vcmask 130112   ;;  %vm970_vm10 = vcmask 195712   ;;  %vm1146_vm11 = vcmask 261312  }
  0x1d   :  { %4991 = vmatpush3.bf16.msra.mxu0 %v4988_v10  ;;  %s5269_s4 = smov 88   ;;  %s6230_s7 = smov 120  }
  0x1e   :  { %4993 = vmatprep.subr.bf16.mxu0 %v4992_v13  ;;  %s6261_s30 = sld [smem:[#allocation9_spill]]  ;;  %s6216_s21 = smov 64  }
  0x1f   :  { %v114_v17 = vld [vmem:[%s6255_s6] sm:$0xff]  ;;  %v115_v18 = vld [vmem:[%s6255_s6 + $0x8] sm:$0xff]  ;;  %v116_v25 = vld [vmem:[%s6255_s6 + $0x10] sm:$0xff]  ;;  %s6222_s2 = smov 56   ;;  %s6226_s10 = smov 80  }
  0x20   :  { %v5000_v19 = vpack.c.bf16 %v115_v18, %v114_v17  ;;  %v117_v26 = vld [vmem:[%s6255_s6 + $0x18] sm:$0xff]  ;;  %v118_v31 = vld [vmem:[%s6255_s6 + $0x20] sm:$0xff]  ;;  %v119_v32 = vld [vmem:[%s6255_s6 + $0x28] sm:$0xff]  ;;  %s6224_s1 = smov 72   ;;  %s5279_s29 = smov 8  }
  0x21   :  { %4995 = vmatpush3.bf16.msra.mxu0 %v4992_v13  ;;  %v5004_v29 = vpack.c.bf16 %v117_v26, %v116_v25  ;;  %v5008_v34 = vpack.c.bf16 %v119_v32, %v118_v31  ;;  %v120_v35 = vld [vmem:[%s6255_s6 + $0x30] sm:$0xff]  ;;  %v121_v36 = vld [vmem:[%s6255_s6 + $0x38] sm:$0xff]  ;;  %v122_v38 = vld [vmem:[%s6255_s6 + $0x40] sm:$0xff]  ;;  %s6238_s9 = smov 16  }
  0x22   :  { %4997 = vmatprep.subr.bf16.mxu0 %v4996_v16  ;;  %v5012_v37 = vpack.c.bf16 %v121_v36, %v120_v35  ;;  %v123_v39 = vld [vmem:[%s6255_s6 + $0x48] sm:$0xff]  ;;  %v124_v41 = vld [vmem:[%s6255_s6 + $0x50] sm:$0xff]  ;;  %v125_v42 = vld [vmem:[%s6255_s6 + $0x58] sm:$0xff]  ;;  %v527_v36 = vshrl.u32 %v84_v20, 7 }
  0x23   :  { %v5016_v40 = vpack.c.bf16 %v123_v39, %v122_v38  ;;  %v5020_v43 = vpack.c.bf16 %v125_v42, %v124_v41  ;;  %v126_v44 = vld [vmem:[%s6255_s6 + $0x60] sm:$0xff]  ;;  %v127_v45 = vld [vmem:[%s6255_s6 + $0x68] sm:$0xff]  ;;  %v128_v47 = vld [vmem:[%s6255_s6 + $0x70] sm:$0xff] }
  0x24   :  { %v5024_v46 = vpack.c.bf16 %v127_v45, %v126_v44  ;;  %v129_v48 = vld [vmem:[%s6255_s6 + $0x78] sm:$0xff]  ;;  %v4365_v51 = vld [vmem:[%s6256_s0] ss:$0 sm:$0xff]  ;;  %v349_v5 = vld [vmem:[%s6257_s28 + $0x8] sm:$0xff]  ;;  %v5570_v38 = vsub.s32 0, %v527_v36  ;;  %s6218_s0 = smov 48  }
  0x25   :  { %4999 = vmatpush3.bf16.msra.mxu0 %v4996_v16  ;;  %v5028_v49 = vpack.c.bf16 %v129_v48, %v128_v47  ;;  %v348_v4 = vld [vmem:[%s6257_s28] sm:$0xff]  ;;  %v350_v6 = vld [vmem:[%s6257_s28 + $0x10] sm:$0xff]  ;;  %v351_v8 = vld [vmem:[%s6257_s28 + $0x18] sm:$0xff]  ;;  %s6220_s6 = smov 40  }
  0x26   :  { %5001 = vmatprep.subr.bf16.mxu0 %v5000_v19  ;;  %v5032_v7 = vpack.c.bf16 %v349_v5, %v348_v4  ;;  %v5036_v9 = vpack.c.bf16 %v351_v8, %v350_v6  ;;  %v4366_v17 = vld [vmem:[%s6258_s5] ss:$0 sm:$0xff]  ;;  %s6232_s5 = smov 112  }
  0x27   :  { %v443_v35 = vld [vmem:[%s6261_s30] sm:$0x1] }
  0x28   :  { %5033 = vmatprep.subr.bf16.mxu1 %v5032_v7 }
  0x29   :  { %5035 = vmatpush3.bf16.msra.mxu1 %v5032_v7 }
  0x2a   :  { %5037 = vmatprep.subr.bf16.mxu1 %v5036_v9 }
  0x2d   :  { %5039 = vmatpush3.bf16.msra.mxu1 %v5036_v9 }
  0x2e   :  { %4709 = vmatprep.subr.mxu1 %v5265_v23 }
  0x93   :  { %v104_v22 = vpop.permute.xlu0 %103 }
  0x94   :  { %vm108_vm1 = vcmp.eq.s32.totalorder %v85_v21, %v104_v22  ;;  %v90_v28 = vpop.permute.xlu1 %89 }
  0x95   :  { %v4359_v24 = vsel %vm108_vm1, 1.0, %v5265_v23  ;;  %vm94_vm3 = vcmp.eq.s32.totalorder %v85_v21, %v90_v28  ;;  %v4368_v28 = vld [vmem:[%s6260_s3] ss:$0 sm:$0xff] }
  0x96   :  { %4660 = vmatprep.mubr.msk.f32.mxu0 %vm138_vm0, %v4359_v24 }
  0x98   :  { %v107_v27 = vpop.permute.xlu0 %106 }
  0x99   :  { %vm109_vm2 = vcmp.eq.s32.totalorder %v85_v21, %v107_v27  ;;  %v93_v50 = vpop.permute.xlu1 %92 }
  0x9a   :  { %v4360_v30 = vsel %vm109_vm2, 1.0, %v5265_v23  ;;  %vm95_vm4 = vcmp.eq.s32.totalorder %v85_v21, %v93_v50 }
  0x9b   :  { %4661 = vmatmul.mubr.msk.f32.vlgmr.msra.gmra.mrb[0].mxu0 %vm138_vm0, %v4360_v30 }
  0x9c   :  { %5003 = vmatpush3.bf16.msra.mxu0 %v5000_v19  ;;  %4695 = vmatprep.mubr.msk.f32.mxu0 %vm94_vm3, %v5266_v33  ;;  %v4367_v19 = vld [vmem:[%s6259_s27] ss:$0 sm:$0xff]  ;;  %s6228_s27 = smov 104  }
  0x9d   :  { %5005 = vmatprep.subr.bf16.mxu0 %v5004_v29 }
  0xa0   :  { %5007 = vmatpush3.bf16.msra.mxu0 %v5004_v29 }
  0xa1   :  { %5009 = vmatprep.subr.bf16.mxu0 %v5008_v34 }
  0xa4   :  { %5011 = vmatpush3.bf16.msra.mxu0 %v5008_v34 }
  0xa5   :  { %5013 = vmatprep.subr.bf16.mxu0 %v5012_v37 }
  0xa8   :  { %5015 = vmatpush3.bf16.msra.mxu0 %v5012_v37  ;;  %v444_v37 = vsub.f32 1.0, %v443_v35 }
  0xa9   :  { %5017 = vmatprep.subr.bf16.mxu0 %v5016_v40 }
  0xaa   :  { %v445_v39 = vmul.f32 -1e+09, %v444_v37 }
  0xac   :  { %5019 = vmatpush3.bf16.msra.mxu0 %v5016_v40  ;;  %v5573_v40 = vrot.slane %v445_v39, %v5570_v38 }
  0xad   :  { %5021 = vmatprep.subr.bf16.mxu0 %v5020_v43 }
  0xb0   :  { %5023 = vmatpush3.bf16.msra.mxu0 %v5020_v43 }
  0xb1   :  { %5025 = vmatprep.subr.bf16.mxu0 %v5024_v46 }
  0xb4   :  { %5027 = vmatpush3.bf16.msra.mxu0 %v5024_v46 }
  0xb5   :  { %5029 = vmatprep.subr.bf16.mxu0 %v5028_v49 }
  0xb8   :  { %5031 = vmatpush3.bf16.msra.mxu0 %v5028_v49 }
  0xb9   :  { %4759 = vmatprep.subr.mxu0 %v5265_v23 }
  0xbb   :  { %4696 = vmatmul.mubr.msk.f32.vlgmr.msra.gmra.mrb[0].mxu0 %vm95_vm4, %v5266_v33 }
  0xbc   :  { %4761 = vmatprep.mubr.msk.f32.mxu0 %vm5267_vm7, %v5265_v23 }
 0x18e   :  { %v4697_v52 = vpop.f32.mrb[0].mxu0 }
 0x18f   :  { %v301_v53 = vadd.f32 %v4697_v52, %v4365_v51  ;;  %v286_v54 = vpop.f32.mrb[1].mxu0 }
 0x190   :  { %v300_v55 = vadd.f32 %v4365_v51, %v286_v54 }
 0x191   :  { %v308_v56 = vsel %vm304_vm5, %v301_v53, 0.0 }
 0x192   :  { %309 = vadd.xlane.f32.xlu1 %v308_v56  ;;  %v305_v57 = vsel %vm304_vm5, %v300_v55, 0.0 }
 0x193   :  { %306 = vadd.xlane.f32.xlu0 %v305_v57 }
 0x21f   :  { %v310_v58 = vpop.xlane.xlu1 %309 }
 0x220   :  { %v313_v59 = vmul.f32 0.03125, %v310_v58  ;;  %v307_v60 = vpop.xlane.xlu0 %306 }
 0x221   :  { %v312_v61 = vmul.f32 0.03125, %v307_v60 }
 0x222   :  { %v315_v62 = vsub.f32 %v301_v53, %v313_v59 }
 0x223   :  { %v314_v63 = vsub.f32 %v300_v55, %v312_v61 }
 0x224   :  { %v317_v2 = vmul.f32 %v315_v62, %v315_v62 }
 0x225   :  { %v316_v0 = vmul.f32 %v314_v63, %v314_v63 }
 0x226   :  { %v321_v3 = vsel %vm304_vm5, %v317_v2, 0.0 }
 0x227   :  { %v318_v1 = vsel %vm304_vm5, %v316_v0, 0.0 }
 0x228   :  { %319 = vadd.xlane.f32.xlu0 %v318_v1 }
 0x22c   :  { %322 = vadd.xlane.f32.xlu0 %v321_v3 }
 0x2b5   :  { %v320_v10 = vpop.xlane.xlu0 %319 }
 0x2b6   :  { %v324_v11 = vmul.f32 0.03125, %v320_v10 }
 0x2b8   :  { %v326_v12 = vadd.f32 1e-12, %v324_v11 }
 0x2b9   :  { %v323_v13 = vpop.xlane.xlu0 %322 }
 0x2ba   :  { %5152 = vrsqrt.f32 %v326_v12  ;;  %v325_v14 = vmul.f32 0.03125, %v323_v13 }
 0x2bc   :  { %v327_v15 = vadd.f32 1e-12, %v325_v14 }
 0x2be   :  { %5154 = vrsqrt.f32 %v327_v15 }
 0x2c4   :  { %v5153_v16 = vpop.eup %5152 }
 0x2c5   :  { %v330_v18 = vmul.f32 %v5153_v16, %v314_v63 }
 0x2c7   :  { %v338_v21 = vmul.f32 %v4366_v17, %v330_v18 }
 0x2c8   :  { %v5155_v22 = vpop.eup %5154 }
 0x2c9   :  { %v331_v24 = vmul.f32 %v5155_v22, %v315_v62  ;;  %v5535_v25 = vadd.f32 %v4367_v19, %v338_v21 }
 0x2cb   :  { %v339_v26 = vmul.f32 %v4366_v17, %v331_v24  ;;  %4706 = vmatprep.mubr.msk.f32.mxu1 %vm304_vm5, %v5535_v25 }
 0x2cd   :  { %v5539_v27 = vadd.f32 %v4367_v19, %v339_v26 }
 0x2cf   :  { %4707 = vmatmul.mubr.msk.f32.vlgmr.msra.gmra.mrb[0].mxu1 %vm304_vm5, %v5539_v27 }
 0x2d0   :  { %4711 = vmatprep.mubr.msk.f32.mxu1 %vm5267_vm7, %v5265_v23 }
 0x3a2   :  { %v4708_v29 = vpop.f32.mrb[0].mxu1 }
 0x3a3   :  { %v437_v30 = vadd.f32 %v4708_v29, %v4368_v28  ;;  %v431_v31 = vpop.f32.mrb[1].mxu1 }
 0x3a4   :  { %v432_v32 = vadd.f32 %v4368_v28, %v431_v31 }
 0x3a5   :  { %442 = vst.msk [vmem:[#allocation2 + $0x8] sm:$0xff] %vm440_vm6, %v437_v30 }
 0x3a6   :  { %441 = vst.msk [vmem:[#allocation2] sm:$0xff] %vm440_vm6, %v432_v32 }
 0x3ad   :  { %v5552_v33 = vld [vmem:[#allocation2] sm:$0xff] }
 0x3ae   :  { %448 = vrot.lane.b32.xlu1 %v5552_v33, %s6234_s8 }
 0x3b2   :  { %624 = vrot.lane.b32.xlu1 %v5552_v33, %s5269_s4 }
 0x3b6   :  { %622 = vrot.lane.b32.xlu1 %v5552_v33, %s6230_s7 }
 0x420   :  { %v449_v34 = vpop.permute.xlu1 %448 }
 0x421   :  { %4710 = vmatpush3.xpose.msk.msra.mxu1 %vm450_vm8, %v449_v34 }
 0x422   :  { %4714 = vmatprep.subr.mxu1 %v5265_v23 }
 0x424   :  { %4712 = vmatmul.mubr.msk.f32.vlgmr.msra.gmra.mrb[2].mxu1 %vm450_vm8, %v5552_v33  ;;  %v625_v54 = vpop.permute.xlu1 %624 }
 0x425   :  { %4716 = vmatprep.mubr.msk.f32.mxu1 %vm5267_vm7, %v5265_v23 }
 0x428   :  { %v623_v56 = vpop.permute.xlu1 %622 }
 0x4f7   :  { %v521_v41 = vpop.f32.mrb[2].mxu1 }
 0x4f8   :  { %v525_v42 = vmul.f32 0.35355338, %v521_v41  ;;  %v4713_v43 = vpop.f32.mrb[3].mxu1 }
 0x4fa   :  { %v530_v44 = vadd.f32 %v5573_v40, %v525_v42 }
 0x4fc   :  { %v531_v45 = vsel %vm450_vm8, %v530_v44, -inf }
 0x4fd   :  { %532 = vmax.xlane.f32.xlu0 %v531_v45  ;;  %v5634_v45 = vld [vmem:[#allocation2 + $0x8] sm:$0xff] }
 0x58a   :  { %v533_v46 = vpop.xlane.xlu0 %532 }
 0x58b   :  { %v534_v47 = vsub.f32 %v530_v44, %v533_v46 }
 0x58d   :  { %v535_v48 = vmul.f32 1.442695, %v534_v47 }
 0x58f   :  { %5156 = vpow2.f32 %v535_v48 }
 0x599   :  { %v5157_v20 = vpop.eup %5156 }
 0x59a   :  { %v537_v49 = vsel %vm450_vm8, %v5157_v20, 0.0 }
 0x59b   :  { %538 = vadd.xlane.f32.xlu0 %v537_v49 }
 0x5b1   :  { %543 = vrot.lane.b32.xlu0 %v5552_v33, %s6216_s21 }
 0x628   :  { %v539_v50 = vpop.xlane.xlu0 %538 }
 0x629   :  { %v540_v51 = vmax.f32 %v539_v50, 1e-30 }
 0x62b   :  { %5158 = vrcp.f32 %v540_v51 }
 0x62c   :  { %v544_v52 = vpop.permute.xlu0 %543 }
 0x62d   :  { %4715 = vmatpush3.msra.mxu1 %v544_v52 }
 0x62e   :  { %4719 = vmatprep.subr.mxu1 %v5265_v23 }
 0x635   :  { %v5159_v53 = vpop.eup %5158 }
 0x636   :  { %v542_v55 = vmul.f32 %v5159_v53, %v5157_v20 }
 0x638   :  { %4717 = vmatmul.mubr.msk.f32.vlgmr.msra.gmra.mrb[4].mxu1 %vm450_vm8, %v542_v55 }
 0x639   :  { %4720 = vmatpush3.xpose.msk.msra.mxu1 %vm450_vm8, %v625_v54  ;;  %4721 = vmatprep.mubr.msk.f32.mxu1 %vm5267_vm7, %v5265_v23 }
 0x63a   :  { %4724 = vmatprep.subr.mxu1 %v5265_v23 }
 0x63c   :  { %4722 = vmatmul.mubr.msk.f32.vlgmr.msra.gmra.mrb[6].mxu1 %vm450_vm8, %v623_v56 }
 0x63d   :  { %4726 = vmatprep.mubr.msk.f32.mxu1 %vm5267_vm7, %v5265_v23 }
 0x70b   :  { %v615_v57 = vpop.f32.mrb[4].mxu1 }
 0x70c   :  { %619 = vst.msk [vmem:[#allocation3] sm:$0xff] %vm450_vm8, %v615_v57  ;;  %v4718_v58 = vpop.f32.mrb[5].mxu1 }
 0x70f   :  { %v696_v59 = vpop.f32.mrb[6].mxu1 }
 0x710   :  { %v700_v60 = vmul.f32 0.35355338, %v696_v59  ;;  %v4723_v61 = vpop.f32.mrb[7].mxu1 }
 0x712   :  { %v701_v62 = vadd.f32 %v700_v60, %v5573_v40  ;;  %v1148_v60 = vld [vmem:[%s6261_s30 + $0x1] sm:$0x1] }
 0x713   :  { %v1149_v61 = vsub.f32 1.0, %v1148_v60 }
 0x714   :  { %v702_v63 = vsel %vm450_vm8, %v701_v62, -inf }
 0x715   :  { %703 = vmax.xlane.f32.xlu1 %v702_v63 }
 0x726   :  { %714 = vrot.lane.b32.xlu1 %v5552_v33, %s6222_s2 }
 0x72a   :  { %798 = vrot.lane.b32.xlu1 %v5552_v33, %s6232_s5 }
 0x7a2   :  { %v704_v0 = vpop.xlane.xlu1 %703 }
 0x7a3   :  { %v705_v1 = vsub.f32 %v701_v62, %v704_v0  ;;  %v1150_v62 = vmul.f32 -1e+09, %v1149_v61 }
 0x7a5   :  { %v706_v2 = vmul.f32 1.442695, %v705_v1  ;;  %v1233_v63 = vrot.slane %v1150_v62, %v5570_v38 }
 0x7a6   :  { %v715_v3 = vpop.permute.xlu1 %714 }
 0x7a7   :  { %5160 = vpow2.f32 %v706_v2  ;;  %4725 = vmatpush3.msra.mxu1 %v715_v3 }
 0x7a8   :  { %4729 = vmatprep.subr.mxu1 %v5265_v23 }
 0x7aa   :  { %v799_v11 = vpop.permute.xlu1 %798 }
 0x7b1   :  { %v5161_v4 = vpop.eup %5160 }
 0x7b2   :  { %v708_v5 = vsel %vm450_vm8, %v5161_v4, 0.0 }
 0x7b3   :  { %709 = vadd.xlane.f32.xlu0 %v708_v5 }
 0x7c9   :  { %800 = vrot.lane.b32.xlu0 %v5552_v33, %s6226_s10 }
 0x840   :  { %v710_v6 = vpop.xlane.xlu0 %709 }
 0x841   :  { %v711_v7 = vmax.f32 %v710_v6, 1e-30 }
 0x843   :  { %5162 = vrcp.f32 %v711_v7 }
 0x844   :  { %v801_v10 = vpop.permute.xlu0 %800 }
 0x84d   :  { %v5163_v8 = vpop.eup %5162 }
 0x84e   :  { %v713_v9 = vmul.f32 %v5163_v8, %v5161_v4 }
 0x850   :  { %4727 = vmatmul.mubr.msk.f32.vlgmr.msra.gmra.mrb[8].mxu1 %vm450_vm8, %v713_v9 }
 0x851   :  { %4730 = vmatpush3.xpose.msk.msra.mxu1 %vm450_vm8, %v801_v10  ;;  %4731 = vmatprep.mubr.msk.f32.mxu1 %vm5267_vm7, %v5265_v23 }
 0x852   :  { %4734 = vmatprep.subr.mxu1 %v5265_v23 }
 0x854   :  { %4732 = vmatmul.mubr.msk.f32.vlgmr.msra.gmra.mrb[10].mxu1 %vm450_vm8, %v799_v11 }
 0x855   :  { %4736 = vmatprep.mubr.msk.f32.mxu1 %vm5267_vm7, %v5265_v23 }
 0x923   :  { %v5608_v12 = vpop.f32.mrb[8].mxu1 }
 0x924   :  { %v4728_v13 = vpop.f32.mrb[9].mxu1 }
 0x927   :  { %v872_v14 = vpop.f32.mrb[10].mxu1 }
 0x928   :  { %v876_v15 = vmul.f32 0.35355338, %v872_v14  ;;  %v4733_v16 = vpop.f32.mrb[11].mxu1 }
 0x92a   :  { %v877_v17 = vadd.f32 %v876_v15, %v5573_v40 }
 0x92c   :  { %v878_v18 = vsel %vm450_vm8, %v877_v17, -inf }
 0x92d   :  { %879 = vmax.xlane.f32.xlu1 %v878_v18 }
 0x93e   :  { %976 = vrot.lane.b32.xlu1 %v5552_v33, %s6224_s1 }
 0x942   :  { %974 = vrot.lane.b32.xlu1 %v5552_v33, %s6228_s27 }
 0x9ba   :  { %v880_v19 = vpop.xlane.xlu1 %879 }
 0x9bb   :  { %v881_v21 = vsub.f32 %v877_v17, %v880_v19 }
 0x9bd   :  { %v882_v22 = vmul.f32 1.442695, %v881_v21 }
 0x9be   :  { %v977_v32 = vpop.permute.xlu1 %976 }
 0x9bf   :  { %5164 = vpow2.f32 %v882_v22 }
 0x9c2   :  { %v975_v35 = vpop.permute.xlu1 %974 }
 0x9c9   :  { %v5165_v24 = vpop.eup %5164 }
 0x9ca   :  { %v884_v26 = vsel %vm450_vm8, %v5165_v24, 0.0 }
 0x9cb   :  { %885 = vadd.xlane.f32.xlu0 %v884_v26 }
 0x9e1   :  { %890 = vrot.lane.b32.xlu0 %v5552_v33, %s6218_s0 }
 0xa58   :  { %v886_v28 = vpop.xlane.xlu0 %885 }
 0xa59   :  { %v887_v29 = vmax.f32 %v886_v28, 1e-30 }
 0xa5b   :  { %5166 = vrcp.f32 %v887_v29 }
 0xa5c   :  { %v891_v30 = vpop.permute.xlu0 %890 }
 0xa5d   :  { %4735 = vmatpush3.msra.mxu1 %v891_v30 }
 0xa5e   :  { %4739 = vmatprep.subr.mxu1 %v5265_v23 }
 0xa65   :  { %v5167_v31 = vpop.eup %5166 }
 0xa66   :  { %v889_v34 = vmul.f32 %v5167_v31, %v5165_v24 }
 0xa68   :  { %4737 = vmatmul.mubr.msk.f32.vlgmr.msra.gmra.mrb[12].mxu1 %vm450_vm8, %v889_v34 }
 0xa69   :  { %4740 = vmatpush3.xpose.msk.msra.mxu1 %vm450_vm8, %v977_v32  ;;  %4741 = vmatprep.mubr.msk.f32.mxu1 %vm5267_vm7, %v5265_v23 }
 0xa6a   :  { %4744 = vmatprep.subr.mxu1 %v5265_v23 }
 0xa6c   :  { %4742 = vmatmul.mubr.msk.f32.vlgmr.msra.gmra.mrb[14].mxu1 %vm450_vm8, %v975_v35 }
 0xa6d   :  { %4746 = vmatprep.mubr.msk.f32.mxu1 %vm5267_vm7, %v5265_v23 }
 0xb3b   :  { %v5628_v36 = vpop.f32.mrb[12].mxu1 }
 0xb3c   :  { %v4738_v37 = vpop.f32.mrb[13].mxu1 }
 0xb3f   :  { %v1048_v39 = vpop.f32.mrb[14].mxu1 }
 0xb40   :  { %v1052_v41 = vmul.f32 0.35355338, %v1048_v39  ;;  %v4743_v42 = vpop.f32.mrb[15].mxu1 }
 0xb42   :  { %v1053_v43 = vadd.f32 %v1052_v41, %v5573_v40 }
 0xb44   :  { %v1054_v44 = vsel %vm450_vm8, %v1053_v43, -inf }
 0xb45   :  { %1055 = vmax.xlane.f32.xlu0 %v1054_v44 }
 0xb5b   :  { %1066 = vrot.lane.b32.xlu0 %v5552_v33, %s6220_s6 }
 0xb5f   :  { %1328 = vrot.lane.b32.xlu0 %v5634_v45, %s5269_s4 }
 0xb63   :  { %1503 = vrot.lane.b32.xlu0 %v5634_v45, %s6226_s10  ;;  %s6268_s10 = smov 72  }
 0xb67   :  { %1678 = vrot.lane.b32.xlu0 %v5634_v45, %s6224_s1  ;;  %s6270_s1 = smov 64  }
 0xbd2   :  { %v1056_v46 = vpop.xlane.xlu0 %1055 }
 0xbd3   :  { %v1057_v40 = vsub.f32 %v1053_v43, %v1056_v46 }
 0xbd5   :  { %v1058_v47 = vmul.f32 1.442695, %v1057_v40 }
 0xbd6   :  { %v1067_v48 = vpop.permute.xlu0 %1066 }
 0xbd7   :  { %5168 = vpow2.f32 %v1058_v47  ;;  %4745 = vmatpush3.msra.mxu1 %v1067_v48 }
 0xbd8   :  { %4749 = vmatprep.subr.mxu1 %v5265_v23 }
 0xbda   :  { %v1329_v33 = vpop.permute.xlu0 %1328 }
 0xbdb   :  { %4760 = vmatpush3.xpose.msk.msra.mxu0 %vm450_vm8, %v1329_v33 }
 0xbdc   :  { %4769 = vmatprep.subr.mxu0 %v5265_v23 }
 0xbde   :  { %v1504_v53 = vpop.permute.xlu0 %1503 }
 0xbe1   :  { %v5169_v20 = vpop.eup %5168 }
 0xbe2   :  { %v1060_v49 = vsel %vm450_vm8, %v5169_v20, 0.0  ;;  %v1679_v57 = vpop.permute.xlu0 %1678 }
 0xbe3   :  { %1061 = vadd.xlane.f32.xlu1 %v1060_v49 }
 0xbf4   :  { %1153 = vrot.lane.b32.xlu1 %v5634_v45, %s6234_s8  ;;  %s6264_s8 = smov 112  }
 0xbf8   :  { %1326 = vrot.lane.b32.xlu1 %v5634_v45, %s6230_s7  ;;  %s6266_s7 = smov 104  }
 0xbfc   :  { %1501 = vrot.lane.b32.xlu1 %v5634_v45, %s6232_s5  ;;  %s6267_s5 = smov 80  }
 0xc00   :  { %1676 = vrot.lane.b32.xlu1 %v5634_v45, %s6228_s27  ;;  %s6271_s27 = smov 40  }
 0xc70   :  { %v1062_v50 = vpop.xlane.xlu1 %1061 }
 0xc71   :  { %v1063_v51 = vmax.f32 %v1062_v50, 1e-30 }
 0xc73   :  { %5170 = vrcp.f32 %v1063_v51 }
 0xc74   :  { %v1154_v52 = vpop.permute.xlu1 %1153 }
 0xc78   :  { %v1327_v54 = vpop.permute.xlu1 %1326 }
 0xc79   :  { %4762 = vmatmul.mubr.msk.f32.vlgmr.msra.gmra.mrb[2].mxu0 %vm450_vm8, %v1327_v54 }
 0xc7a   :  { %4770 = vmatpush3.xpose.msk.msra.mxu0 %vm450_vm8, %v1504_v53  ;;  %4771 = vmatprep.mubr.msk.f32.mxu0 %vm5267_vm7, %v5265_v23 }
 0xc7b   :  { %4779 = vmatprep.subr.mxu0 %v5265_v23 }
 0xc7c   :  { %v1502_v55 = vpop.permute.xlu1 %1501 }
 0xc7d   :  { %v5171_v56 = vpop.eup %5170  ;;  %4772 = vmatmul.mubr.msk.f32.vlgmr.msra.gmra.mrb[4].mxu0 %vm450_vm8, %v1502_v55 }
 0xc7e   :  { %4780 = vmatpush3.xpose.msk.msra.mxu0 %vm450_vm8, %v1679_v57  ;;  %v1065_v58 = vmul.f32 %v5171_v56, %v5169_v20  ;;  %4781 = vmatprep.mubr.msk.f32.mxu0 %vm5267_vm7, %v5265_v23 }
 0xc80   :  { %v1677_v59 = vpop.permute.xlu1 %1676  ;;  %4747 = vmatmul.mubr.msk.f32.vlgmr.msra.gmra.mrb[16].mxu1 %vm450_vm8, %v1065_v58 }
 0xc81   :  { %4750 = vmatpush3.xpose.msk.msra.mxu1 %vm450_vm8, %v1154_v52  ;;  %4782 = vmatmul.mubr.msk.f32.vlgmr.msra.gmra.mrb[6].mxu0 %vm450_vm8, %v1677_v59 }
 0xc82   :  { %4751 = vmatprep.mubr.msk.f32.mxu1 %vm5267_vm7, %v5265_v23  ;;  %4754 = vmatprep.subr.mxu1 %v5265_v23 }
 0xc84   :  { %4752 = vmatmul.mubr.msk.f32.vlgmr.msra.gmra.mrb[18].mxu1 %vm450_vm8, %v5634_v45 }
 0xc85   :  { %4756 = vmatprep.mubr.msk.f32.mxu1 %vm5267_vm7, %v5265_v23 }
 0xd4c   :  { %v1400_v0 = vpop.f32.mrb[2].mxu0 }
 0xd4d   :  { %v1404_v1 = vmul.f32 0.35355338, %v1400_v0  ;;  %v4763_v2 = vpop.f32.mrb[3].mxu0 }
 0xd4f   :  { %v1405_v3 = vadd.f32 %v1404_v1, %v1233_v63 }
 0xd50   :  { %v1575_v4 = vpop.f32.mrb[4].mxu0 }
 0xd51   :  { %v4773_v5 = vpop.f32.mrb[5].mxu0  ;;  %v1406_v6 = vsel %vm450_vm8, %v1405_v3, -inf  ;;  %v1579_v13 = vmul.f32 0.35355338, %v1575_v4 }
 0xd52   :  { %1407 = vmax.xlane.f32.xlu1 %v1406_v6 }
 0xd53   :  { %v1138_v7 = vpop.f32.mrb[16].mxu1  ;;  %v1580_v19 = vadd.f32 %v1579_v13, %v1233_v63 }
 0xd54   :  { %v4748_v8 = vpop.f32.mrb[17].mxu1  ;;  %v1750_v9 = vpop.f32.mrb[6].mxu0 }
 0xd55   :  { %v4783_v10 = vpop.f32.mrb[7].mxu0  ;;  %v1754_v17 = vmul.f32 0.35355338, %v1750_v9  ;;  %v1581_v21 = vsel %vm450_vm8, %v1580_v19, -inf }
 0xd57   :  { %v1225_v11 = vpop.f32.mrb[18].mxu1  ;;  %v1755_v22 = vadd.f32 %v1754_v17, %v1233_v63 }
 0xd58   :  { %v1229_v14 = vmul.f32 0.35355338, %v1225_v11  ;;  %v4753_v15 = vpop.f32.mrb[19].mxu1 }
 0xd59   :  { %v1756_v24 = vsel %vm450_vm8, %v1755_v22, -inf }
 0xd5a   :  { %v1234_v16 = vadd.f32 %v1233_v63, %v1229_v14 }
 0xd5c   :  { %v1235_v18 = vsel %vm450_vm8, %v1234_v16, -inf }
 0xd5d   :  { %1236 = vmax.xlane.f32.xlu0 %v1235_v18 }
 0xd61   :  { %1582 = vmax.xlane.f32.xlu0 %v1581_v21 }
 0xd65   :  { %1757 = vmax.xlane.f32.xlu0 %v1756_v24 }
 0xddf   :  { %v1408_v26 = vpop.xlane.xlu1 %1407 }
 0xde0   :  { %v1409_v28 = vsub.f32 %v1405_v3, %v1408_v26 }
 0xde2   :  { %v1410_v29 = vmul.f32 1.442695, %v1409_v28 }
 0xde4   :  { %5172 = vpow2.f32 %v1410_v29  ;;  %v4395_v29 = vld [vmem:[%s6192_s11] ss:$0 sm:$0xff] }
 0xdea   :  { %v1237_v30 = vpop.xlane.xlu0 %1236 }
 0xdeb   :  { %v1238_v47 = vsub.f32 %v1234_v16, %v1237_v30 }
 0xded   :  { %v1239_v48 = vmul.f32 1.442695, %v1238_v47 }
 0xdee   :  { %v5681_v31 = vpop.eup %5172  ;;  %v1583_v32 = vpop.xlane.xlu0 %1582 }
 0xdef   :  { %v1584_v34 = vsub.f32 %v1580_v19, %v1583_v32  ;;  %v1412_v35 = vsel %vm450_vm8, %v5681_v31, 0.0 }
 0xdf0   :  { %1413 = vadd.xlane.f32.xlu0 %v1412_v35 }
 0xdf1   :  { %v1585_v37 = vmul.f32 1.442695, %v1584_v34 }
 0xdf2   :  { %v1758_v39 = vpop.xlane.xlu0 %1757 }
 0xdf3   :  { %5174 = vpow2.f32 %v1585_v37  ;;  %v1759_v41 = vsub.f32 %v1755_v22, %v1758_v39 }
 0xdf5   :  { %v1760_v42 = vmul.f32 1.442695, %v1759_v41 }
 0xdf7   :  { %5176 = vpow2.f32 %v1760_v42 }
 0xdf8   :  { %5178 = vpow2.f32 %v1239_v48 }
 0xdfd   :  { %v5175_v43 = vpop.eup %5174 }
 0xdfe   :  { %v1587_v44 = vsel %vm450_vm8, %v5175_v43, 0.0 }
 0xdff   :  { %1588 = vadd.xlane.f32.xlu1 %v1587_v44 }
 0xe01   :  { %v5686_v46 = vpop.eup %5176 }
 0xe02   :  { %v1762_v40 = vsel %vm450_vm8, %v5686_v46, 0.0  ;;  %v5179_v33 = vpop.eup %5178 }
 0xe03   :  { %1763 = vadd.xlane.f32.xlu0 %v1762_v40  ;;  %v1241_v20 = vsel %vm450_vm8, %v5179_v33, 0.0 }
 0xe10   :  { %1247 = vrot.lane.b32.xlu1 %v5634_v45, %s6216_s21  ;;  %s6236_s21 = smov 24  }
 0xe19   :  { %1418 = vrot.lane.b32.xlu0 %v5634_v45, %s6222_s2  ;;  %s6262_s2 = sld [smem:[#allocation17_spill]] }
 0xe1d   :  { %791 = vrot.lane.b32.xlu0 %v5608_v12, %s5279_s29 }
 0xe1f   :  { %v1851_v6 = vld [vmem:[%s6262_s2] sm:$0xff]  ;;  %v1853_v10 = vld [vmem:[%s6262_s2 + $0x10] sm:$0xff]  ;;  %v1854_v11 = vld [vmem:[%s6262_s2 + $0x18] sm:$0xff] }
 0xe20   :  { %v5044_v14 = vpack.c.bf16 %v1854_v11, %v1853_v10 }
 0xe34   :  { %1242 = vadd.xlane.f32.xlu1 %v1241_v20 }
 0xe45   :  { %1593 = vrot.lane.b32.xlu1 %v5634_v45, %s6218_s0  ;;  %s6272_s0 = smov 48  }
 0xe49   :  { %1768 = vrot.lane.b32.xlu1 %v5634_v45, %s6220_s6  ;;  %s6263_s6 = smov 96  }
 0xe4d   :  { %967 = vrot.lane.b32.xlu1 %v5628_v36, %s6238_s9 }
 0xe51   :  { %1143 = vrot.lane.b32.xlu1 %v1138_v7, %s6236_s21  ;;  %v1852_v7 = vld [vmem:[%s6262_s2 + $0x8] sm:$0xff] }
 0xe52   :  { %v5040_v8 = vpack.c.bf16 %v1852_v7, %v1851_v6 }
 0xe54   :  { %5041 = vmatprep.subr.bf16.mxu0 %v5040_v8 }
 0xe55   :  { %5043 = vmatpush3.bf16.msra.mxu0 %v5040_v8 }
 0xe56   :  { %5045 = vmatprep.subr.bf16.mxu0 %v5044_v14 }
 0xe59   :  { %5047 = vmatpush3.bf16.msra.mxu0 %v5044_v14  ;;  %v2090_v14 = vld [vmem:[%s6197_s16 + $0x38] sm:$0xff] }
 0xe7d   :  { %v1414_v12 = vpop.xlane.xlu0 %1413 }
 0xe7e   :  { %v1415_v54 = vmax.f32 %v1414_v12, 1e-30  ;;  %v1990_v12 = vld [vmem:[%s6195_s14 + $0x8] sm:$0xff] }
 0xe8c   :  { %v1589_v49 = vpop.xlane.xlu1 %1588 }
 0xe8d   :  { %v1590_v56 = vmax.f32 %v1589_v49, 1e-30 }
 0xe90   :  { %v1248_v50 = vpop.permute.xlu1 %1247  ;;  %v1764_v51 = vpop.xlane.xlu0 %1763 }
 0xe91   :  { %4755 = vmatpush3.msra.mxu1 %v1248_v50  ;;  %v1765_v58 = vmax.f32 %v1764_v51, 1e-30  ;;  %v1991_v50 = vld [vmem:[%s6195_s14 + $0x10] sm:$0xff]  ;;  %v1992_v51 = vld [vmem:[%s6195_s14 + $0x18] sm:$0xff] }
 0xe92   :  { %4764 = vmatprep.subr.mxu1 %v5265_v23 }
 0xe94   :  { %v1419_v52 = vpop.permute.xlu0 %1418 }
 0xe98   :  { %v792_v53 = vpop.permute.xlu0 %791 }
 0xe99   :  { %795 = vst.msk [vmem:[#allocation3] sm:$0xff] %vm794_vm9, %v792_v53  ;;  %v2083_v53 = vld [vmem:[%s6197_s16] sm:$0xff] }
 0xec1   :  { %v1243_v45 = vpop.xlane.xlu1 %1242 }
 0xec2   :  { %v1244_v55 = vmax.f32 %v1243_v45, 1e-30  ;;  %v2084_v45 = vld [vmem:[%s6197_s16 + $0x8] sm:$0xff] }
 0xec4   :  { %5180 = vrcp.f32 %v1244_v55  ;;  %v5056_v55 = vpack.c.bf16 %v2084_v45, %v2083_v53 }
 0xec5   :  { %v1594_v36 = vpop.permute.xlu1 %1593  ;;  %5182 = vrcp.f32 %v1415_v54  ;;  %v2085_v54 = vld [vmem:[%s6197_s16 + $0x10] sm:$0xff] }
 0xec6   :  { %5184 = vrcp.f32 %v1590_v56  ;;  %5057 = vmatprep.subr.bf16.mxu0 %v5056_v55 }
 0xec7   :  { %5186 = vrcp.f32 %v1765_v58  ;;  %v2088_v58 = vld [vmem:[%s6197_s16 + $0x28] sm:$0xff] }
 0xec9   :  { %v1769_v57 = vpop.permute.xlu1 %1768 }
 0xecd   :  { %v968_v59 = vpop.permute.xlu1 %967 }
 0xece   :  { %v5181_v60 = vpop.eup %5180  ;;  %971 = vst.msk [vmem:[#allocation3] sm:$0xff] %vm970_vm10, %v968_v59 }
 0xecf   :  { %v1246_v61 = vmul.f32 %v5181_v60, %v5179_v33  ;;  %v5183_v62 = vpop.eup %5182 }
 0xed0   :  { %v1417_v0 = vmul.f32 %v5183_v62, %v5681_v31  ;;  %v5185_v1 = vpop.eup %5184 }
 0xed1   :  { %4757 = vmatmul.mubr.msk.f32.vlgmr.msra.gmra.mrb[20].mxu1 %vm450_vm8, %v1246_v61  ;;  %v1144_v63 = vpop.permute.xlu1 %1143  ;;  %v1592_v2 = vmul.f32 %v5185_v1, %v5175_v43  ;;  %v5187_v3 = vpop.eup %5186 }
 0xed2   :  { %1147 = vst.msk [vmem:[#allocation3] sm:$0xff] %vm1146_vm11, %v1144_v63  ;;  %4765 = vmatpush3.msra.mxu1 %v1419_v52  ;;  %4766 = vmatprep.mubr.msk.f32.mxu1 %vm5267_vm7, %v5265_v23  ;;  %v1767_v5 = vmul.f32 %v5187_v3, %v5686_v46  ;;  %v5052_v52 = vpack.c.bf16 %v1992_v51, %v1991_v50  ;;  %v4398_v3 = vld [vmem:[%s6193_s12] ss:$0 sm:$0xff] }
 0xed3   :  { %4774 = vmatprep.subr.mxu1 %v5265_v23 }
 0xed5   :  { %4767 = vmatmul.mubr.msk.f32.vlgmr.msra.gmra.mrb[22].mxu1 %vm450_vm8, %v1417_v0 }
 0xed6   :  { %4775 = vmatpush3.msra.mxu1 %v1594_v36  ;;  %4776 = vmatprep.mubr.msk.f32.mxu1 %vm5267_vm7, %v5265_v23  ;;  %v2086_v36 = vld [vmem:[%s6197_s16 + $0x18] sm:$0xff] }
 0xed7   :  { %4784 = vmatprep.subr.mxu1 %v5265_v23  ;;  %v5060_v56 = vpack.c.bf16 %v2086_v36, %v2085_v54 }
 0xed9   :  { %4777 = vmatmul.mubr.msk.f32.vlgmr.msra.gmra.mrb[24].mxu1 %vm450_vm8, %v1592_v2  ;;  %v1849_v4 = vld [vmem:[#allocation3] sm:$0xff] }
 0xeda   :  { %4785 = vmatpush3.msra.mxu1 %v1769_v57  ;;  %4797 = vmatprep.mubr.msk.f32.mxu0 %vm304_vm5, %v1849_v4  ;;  %v2087_v57 = vld [vmem:[%s6197_s16 + $0x20] sm:$0xff] }
 0xedb   :  { %4786 = vmatprep.mubr.msk.f32.mxu1 %vm5267_vm7, %v5265_v23  ;;  %v5064_v59 = vpack.c.bf16 %v2088_v58, %v2087_v57 }
 0xedd   :  { %4787 = vmatmul.mubr.msk.f32.vlgmr.msra.gmra.mrb[26].mxu1 %vm450_vm8, %v1767_v5  ;;  %v4399_v5 = vld [vmem:[%s6194_s13] ss:$0 sm:$0xff] }
 0xfa4   :  { %v1319_v9 = vpop.f32.mrb[20].mxu1 }
 0xfa5   :  { %1323 = vst.msk [vmem:[#allocation3 + $0x8] sm:$0xff] %vm450_vm8, %v1319_v9  ;;  %v4758_v13 = vpop.f32.mrb[21].mxu1 }
 0xfa6   :  { %v2089_v13 = vld [vmem:[%s6197_s16 + $0x30] sm:$0xff] }
 0xfa8   :  { %v1490_v15 = vpop.f32.mrb[22].mxu1 }
 0xfa9   :  { %1495 = vrot.lane.b32.xlu0 %v1490_v15, %s5279_s29  ;;  %v4768_v16 = vpop.f32.mrb[23].mxu1  ;;  %v5068_v15 = vpack.c.bf16 %v2090_v14, %v2089_v13 }
 0xfaa   :  { %v4400_v16 = vld [vmem:[%s6196_s15] ss:$0 sm:$0xff] }
 0xfac   :  { %v1665_v17 = vpop.f32.mrb[24].mxu1 }
 0xfad   :  { %1670 = vrot.lane.b32.xlu0 %v1665_v17, %s6238_s9  ;;  %v4778_v18 = vpop.f32.mrb[25].mxu1 }
 0xfb0   :  { %v1840_v19 = vpop.f32.mrb[26].mxu1 }
 0xfb1   :  { %1845 = vrot.lane.b32.xlu1 %v1840_v19, %s6236_s21  ;;  %v4788_v21 = vpop.f32.mrb[27].mxu1 }
0x101b   :  { %v1496_v22 = vpop.permute.xlu0 %1495 }
0x101c   :  { %1498 = vst.msk [vmem:[#allocation3 + $0x8] sm:$0xff] %vm794_vm9, %v1496_v22 }
0x101f   :  { %v1671_v24 = vpop.permute.xlu0 %1670 }
0x1020   :  { %1673 = vst.msk [vmem:[#allocation3 + $0x8] sm:$0xff] %vm970_vm10, %v1671_v24 }
0x1023   :  { %v1846_v26 = vpop.permute.xlu1 %1845 }
0x1024   :  { %1848 = vst.msk [vmem:[#allocation3 + $0x8] sm:$0xff] %vm1146_vm11, %v1846_v26  ;;  %v4403_v26 = vld [vmem:[%s6198_s17] ss:$0 sm:$0xff] }
0x102b   :  { %v1850_v28 = vld [vmem:[#allocation3 + $0x8] sm:$0xff] }
0x102c   :  { %4798 = vmatmul.mubr.msk.f32.vlgmr.msra.gmra.mrb[8].mxu0 %vm304_vm5, %v1850_v28 }
0x102d   :  { %5059 = vmatpush3.bf16.msra.mxu0 %v5056_v55 }
0x102e   :  { %5061 = vmatprep.subr.bf16.mxu0 %v5060_v56 }
0x1031   :  { %5063 = vmatpush3.bf16.msra.mxu0 %v5060_v56  ;;  %v4406_v56 = vld [vmem:[%s6199_s18] ss:$0 sm:$0xff] }
0x1032   :  { %5065 = vmatprep.subr.bf16.mxu0 %v5064_v59 }
0x1035   :  { %5067 = vmatpush3.bf16.msra.mxu0 %v5064_v59 }
0x1036   :  { %5069 = vmatprep.subr.bf16.mxu0 %v5068_v15 }
0x1039   :  { %5071 = vmatpush3.bf16.msra.mxu0 %v5068_v15 }
0x103a   :  { %4851 = vmatprep.subr.mxu0 %v5265_v23 }
0x10ff   :  { %v4799_v30 = vpop.f32.mrb[8].mxu0 }
0x1100   :  { %v1940_v31 = vadd.f32 %v4799_v30, %v4395_v29  ;;  %v1934_v32 = vpop.f32.mrb[9].mxu0 }
0x1101   :  { %v1935_v34 = vadd.f32 %v4395_v29, %v1934_v32 }
0x1102   :  { %v1944_v35 = vadd.f32 %v1940_v31, %v5539_v27 }
0x1103   :  { %v1943_v37 = vadd.f32 %v1935_v34, %v5535_v25  ;;  %v1989_v25 = vld [vmem:[%s6195_s14] sm:$0xff] }
0x1104   :  { %v1950_v39 = vsel %vm304_vm5, %v1944_v35, 0.0  ;;  %v5048_v49 = vpack.c.bf16 %v1990_v12, %v1989_v25  ;;  %v4410_v12 = vld [vmem:[%s6257_s28 + $0x30] sm:$0xff] }
0x1105   :  { %1951 = vadd.xlane.f32.xlu1 %v1950_v39  ;;  %v1947_v41 = vsel %vm304_vm5, %v1943_v37, 0.0 }
0x1106   :  { %1948 = vadd.xlane.f32.xlu0 %v1947_v41  ;;  %5049 = vmatprep.subr.bf16.mxu1 %v5048_v49 }
0x1107   :  { %5051 = vmatpush3.bf16.msra.mxu1 %v5048_v49  ;;  %v4411_v49 = vld [vmem:[%s6257_s28 + $0x38] sm:$0xff] }
0x1108   :  { %5053 = vmatprep.subr.bf16.mxu1 %v5052_v52  ;;  %v5076_v50 = vpack.c.bf16 %v4411_v49, %v4410_v12 }
0x110b   :  { %5055 = vmatpush3.bf16.msra.mxu1 %v5052_v52 }
0x1192   :  { %v1952_v42 = vpop.xlane.xlu1 %1951 }
0x1193   :  { %v1954_v43 = vmul.f32 0.03125, %v1952_v42  ;;  %v1949_v44 = vpop.xlane.xlu0 %1948 }
0x1194   :  { %v1953_v46 = vmul.f32 0.03125, %v1949_v44 }
0x1195   :  { %v1956_v40 = vsub.f32 %v1944_v35, %v1954_v43 }
0x1196   :  { %v1955_v47 = vsub.f32 %v1943_v37, %v1953_v46 }
0x1197   :  { %v1958_v20 = vmul.f32 %v1956_v40, %v1956_v40 }
0x1198   :  { %v1957_v48 = vmul.f32 %v1955_v47, %v1955_v47 }
0x1199   :  { %v1962_v27 = vsel %vm304_vm5, %v1958_v20, 0.0  ;;  %v4408_v20 = vld [vmem:[%s6257_s28 + $0x20] sm:$0xff] }
0x119a   :  { %v1959_v33 = vsel %vm304_vm5, %v1957_v48, 0.0 }
0x119b   :  { %1960 = vadd.xlane.f32.xlu0 %v1959_v33 }
0x119f   :  { %1963 = vadd.xlane.f32.xlu0 %v1962_v27  ;;  %v4409_v27 = vld [vmem:[%s6257_s28 + $0x28] sm:$0xff] }
0x11a0   :  { %v5072_v25 = vpack.c.bf16 %v4409_v27, %v4408_v20 }
0x11a2   :  { %5073 = vmatprep.subr.bf16.mxu1 %v5072_v25 }
0x1228   :  { %v1961_v60 = vpop.xlane.xlu0 %1960 }
0x1229   :  { %v1965_v61 = vmul.f32 0.03125, %v1961_v60  ;;  %v4407_v60 = vld [vmem:[%s6200_s19] ss:$0 sm:$0xff] }
0x122b   :  { %v1967_v62 = vadd.f32 1e-12, %v1965_v61 }
0x122c   :  { %v1964_v63 = vpop.xlane.xlu0 %1963 }
0x122d   :  { %5188 = vrsqrt.f32 %v1967_v62  ;;  %v1966_v0 = vmul.f32 0.03125, %v1964_v63 }
0x122f   :  { %v1968_v1 = vadd.f32 1e-12, %v1966_v0 }
0x1231   :  { %5190 = vrsqrt.f32 %v1968_v1  ;;  %v4413_v1 = vld [vmem:[%s6260_s3 + $0x1] ss:$0 sm:$0xff]  ;;  %s6265_s3 = smov 120  }
0x1237   :  { %v5189_v2 = vpop.eup %5188 }
0x1238   :  { %v1971_v4 = vmul.f32 %v5189_v2, %v1955_v47 }
0x123a   :  { %v1979_v6 = vmul.f32 %v4398_v3, %v1971_v4 }
0x123b   :  { %v5191_v7 = vpop.eup %5190 }
0x123c   :  { %v1972_v8 = vmul.f32 %v5191_v7, %v1956_v40  ;;  %v1987_v9 = vadd.f32 %v4399_v5, %v1979_v6 }
0x123e   :  { %v1980_v10 = vmul.f32 %v4398_v3, %v1972_v8  ;;  %4808 = vmatprep.mubr.msk.f32.mxu1 %vm304_vm5, %v1987_v9 }
0x1240   :  { %v1988_v11 = vadd.f32 %v4399_v5, %v1980_v10 }
0x1242   :  { %4809 = vmatmul.mubr.msk.f32.vlgmr.msra.gmra.mrb[28].mxu1 %vm304_vm5, %v1988_v11 }
0x1243   :  { %5075 = vmatpush3.bf16.msra.mxu1 %v5072_v25 }
0x1244   :  { %5077 = vmatprep.subr.bf16.mxu1 %v5076_v50 }
0x1247   :  { %5079 = vmatpush3.bf16.msra.mxu1 %v5076_v50 }
0x1248   :  { %4841 = vmatprep.subr.mxu1 %v5265_v23 }
0x1315   :  { %v4810_v17 = vpop.f32.mrb[28].mxu1 }
0x1316   :  { %v2078_v18 = vadd.f32 %v4810_v17, %v4400_v16  ;;  %v2072_v19 = vpop.f32.mrb[29].mxu1 }
0x1317   :  { %v2073_v21 = vadd.f32 %v4400_v16, %v2072_v19 }
0x1318   :  { %v2082_v24 = vmax.f32 %v2078_v18, 0.0 }
0x1319   :  { %v2081_v22 = vmax.f32 %v2073_v21, 0.0 }
0x131b   :  { %4827 = vmatprep.mubr.msk.f32.mxu0 %vm138_vm0, %v2081_v22 }
0x131c   :  { %4828 = vmatmul.mubr.msk.f32.vlgmr.msra.gmra.mrb[10].mxu0 %vm138_vm0, %v2082_v24 }
0x131d   :  { %4853 = vmatprep.mubr.msk.f32.mxu0 %vm5267_vm7, %v5265_v23 }
0x13ef   :  { %v4829_v28 = vpop.f32.mrb[10].mxu0 }
0x13f0   :  { %v2176_v29 = vadd.f32 %v4829_v28, %v4403_v26  ;;  %v2170_v30 = vpop.f32.mrb[11].mxu0 }
0x13f1   :  { %v2171_v31 = vadd.f32 %v4403_v26, %v2170_v30  ;;  %v2321_v26 = vld [vmem:[%s6261_s30] sm:$0x1] }
0x13f2   :  { %v2180_v32 = vadd.f32 %v2176_v29, %v1988_v11  ;;  %v2322_v28 = vsub.f32 1.0, %v2321_v26 }
0x13f3   :  { %v2179_v34 = vadd.f32 %v2171_v31, %v1987_v9 }
0x13f4   :  { %v2186_v35 = vsel %vm304_vm5, %v2180_v32, 0.0  ;;  %v2323_v29 = vmul.f32 -1e+09, %v2322_v28 }
0x13f5   :  { %2187 = vadd.xlane.f32.xlu0 %v2186_v35  ;;  %v2183_v37 = vsel %vm304_vm5, %v2179_v34, 0.0 }
0x13f6   :  { %2184 = vadd.xlane.f32.xlu1 %v2183_v37  ;;  %v2406_v30 = vrot.slane %v2323_v29, %v5570_v38 }
0x1482   :  { %v2188_v39 = vpop.xlane.xlu0 %2187 }
0x1483   :  { %v2190_v41 = vmul.f32 0.03125, %v2188_v39  ;;  %v2185_v42 = vpop.xlane.xlu1 %2184 }
0x1484   :  { %v2189_v43 = vmul.f32 0.03125, %v2185_v42 }
0x1485   :  { %v2192_v44 = vsub.f32 %v2180_v32, %v2190_v41 }
0x1486   :  { %v2191_v46 = vsub.f32 %v2179_v34, %v2189_v43  ;;  %v3022_v43 = vld [vmem:[%s6261_s30 + $0x1] sm:$0x1]  ;;  %s6269_s30 = smov 56  }
0x1487   :  { %v2194_v40 = vmul.f32 %v2192_v44, %v2192_v44 }
0x1488   :  { %v2193_v47 = vmul.f32 %v2191_v46, %v2191_v46 }
0x1489   :  { %v2198_v48 = vsel %vm304_vm5, %v2194_v40, 0.0  ;;  %v3023_v40 = vsub.f32 1.0, %v3022_v43 }
0x148a   :  { %2199 = vadd.xlane.f32.xlu0 %v2198_v48  ;;  %v2195_v33 = vsel %vm304_vm5, %v2193_v47, 0.0 }
0x148b   :  { %2196 = vadd.xlane.f32.xlu1 %v2195_v33  ;;  %v3024_v27 = vmul.f32 -1e+09, %v3023_v40 }
0x1517   :  { %v2200_v51 = vpop.xlane.xlu0 %2199 }
0x1518   :  { %v2202_v52 = vmul.f32 0.03125, %v2200_v51  ;;  %v2197_v53 = vpop.xlane.xlu1 %2196 }
0x1519   :  { %v2201_v45 = vmul.f32 0.03125, %v2197_v53 }
0x151a   :  { %v2204_v54 = vadd.f32 1e-12, %v2202_v52  ;;  %v3107_v52 = vrot.slane %v3024_v27, %v5570_v38 }
0x151b   :  { %v2203_v55 = vadd.f32 1e-12, %v2201_v45 }
0x151c   :  { %5192 = vrsqrt.f32 %v2204_v54 }
0x151d   :  { %5194 = vrsqrt.f32 %v2203_v55 }
0x1526   :  { %v5193_v36 = vpop.eup %5192 }
0x1527   :  { %v5195_v57 = vpop.eup %5194  ;;  %v2208_v58 = vmul.f32 %v5193_v36, %v2192_v44 }
0x1528   :  { %v2207_v59 = vmul.f32 %v5195_v57, %v2191_v46 }
0x1529   :  { %v2216_v61 = vmul.f32 %v4406_v56, %v2208_v58 }
0x152a   :  { %v2215_v62 = vmul.f32 %v4406_v56, %v2207_v59 }
0x152b   :  { %v5832_v0 = vadd.f32 %v4407_v60, %v2216_v61 }
0x152c   :  { %v5830_v63 = vadd.f32 %v4407_v60, %v2215_v62 }
0x152e   :  { %4838 = vmatprep.mubr.msk.f32.mxu1 %vm304_vm5, %v5830_v63 }
0x152f   :  { %4839 = vmatmul.mubr.msk.f32.vlgmr.msra.gmra.mrb[30].mxu1 %vm304_vm5, %v5832_v0 }
0x1530   :  { %4843 = vmatprep.mubr.msk.f32.mxu1 %vm5267_vm7, %v5265_v23 }
0x1602   :  { %v4840_v2 = vpop.f32.mrb[30].mxu1 }
0x1603   :  { %v2316_v3 = vadd.f32 %v4840_v2, %v4413_v1  ;;  %v2310_v4 = vpop.f32.mrb[31].mxu1 }
0x1604   :  { %v2311_v5 = vadd.f32 %v4413_v1, %v2310_v4 }
0x1605   :  { %2320 = vst.msk [vmem:[#allocation2 + $0x8] sm:$0xff] %vm440_vm6, %v2316_v3 }
0x1606   :  { %2319 = vst.msk [vmem:[#allocation2] sm:$0xff] %vm440_vm6, %v2311_v5 }
0x160c   :  { %v5859_v7 = vld [vmem:[#allocation2 + $0x8] sm:$0xff] }
0x160d   :  { %v5845_v6 = vld [vmem:[#allocation2] sm:$0xff] }
0x160e   :  { %2501 = vrot.lane.b32.xlu0 %v5845_v6, %s5269_s4  ;;  %2326 = vrot.lane.b32.xlu1 %v5845_v6, %s6263_s6 }
0x1612   :  { %2674 = vrot.lane.b32.xlu0 %v5845_v6, %s6264_s8  ;;  %2499 = vrot.lane.b32.xlu1 %v5845_v6, %s6265_s3 }
0x1616   :  { %2849 = vrot.lane.b32.xlu0 %v5845_v6, %s6266_s7  ;;  %2676 = vrot.lane.b32.xlu1 %v5845_v6, %s6267_s5 }
0x161a   :  { %3202 = vrot.lane.b32.xlu0 %v5859_v7, %s5269_s4  ;;  %2851 = vrot.lane.b32.xlu1 %v5845_v6, %s6268_s10 }
0x161e   :  { %3377 = vrot.lane.b32.xlu0 %v5859_v7, %s6267_s5  ;;  %3027 = vrot.lane.b32.xlu1 %v5859_v7, %s6263_s6  ;;  %s6273_s6 = smov 16  }
0x1622   :  { %3552 = vrot.lane.b32.xlu0 %v5859_v7, %s6268_s10  ;;  %3200 = vrot.lane.b32.xlu1 %v5859_v7, %s6265_s3  ;;  %s6275_s3 = sld [smem:[#allocation18_spill]] }
0x1626   :  { %3375 = vrot.lane.b32.xlu1 %v5859_v7, %s6264_s8  ;;  %s6274_s8 = smov 24  }
0x162a   :  { %3550 = vrot.lane.b32.xlu1 %v5859_v7, %s6266_s7 }
0x1680   :  { %v2502_v8 = vpop.permute.xlu0 %2501  ;;  %v2327_v9 = vpop.permute.xlu1 %2326 }
0x1681   :  { %4842 = vmatpush3.xpose.msk.msra.mxu1 %vm450_vm8, %v2327_v9  ;;  %4852 = vmatpush3.xpose.msk.msra.mxu0 %vm450_vm8, %v2502_v8 }
0x1682   :  { %4861 = vmatprep.subr.mxu0 %v5265_v23  ;;  %4846 = vmatprep.subr.mxu1 %v5265_v23 }
0x1684   :  { %v2675_v10 = vpop.permute.xlu0 %2674  ;;  %4844 = vmatmul.mubr.msk.f32.vlgmr.msra.gmra.mrb[32].mxu1 %vm450_vm8, %v5845_v6  ;;  %v2500_v11 = vpop.permute.xlu1 %2499 }
0x1685   :  { %4854 = vmatmul.mubr.msk.f32.vlgmr.msra.gmra.mrb[12].mxu0 %vm450_vm8, %v2500_v11  ;;  %4848 = vmatprep.mubr.msk.f32.mxu1 %vm5267_vm7, %v5265_v23 }
0x1686   :  { %4863 = vmatprep.mubr.msk.f32.mxu0 %vm5267_vm7, %v5265_v23 }
0x1688   :  { %v2677_v13 = vpop.permute.xlu1 %2676  ;;  %v2850_v14 = vpop.permute.xlu0 %2849 }
0x1689   :  { %4862 = vmatpush3.xpose.msk.msra.mxu0 %vm450_vm8, %v2677_v13 }
0x168a   :  { %4871 = vmatprep.subr.mxu0 %v5265_v23 }
0x168c   :  { %4864 = vmatmul.mubr.msk.f32.vlgmr.msra.gmra.mrb[14].mxu0 %vm450_vm8, %v2675_v10  ;;  %v2852_v15 = vpop.permute.xlu1 %2851  ;;  %v3203_v16 = vpop.permute.xlu0 %3202 }
0x168d   :  { %4872 = vmatpush3.xpose.msk.msra.mxu0 %vm450_vm8, %v2852_v15  ;;  %4873 = vmatprep.mubr.msk.f32.mxu0 %vm5267_vm7, %v5265_v23 }
0x168e   :  { %4881 = vmatprep.subr.mxu0 %v5265_v23 }
0x1690   :  { %4874 = vmatmul.mubr.msk.f32.vlgmr.msra.gmra.mrb[16].mxu0 %vm450_vm8, %v2850_v14  ;;  %v3028_v17 = vpop.permute.xlu1 %3027  ;;  %v3378_v19 = vpop.permute.xlu0 %3377 }
0x1691   :  { %4882 = vmatpush3.xpose.msk.msra.mxu0 %vm450_vm8, %v3028_v17  ;;  %4883 = vmatprep.mubr.msk.f32.mxu0 %vm5267_vm7, %v5265_v23 }
0x1692   :  { %4891 = vmatprep.subr.mxu0 %v5265_v23 }
0x1694   :  { %4884 = vmatmul.mubr.msk.f32.vlgmr.msra.gmra.mrb[18].mxu0 %vm450_vm8, %v5859_v7  ;;  %v3201_v18 = vpop.permute.xlu1 %3200  ;;  %v3553_v22 = vpop.permute.xlu0 %3552 }
0x1695   :  { %4892 = vmatpush3.xpose.msk.msra.mxu0 %vm450_vm8, %v3203_v16  ;;  %4893 = vmatprep.mubr.msk.f32.mxu0 %vm5267_vm7, %v5265_v23 }
0x1696   :  { %4901 = vmatprep.subr.mxu0 %v5265_v23 }
0x1698   :  { %4894 = vmatmul.mubr.msk.f32.vlgmr.msra.gmra.mrb[20].mxu0 %vm450_vm8, %v3201_v18  ;;  %v3376_v21 = vpop.permute.xlu1 %3375 }
0x1699   :  { %4902 = vmatpush3.xpose.msk.msra.mxu0 %vm450_vm8, %v3378_v19  ;;  %4903 = vmatprep.mubr.msk.f32.mxu0 %vm5267_vm7, %v5265_v23 }
0x169a   :  { %4911 = vmatprep.subr.mxu0 %v5265_v23 }
0x169c   :  { %4904 = vmatmul.mubr.msk.f32.vlgmr.msra.gmra.mrb[22].mxu0 %vm450_vm8, %v3376_v21  ;;  %v3551_v24 = vpop.permute.xlu1 %3550 }
0x169d   :  { %4912 = vmatpush3.xpose.msk.msra.mxu0 %vm450_vm8, %v3553_v22  ;;  %4913 = vmatprep.mubr.msk.f32.mxu0 %vm5267_vm7, %v5265_v23 }
0x16a0   :  { %4914 = vmatmul.mubr.msk.f32.vlgmr.msra.gmra.mrb[24].mxu0 %vm450_vm8, %v3551_v24 }
0x1757   :  { %v2398_v31 = vpop.f32.mrb[32].mxu1 }
0x1758   :  { %v2402_v32 = vmul.f32 0.35355338, %v2398_v31  ;;  %v4845_v34 = vpop.f32.mrb[33].mxu1  ;;  %v2573_v35 = vpop.f32.mrb[12].mxu0 }
0x1759   :  { %v2577_v37 = vmul.f32 0.35355338, %v2573_v35  ;;  %v4855_v39 = vpop.f32.mrb[13].mxu0 }
0x175a   :  { %v2407_v41 = vadd.f32 %v2406_v30, %v2402_v32 }
0x175b   :  { %v2578_v42 = vadd.f32 %v2577_v37, %v2406_v30 }
0x175c   :  { %v2408_v44 = vsel %vm450_vm8, %v2407_v41, -inf }
0x175d   :  { %2409 = vmax.xlane.f32.xlu0 %v2408_v44  ;;  %v2579_v46 = vsel %vm450_vm8, %v2578_v42, -inf }
0x175e   :  { %2580 = vmax.xlane.f32.xlu1 %v2579_v46 }
0x175f   :  { %v2748_v47 = vpop.f32.mrb[14].mxu0 }
0x1760   :  { %v2752_v48 = vmul.f32 0.35355338, %v2748_v47  ;;  %v4865_v33 = vpop.f32.mrb[15].mxu0 }
0x1762   :  { %v5925_v20 = vadd.f32 %v2752_v48, %v2406_v30 }
0x1763   :  { %v2923_v25 = vpop.f32.mrb[16].mxu0 }
0x1764   :  { %v2927_v12 = vmul.f32 0.35355338, %v2923_v25  ;;  %v4875_v49 = vpop.f32.mrb[17].mxu0  ;;  %v2754_v50 = vsel %vm450_vm8, %v5925_v20, -inf }
0x1765   :  { %2755 = vmax.xlane.f32.xlu0 %v2754_v50 }
0x1766   :  { %v2928_v51 = vadd.f32 %v2927_v12, %v2406_v30 }
0x1767   :  { %v3099_v53 = vpop.f32.mrb[18].mxu0 }
0x1768   :  { %v3103_v45 = vmul.f32 0.35355338, %v3099_v53  ;;  %v4885_v54 = vpop.f32.mrb[19].mxu0  ;;  %v2929_v55 = vsel %vm450_vm8, %v2928_v51, -inf }
0x1769   :  { %2930 = vmax.xlane.f32.xlu0 %v2929_v55 }
0x176a   :  { %v3108_v36 = vadd.f32 %v3107_v52, %v3103_v45 }
0x176b   :  { %v3274_v56 = vpop.f32.mrb[20].mxu0 }
0x176c   :  { %v3278_v57 = vmul.f32 0.35355338, %v3274_v56  ;;  %v4895_v58 = vpop.f32.mrb[21].mxu0  ;;  %v3109_v59 = vsel %vm450_vm8, %v3108_v36, -inf }
0x176d   :  { %3110 = vmax.xlane.f32.xlu1 %v3109_v59 }
0x176e   :  { %v3279_v60 = vadd.f32 %v3278_v57, %v3107_v52 }
0x176f   :  { %v3449_v61 = vpop.f32.mrb[22].mxu0 }
0x1770   :  { %v3453_v62 = vmul.f32 0.35355338, %v3449_v61  ;;  %v4905_v1 = vpop.f32.mrb[23].mxu0  ;;  %v3280_v2 = vsel %vm450_vm8, %v3279_v60, -inf }
0x1771   :  { %3281 = vmax.xlane.f32.xlu0 %v3280_v2 }
0x1772   :  { %v5933_v38 = vadd.f32 %v3453_v62, %v3107_v52 }
0x1773   :  { %v3624_v3 = vpop.f32.mrb[24].mxu0 }
0x1774   :  { %v3628_v4 = vmul.f32 0.35355338, %v3624_v3  ;;  %v4915_v5 = vpop.f32.mrb[25].mxu0  ;;  %v3455_v8 = vsel %vm450_vm8, %v5933_v38, -inf }
0x1775   :  { %3456 = vmax.xlane.f32.xlu1 %v3455_v8 }
0x1776   :  { %v3629_v9 = vadd.f32 %v3628_v4, %v3107_v52 }
0x1778   :  { %v3630_v10 = vsel %vm450_vm8, %v3629_v9, -inf }
0x1779   :  { %3631 = vmax.xlane.f32.xlu0 %v3630_v10 }
0x1786   :  { %2591 = vrot.lane.b32.xlu1 %v5845_v6, %s6269_s30 }
0x178f   :  { %2420 = vrot.lane.b32.xlu0 %v5845_v6, %s6270_s1 }
0x17ea   :  { %v2410_v11 = vpop.xlane.xlu0 %2409 }
0x17eb   :  { %v2411_v13 = vsub.f32 %v2407_v41, %v2410_v11  ;;  %v2581_v14 = vpop.xlane.xlu1 %2580 }
0x17ec   :  { %v2582_v15 = vsub.f32 %v2578_v42, %v2581_v14 }
0x17ed   :  { %v2412_v16 = vmul.f32 1.442695, %v2411_v13 }
0x17ee   :  { %v2583_v17 = vmul.f32 1.442695, %v2582_v15 }
0x17ef   :  { %5196 = vpow2.f32 %v2412_v16 }
0x17f0   :  { %5198 = vpow2.f32 %v2583_v17 }
0x17f2   :  { %v2756_v18 = vpop.xlane.xlu0 %2755 }
0x17f3   :  { %v2757_v31 = vsub.f32 %v5925_v20, %v2756_v18 }
0x17f5   :  { %v2758_v35 = vmul.f32 1.442695, %v2757_v31 }
0x17f6   :  { %v2931_v26 = vpop.xlane.xlu0 %2930 }
0x17f7   :  { %v2932_v32 = vsub.f32 %v2928_v51, %v2931_v26  ;;  %5200 = vpow2.f32 %v2758_v35 }
0x17f9   :  { %v5942_v19 = vpop.eup %5196  ;;  %v2933_v39 = vmul.f32 1.442695, %v2932_v32 }
0x17fa   :  { %v5944_v21 = vpop.eup %5198  ;;  %v2414_v22 = vsel %vm450_vm8, %v5942_v19, 0.0  ;;  %v3111_v34 = vpop.xlane.xlu1 %3110 }
0x17fb   :  { %2415 = vadd.xlane.f32.xlu1 %v2414_v22  ;;  %v2585_v24 = vsel %vm450_vm8, %v5944_v21, 0.0  ;;  %v3112_v37 = vsub.f32 %v3108_v36, %v3111_v34  ;;  %5202 = vpow2.f32 %v2933_v39 }
0x17fc   :  { %2586 = vadd.xlane.f32.xlu0 %v2585_v24 }
0x17fd   :  { %v3113_v42 = vmul.f32 1.442695, %v3112_v37 }
0x17fe   :  { %v3282_v28 = vpop.xlane.xlu0 %3281 }
0x17ff   :  { %v3283_v41 = vsub.f32 %v3279_v60, %v3282_v28  ;;  %5204 = vpow2.f32 %v3113_v42 }
0x1801   :  { %v3284_v43 = vmul.f32 1.442695, %v3283_v41  ;;  %v5956_v44 = vpop.eup %5200 }
0x1802   :  { %v3457_v27 = vpop.xlane.xlu1 %3456 }
0x1803   :  { %5206 = vpow2.f32 %v3284_v43  ;;  %v3458_v25 = vsub.f32 %v5933_v38, %v3457_v27 }
0x1805   :  { %v5958_v46 = vpop.eup %5202  ;;  %v3459_v12 = vmul.f32 1.442695, %v3458_v25  ;;  %v4442_v25 = vld [vmem:[%s6262_s2 + $0x30] sm:$0xff] }
0x1806   :  { %v3632_v29 = vpop.xlane.xlu0 %3631  ;;  %v2935_v47 = vsel %vm450_vm8, %v5958_v46, 0.0  ;;  %v2592_v54 = vpop.permute.xlu1 %2591 }
0x1807   :  { %v3633_v49 = vsub.f32 %v3629_v9, %v3632_v29  ;;  %5208 = vpow2.f32 %v3459_v12  ;;  %v4443_v12 = vld [vmem:[%s6262_s2 + $0x38] sm:$0xff] }
0x1809   :  { %v5962_v40 = vpop.eup %5204  ;;  %v3634_v50 = vmul.f32 1.442695, %v3633_v49  ;;  %v5084_v49 = vpack.c.bf16 %v4443_v12, %v4442_v25  ;;  %v4466_v12 = vld [vmem:[%s6197_s16 + $0x70] sm:$0xff] }
0x180a   :  { %v2421_v30 = vpop.permute.xlu0 %2420  ;;  %v3115_v33 = vsel %vm450_vm8, %v5962_v40, 0.0 }
0x180b   :  { %4847 = vmatpush3.msra.mxu1 %v2421_v30  ;;  %5210 = vpow2.f32 %v3634_v50 }
0x180c   :  { %2941 = vrot.lane.b32.xlu1 %v5845_v6, %s6271_s27  ;;  %4856 = vmatprep.subr.mxu1 %v5265_v23 }
0x180d   :  { %v5966_v48 = vpop.eup %5206 }
0x180e   :  { %v3286_v20 = vsel %vm450_vm8, %v5966_v48, 0.0 }
0x1811   :  { %v5979_v51 = vpop.eup %5208 }
0x1812   :  { %2766 = vrot.lane.b32.xlu0 %v5845_v6, %s6272_s0  ;;  %v2760_v6 = vsel %vm450_vm8, %v5956_v44, 0.0  ;;  %v3461_v52 = vsel %vm450_vm8, %v5979_v51, 0.0 }
0x1815   :  { %v5983_v53 = vpop.eup %5210 }
0x1816   :  { %v3636_v45 = vsel %vm450_vm8, %v5983_v53, 0.0 }
0x1830   :  { %2761 = vadd.xlane.f32.xlu1 %v2760_v6 }
0x1831   :  { %2936 = vadd.xlane.f32.xlu0 %v2935_v47 }
0x1834   :  { %3116 = vadd.xlane.f32.xlu1 %v3115_v33  ;;  %v4440_v33 = vld [vmem:[%s6262_s2 + $0x20] sm:$0xff] }
0x1835   :  { %3287 = vadd.xlane.f32.xlu0 %v3286_v20  ;;  %v4441_v20 = vld [vmem:[%s6262_s2 + $0x28] sm:$0xff] }
0x1836   :  { %v5080_v27 = vpack.c.bf16 %v4441_v20, %v4440_v33 }
0x1838   :  { %5081 = vmatprep.subr.bf16.mxu0 %v5080_v27 }
0x1839   :  { %5083 = vmatpush3.bf16.msra.mxu0 %v5080_v27 }
0x183a   :  { %5085 = vmatprep.subr.bf16.mxu0 %v5084_v49 }
0x183d   :  { %5087 = vmatpush3.bf16.msra.mxu0 %v5084_v49  ;;  %v4467_v49 = vld [vmem:[%s6197_s16 + $0x78] sm:$0xff] }
0x1845   :  { %3292 = vrot.lane.b32.xlu1 %v5859_v7, %s6269_s30 }
0x184b   :  { %3121 = vrot.lane.b32.xlu0 %v5859_v7, %s6270_s1 }
0x184f   :  { %3467 = vrot.lane.b32.xlu0 %v5859_v7, %s6272_s0 }
0x1869   :  { %3462 = vadd.xlane.f32.xlu1 %v3461_v52 }
0x186d   :  { %3637 = vadd.xlane.f32.xlu1 %v3636_v45 }
0x187e   :  { %3642 = vrot.lane.b32.xlu1 %v5859_v7, %s6271_s27 }
0x1888   :  { %v2416_v55 = vpop.xlane.xlu1 %2415 }
0x1889   :  { %v2417_v36 = vmax.f32 %v2416_v55, 1e-30  ;;  %v2587_v56 = vpop.xlane.xlu0 %2586 }
0x188a   :  { %v2588_v57 = vmax.f32 %v2587_v56, 1e-30 }
0x188b   :  { %5212 = vrcp.f32 %v2417_v36 }
0x188c   :  { %5214 = vrcp.f32 %v2588_v57  ;;  %v2942_v62 = vpop.permute.xlu1 %2941 }
0x188d   :  { %v2767_v61 = vpop.permute.xlu0 %2766 }
0x1895   :  { %v5213_v58 = vpop.eup %5212 }
0x1896   :  { %v2419_v59 = vmul.f32 %v5213_v58, %v5942_v19  ;;  %v5215_v60 = vpop.eup %5214 }
0x1897   :  { %v2590_v7 = vmul.f32 %v5215_v60, %v5944_v21  ;;  %v4445_v60 = vld [vmem:[%s6192_s11 + $0x1] ss:$0 sm:$0xff] }
0x1898   :  { %4849 = vmatmul.mubr.msk.f32.vlgmr.msra.gmra.mrb[34].mxu1 %vm450_vm8, %v2419_v59 }
0x1899   :  { %4857 = vmatpush3.msra.mxu1 %v2592_v54  ;;  %4858 = vmatprep.mubr.msk.f32.mxu1 %vm5267_vm7, %v5265_v23 }
0x189a   :  { %4866 = vmatprep.subr.mxu1 %v5265_v23 }
0x189c   :  { %4859 = vmatmul.mubr.msk.f32.vlgmr.msra.gmra.mrb[36].mxu1 %vm450_vm8, %v2590_v7 }
0x189d   :  { %4867 = vmatpush3.msra.mxu1 %v2767_v61  ;;  %4868 = vmatprep.mubr.msk.f32.mxu1 %vm5267_vm7, %v5265_v23 }
0x189e   :  { %4876 = vmatprep.subr.mxu1 %v5265_v23 }
0x18bd   :  { %v2762_v1 = vpop.xlane.xlu1 %2761 }
0x18be   :  { %v2763_v2 = vmax.f32 %v2762_v1, 1e-30  ;;  %v2937_v38 = vpop.xlane.xlu0 %2936 }
0x18bf   :  { %v2938_v3 = vmax.f32 %v2937_v38, 1e-30 }
0x18c0   :  { %5216 = vrcp.f32 %v2763_v2 }
0x18c1   :  { %v3117_v4 = vpop.xlane.xlu1 %3116  ;;  %5218 = vrcp.f32 %v2938_v3 }
0x18c2   :  { %v3118_v5 = vmax.f32 %v3117_v4, 1e-30  ;;  %v3288_v8 = vpop.xlane.xlu0 %3287 }
0x18c3   :  { %v3289_v9 = vmax.f32 %v3288_v8, 1e-30 }
0x18c4   :  { %5220 = vrcp.f32 %v3118_v5 }
0x18c5   :  { %5222 = vrcp.f32 %v3289_v9  ;;  %v3293_v19 = vpop.permute.xlu1 %3292 }
0x18c6   :  { %v3122_v16 = vpop.permute.xlu0 %3121 }
0x18ca   :  { %v5217_v10 = vpop.eup %5216  ;;  %v3468_v22 = vpop.permute.xlu0 %3467 }
0x18cb   :  { %v2765_v11 = vmul.f32 %v5217_v10, %v5956_v44  ;;  %v5219_v13 = vpop.eup %5218 }
0x18cc   :  { %v2940_v14 = vmul.f32 %v5219_v13, %v5958_v46 }
0x18cd   :  { %4869 = vmatmul.mubr.msk.f32.vlgmr.msra.gmra.mrb[38].mxu1 %vm450_vm8, %v2765_v11 }
0x18ce   :  { %4877 = vmatpush3.msra.mxu1 %v2942_v62  ;;  %4878 = vmatprep.mubr.msk.f32.mxu1 %vm5267_vm7, %v5265_v23  ;;  %v5221_v15 = vpop.eup %5220 }
0x18cf   :  { %4886 = vmatprep.subr.mxu1 %v5265_v23  ;;  %v3120_v17 = vmul.f32 %v5221_v15, %v5962_v40  ;;  %v5223_v18 = vpop.eup %5222 }
0x18d0   :  { %v3291_v21 = vmul.f32 %v5223_v18, %v5966_v48 }
0x18d1   :  { %4879 = vmatmul.mubr.msk.f32.vlgmr.msra.gmra.mrb[40].mxu1 %vm450_vm8, %v2940_v14 }
0x18d2   :  { %4887 = vmatpush3.msra.mxu1 %v3122_v16  ;;  %4888 = vmatprep.mubr.msk.f32.mxu1 %vm5267_vm7, %v5265_v23 }
0x18d3   :  { %4896 = vmatprep.subr.mxu1 %v5265_v23 }
0x18d5   :  { %4889 = vmatmul.mubr.msk.f32.vlgmr.msra.gmra.mrb[42].mxu1 %vm450_vm8, %v3120_v17  ;;  %v4453_v17 = vld [vmem:[%s6195_s14 + $0x28] sm:$0xff] }
0x18d6   :  { %4897 = vmatpush3.msra.mxu1 %v3293_v19  ;;  %4898 = vmatprep.mubr.msk.f32.mxu1 %vm5267_vm7, %v5265_v23  ;;  %v4454_v19 = vld [vmem:[%s6195_s14 + $0x30] sm:$0xff] }
0x18d7   :  { %4906 = vmatprep.subr.mxu1 %v5265_v23 }
0x18d9   :  { %4899 = vmatmul.mubr.msk.f32.vlgmr.msra.gmra.mrb[44].mxu1 %vm450_vm8, %v3291_v21  ;;  %v4455_v21 = vld [vmem:[%s6195_s14 + $0x38] sm:$0xff] }
0x18da   :  { %4907 = vmatpush3.msra.mxu1 %v3468_v22  ;;  %4908 = vmatprep.mubr.msk.f32.mxu1 %vm5267_vm7, %v5265_v23  ;;  %v5092_v22 = vpack.c.bf16 %v4455_v21, %v4454_v19 }
0x18db   :  { %4916 = vmatprep.subr.mxu1 %v5265_v23 }
0x18f6   :  { %v3463_v24 = vpop.xlane.xlu1 %3462 }
0x18f7   :  { %v3464_v26 = vmax.f32 %v3463_v24, 1e-30  ;;  %v4460_v24 = vld [vmem:[%s6197_s16 + $0x40] sm:$0xff] }
0x18f9   :  { %5224 = vrcp.f32 %v3464_v26  ;;  %v4461_v26 = vld [vmem:[%s6197_s16 + $0x48] sm:$0xff] }
0x18fa   :  { %v3638_v28 = vpop.xlane.xlu1 %3637 }
0x18fb   :  { %v3639_v29 = vmax.f32 %v3638_v28, 1e-30  ;;  %v4462_v28 = vld [vmem:[%s6197_s16 + $0x50] sm:$0xff] }
0x18fd   :  { %5226 = vrcp.f32 %v3639_v29  ;;  %v5096_v29 = vpack.c.bf16 %v4461_v26, %v4460_v24 }
0x18fe   :  { %v3643_v32 = vpop.permute.xlu1 %3642 }
0x18ff   :  { %5097 = vmatprep.subr.bf16.mxu0 %v5096_v29 }
0x1903   :  { %v5225_v30 = vpop.eup %5224 }
0x1904   :  { %v3466_v31 = vmul.f32 %v5225_v30, %v5979_v51  ;;  %v4463_v30 = vld [vmem:[%s6197_s16 + $0x58] sm:$0xff] }
0x1906   :  { %4909 = vmatmul.mubr.msk.f32.vlgmr.msra.gmra.mrb[46].mxu1 %vm450_vm8, %v3466_v31  ;;  %v5100_v31 = vpack.c.bf16 %v4463_v30, %v4462_v28 }
0x1907   :  { %v5227_v34 = vpop.eup %5226  ;;  %4917 = vmatpush3.msra.mxu1 %v3643_v32  ;;  %4918 = vmatprep.mubr.msk.f32.mxu1 %vm5267_vm7, %v5265_v23  ;;  %v4464_v32 = vld [vmem:[%s6197_s16 + $0x60] sm:$0xff] }
0x1908   :  { %v3641_v35 = vmul.f32 %v5227_v34, %v5983_v53  ;;  %v4465_v34 = vld [vmem:[%s6197_s16 + $0x68] sm:$0xff] }
0x190a   :  { %4919 = vmatmul.mubr.msk.f32.vlgmr.msra.gmra.mrb[48].mxu1 %vm450_vm8, %v3641_v35  ;;  %v5104_v35 = vpack.c.bf16 %v4465_v34, %v4464_v32  ;;  %v4475_v34 = vld [vmem:[%s6200_s19 + $0x1] ss:$0 sm:$0xff] }
0x196b   :  { %v2492_v37 = vpop.f32.mrb[34].mxu1 }
0x196c   :  { %2496 = vst.msk [vmem:[#allocation3] sm:$0xff] %vm450_vm8, %v2492_v37  ;;  %v4850_v39 = vpop.f32.mrb[35].mxu1 }
0x196f   :  { %v2663_v41 = vpop.f32.mrb[36].mxu1 }
0x1970   :  { %2668 = vrot.lane.b32.xlu0 %v2663_v41, %s5279_s29  ;;  %v4860_v42 = vpop.f32.mrb[37].mxu1 }
0x19a0   :  { %v2838_v43 = vpop.f32.mrb[38].mxu1 }
0x19a1   :  { %2843 = vrot.lane.b32.xlu1 %v2838_v43, %s6273_s6  ;;  %v4870_v44 = vpop.f32.mrb[39].mxu1 }
0x19a4   :  { %v3013_v46 = vpop.f32.mrb[40].mxu1 }
0x19a5   :  { %3018 = vrot.lane.b32.xlu1 %v3013_v46, %s6274_s8  ;;  %v4880_v23 = vpop.f32.mrb[41].mxu1 }
0x19a6   :  { %v4450_v23 = vld [vmem:[%s6193_s12 + $0x1] ss:$0 sm:$0xff] }
0x19a8   :  { %v3193_v6 = vpop.f32.mrb[42].mxu1 }
0x19a9   :  { %3197 = vst.msk [vmem:[#allocation3 + $0x8] sm:$0xff] %vm450_vm8, %v3193_v6  ;;  %v4890_v40 = vpop.f32.mrb[43].mxu1 }
0x19aa   :  { %v4451_v40 = vld [vmem:[%s6194_s13 + $0x1] ss:$0 sm:$0xff] }
0x19ac   :  { %v3364_v47 = vpop.f32.mrb[44].mxu1 }
0x19ad   :  { %3369 = vrot.lane.b32.xlu0 %v3364_v47, %s5279_s29  ;;  %v4900_v48 = vpop.f32.mrb[45].mxu1 }
0x19d9   :  { %v3539_v50 = vpop.f32.mrb[46].mxu1 }
0x19da   :  { %3544 = vrot.lane.b32.xlu0 %v3539_v50, %s6273_s6  ;;  %v4910_v51 = vpop.f32.mrb[47].mxu1  ;;  %v5108_v50 = vpack.c.bf16 %v4467_v49, %v4466_v12 }
0x19db   :  { %v4457_v51 = vld [vmem:[%s6196_s15 + $0x1] ss:$0 sm:$0xff] }
0x19dd   :  { %v3714_v52 = vpop.f32.mrb[48].mxu1 }
0x19de   :  { %3719 = vrot.lane.b32.xlu1 %v3714_v52, %s6274_s8  ;;  %v4920_v53 = vpop.f32.mrb[49].mxu1 }
0x19e2   :  { %v2669_v45 = vpop.permute.xlu0 %2668 }
0x19e3   :  { %2671 = vst.msk [vmem:[#allocation3] sm:$0xff] %vm794_vm9, %v2669_v45 }
0x1a13   :  { %v2844_v54 = vpop.permute.xlu1 %2843 }
0x1a14   :  { %2846 = vst.msk [vmem:[#allocation3] sm:$0xff] %vm970_vm10, %v2844_v54 }
0x1a17   :  { %v3019_v55 = vpop.permute.xlu1 %3018 }
0x1a18   :  { %3021 = vst.msk [vmem:[#allocation3] sm:$0xff] %vm1146_vm11, %v3019_v55 }
0x1a1f   :  { %v3370_v36 = vpop.permute.xlu0 %3369  ;;  %v3723_v56 = vld [vmem:[#allocation3] sm:$0xff] }
0x1a20   :  { %3372 = vst.msk [vmem:[#allocation3 + $0x8] sm:$0xff] %vm794_vm9, %v3370_v36  ;;  %4929 = vmatprep.mubr.msk.f32.mxu0 %vm304_vm5, %v3723_v56  ;;  %v4469_v56 = vld [vmem:[%s6198_s17 + $0x1] ss:$0 sm:$0xff] }
0x1a4c   :  { %v3545_v57 = vpop.permute.xlu0 %3544 }
0x1a4d   :  { %3547 = vst.msk [vmem:[#allocation3 + $0x8] sm:$0xff] %vm970_vm10, %v3545_v57 }
0x1a50   :  { %v3720_v58 = vpop.permute.xlu1 %3719 }
0x1a51   :  { %3722 = vst.msk [vmem:[#allocation3 + $0x8] sm:$0xff] %vm1146_vm11, %v3720_v58 }
0x1a58   :  { %v3724_v59 = vld [vmem:[#allocation3 + $0x8] sm:$0xff] }
0x1a59   :  { %4930 = vmatmul.mubr.msk.f32.vlgmr.msra.gmra.mrb[26].mxu0 %vm304_vm5, %v3724_v59 }
0x1a5a   :  { %5099 = vmatpush3.bf16.msra.mxu0 %v5096_v29  ;;  %v4474_v29 = vld [vmem:[%s6199_s18 + $0x1] ss:$0 sm:$0xff] }
0x1a5b   :  { %5101 = vmatprep.subr.bf16.mxu0 %v5100_v31 }
0x1a5e   :  { %5103 = vmatpush3.bf16.msra.mxu0 %v5100_v31 }
0x1a5f   :  { %5105 = vmatprep.subr.bf16.mxu0 %v5104_v35 }
0x1a62   :  { %5107 = vmatpush3.bf16.msra.mxu0 %v5104_v35 }
0x1a63   :  { %5109 = vmatprep.subr.bf16.mxu0 %v5108_v50 }
0x1a66   :  { %5111 = vmatpush3.bf16.msra.mxu0 %v5108_v50 }
0x1b2c   :  { %v4931_v7 = vpop.f32.mrb[26].mxu0 }
0x1b2d   :  { %v3816_v61 = vadd.f32 %v4931_v7, %v4445_v60  ;;  %v3810_v62 = vpop.f32.mrb[27].mxu0 }
0x1b2e   :  { %v3811_v1 = vadd.f32 %v4445_v60, %v3810_v62 }
0x1b2f   :  { %v3820_v2 = vadd.f32 %v3816_v61, %v5832_v0 }
0x1b30   :  { %v3819_v38 = vadd.f32 %v3811_v1, %v5830_v63  ;;  %v4452_v63 = vld [vmem:[%s6195_s14 + $0x20] sm:$0xff] }
0x1b31   :  { %v3828_v3 = vsel %vm304_vm5, %v3820_v2, 0.0  ;;  %v5088_v18 = vpack.c.bf16 %v4453_v17, %v4452_v63  ;;  %v4112_v63 = vld [vmem:[%s6201_s20 + $0x18] sm:$0xff] }
0x1b32   :  { %3829 = vadd.xlane.f32.xlu1 %v3828_v3  ;;  %v3825_v4 = vsel %vm304_vm5, %v3819_v38, 0.0 }
0x1b33   :  { %3826 = vadd.xlane.f32.xlu0 %v3825_v4  ;;  %5089 = vmatprep.subr.bf16.mxu1 %v5088_v18 }
0x1b34   :  { %5091 = vmatpush3.bf16.msra.mxu1 %v5088_v18 }
0x1b35   :  { %5093 = vmatprep.subr.bf16.mxu1 %v5092_v22 }
0x1b38   :  { %5095 = vmatpush3.bf16.msra.mxu1 %v5092_v22 }
0x1bbf   :  { %v3830_v5 = vpop.xlane.xlu1 %3829 }
0x1bc0   :  { %v3832_v8 = vmul.f32 0.03125, %v3830_v5  ;;  %v3827_v9 = vpop.xlane.xlu0 %3826 }
0x1bc1   :  { %v3831_v10 = vmul.f32 0.03125, %v3827_v9 }
0x1bc2   :  { %v3834_v11 = vsub.f32 %v3820_v2, %v3832_v8 }
0x1bc3   :  { %v3833_v13 = vsub.f32 %v3819_v38, %v3831_v10 }
0x1bc4   :  { %v3836_v16 = vmul.f32 %v3834_v11, %v3834_v11 }
0x1bc5   :  { %v3835_v14 = vmul.f32 %v3833_v13, %v3833_v13 }
0x1bc6   :  { %v3840_v0 = vsel %vm304_vm5, %v3836_v16, 0.0 }
0x1bc7   :  { %v3837_v15 = vsel %vm304_vm5, %v3835_v14, 0.0  ;;  %v4109_v14 = vld [vmem:[%s6201_s20] sm:$0xff] }
0x1bc8   :  { %3838 = vadd.xlane.f32.xlu0 %v3837_v15  ;;  %v4110_v15 = vld [vmem:[%s6201_s20 + $0x8] sm:$0xff] }
0x1bc9   :  { %v5112_v16 = vpack.c.bf16 %v4110_v15, %v4109_v14 }
0x1bcb   :  { %5113 = vmatprep.subr.bf16.mxu1 %v5112_v16 }
0x1bcc   :  { %3841 = vadd.xlane.f32.xlu0 %v3840_v0  ;;  %v4111_v0 = vld [vmem:[%s6201_s20 + $0x10] sm:$0xff] }
0x1bcd   :  { %v5116_v17 = vpack.c.bf16 %v4112_v63, %v4111_v0 }
0x1c55   :  { %v3839_v37 = vpop.xlane.xlu0 %3838 }
0x1c56   :  { %v3843_v39 = vmul.f32 0.03125, %v3839_v37 }
0x1c58   :  { %v3845_v41 = vadd.f32 1e-12, %v3843_v39 }
0x1c59   :  { %v3842_v42 = vpop.xlane.xlu0 %3841 }
0x1c5a   :  { %5228 = vrsqrt.f32 %v3845_v41  ;;  %v3844_v43 = vmul.f32 0.03125, %v3842_v42  ;;  %v4476_v42 = vld [vmem:[%s6275_s3] ss:$0 sm:$0xff] }
0x1c5c   :  { %v3846_v44 = vadd.f32 1e-12, %v3844_v43 }
0x1c5e   :  { %5230 = vrsqrt.f32 %v3846_v44 }
0x1c64   :  { %v5229_v46 = vpop.eup %5228 }
0x1c65   :  { %v3849_v6 = vmul.f32 %v5229_v46, %v3833_v13 }
0x1c67   :  { %v3857_v47 = vmul.f32 %v4450_v23, %v3849_v6 }
0x1c68   :  { %v5231_v48 = vpop.eup %5230 }
0x1c69   :  { %v3850_v33 = vmul.f32 %v5231_v48, %v3834_v11  ;;  %v3865_v20 = vadd.f32 %v4451_v40, %v3857_v47 }
0x1c6b   :  { %v3858_v27 = vmul.f32 %v4450_v23, %v3850_v33  ;;  %4940 = vmatprep.mubr.msk.f32.mxu1 %vm304_vm5, %v3865_v20 }
0x1c6d   :  { %v3866_v25 = vadd.f32 %v4451_v40, %v3858_v27 }
0x1c6f   :  { %4941 = vmatmul.mubr.msk.f32.vlgmr.msra.gmra.mrb[50].mxu1 %vm304_vm5, %v3866_v25 }
0x1c70   :  { %5115 = vmatpush3.bf16.msra.mxu1 %v5112_v16 }
0x1c71   :  { %5117 = vmatprep.subr.bf16.mxu1 %v5116_v17 }
0x1c74   :  { %5119 = vmatpush3.bf16.msra.mxu1 %v5116_v17 }
0x1d42   :  { %v4942_v52 = vpop.f32.mrb[50].mxu1 }
0x1d43   :  { %v3958_v53 = vadd.f32 %v4942_v52, %v4457_v51  ;;  %v3952_v45 = vpop.f32.mrb[51].mxu1 }
0x1d44   :  { %v3953_v54 = vadd.f32 %v4457_v51, %v3952_v45  ;;  %v4247_v45 = vld [vmem:[%s6205_s24] sm:$0xff] }
0x1d45   :  { %v3962_v36 = vmax.f32 %v3958_v53, 0.0 }
0x1d46   :  { %v3961_v55 = vmax.f32 %v3953_v54, 0.0  ;;  %v4248_v54 = vld [vmem:[%s6205_s24 + $0x8] sm:$0xff] }
0x1d48   :  { %4959 = vmatprep.mubr.msk.f32.mxu0 %vm138_vm0, %v3961_v55  ;;  %v5120_v55 = vpack.c.bf16 %v4248_v54, %v4247_v45 }
0x1d49   :  { %4960 = vmatmul.mubr.msk.f32.vlgmr.msra.gmra.mrb[28].mxu0 %vm138_vm0, %v3962_v36  ;;  %v4249_v36 = vld [vmem:[%s6205_s24 + $0x10] sm:$0xff] }
0x1d4a   :  { %5121 = vmatprep.subr.bf16.mxu1 %v5120_v55 }
0x1e1c   :  { %v4961_v57 = vpop.f32.mrb[28].mxu0 }
0x1e1d   :  { %v4058_v58 = vadd.f32 %v4961_v57, %v4469_v56  ;;  %v4052_v59 = vpop.f32.mrb[29].mxu0 }
0x1e1e   :  { %v4053_v60 = vadd.f32 %v4469_v56, %v4052_v59  ;;  %v4250_v56 = vld [vmem:[%s6205_s24 + $0x18] sm:$0xff] }
0x1e1f   :  { %v4062_v7 = vadd.f32 %v4058_v58, %v3866_v25  ;;  %v5124_v57 = vpack.c.bf16 %v4250_v56, %v4249_v36 }
0x1e20   :  { %v4061_v61 = vadd.f32 %v4053_v60, %v3865_v20 }
0x1e21   :  { %v4070_v62 = vsel %vm304_vm5, %v4062_v7, 0.0 }
0x1e22   :  { %4071 = vadd.xlane.f32.xlu0 %v4070_v62  ;;  %v4067_v1 = vsel %vm304_vm5, %v4061_v61, 0.0 }
0x1e23   :  { %4068 = vadd.xlane.f32.xlu1 %v4067_v1 }
0x1eaf   :  { %v4072_v2 = vpop.xlane.xlu0 %4071 }
0x1eb0   :  { %v4074_v38 = vmul.f32 0.03125, %v4072_v2  ;;  %v4069_v3 = vpop.xlane.xlu1 %4068  ;;  %v4479_v2 = vld [vmem:[%s6203_s22] ss:$0 sm:$0xff]  ;;  %s5282_s22 = smov [#allocation4]  }
0x1eb1   :  { %v4073_v4 = vmul.f32 0.03125, %v4069_v3  ;;  %s4346_s28 = sshll.u32 %s5282_s22, 4  ;;  %s4347_s28 = int_to_ptr.vmem [resolvable:$true] %s4346_s28 }
0x1eb2   :  { %v4076_v5 = vsub.f32 %v4062_v7, %v4074_v38  ;;  %p5245_p1 = scmp.lt.s32.totalorder %s4347_s28, %s4347_s28 }
0x1eb3   :  { %v4075_v8 = vsub.f32 %v4061_v61, %v4073_v4 }
0x1eb4   :  { %v4078_v9 = vmul.f32 %v4076_v5, %v4076_v5 }
0x1eb5   :  { %v4077_v10 = vmul.f32 %v4075_v8, %v4075_v8 }
0x1eb6   :  { %v4082_v11 = vsel %vm304_vm5, %v4078_v9, 0.0 }
0x1eb7   :  { %4083 = vadd.xlane.f32.xlu0 %v4082_v11  ;;  %v4079_v13 = vsel %vm304_vm5, %v4077_v10, 0.0 }
0x1eb8   :  { %4080 = vadd.xlane.f32.xlu1 %v4079_v13  ;;  %v4481_v13 = vld [vmem:[%s6206_s25] ss:$0 sm:$0xff] }
0x1f44   :  { %v4084_v18 = vpop.xlane.xlu0 %4083 }
0x1f45   :  { %v4086_v19 = vmul.f32 0.03125, %v4084_v18  ;;  %v4081_v21 = vpop.xlane.xlu1 %4080 }
0x1f46   :  { %v4085_v22 = vmul.f32 0.03125, %v4081_v21 }
0x1f47   :  { %v4088_v24 = vadd.f32 1e-12, %v4086_v19 }
0x1f48   :  { %v4087_v26 = vadd.f32 1e-12, %v4085_v22 }
0x1f49   :  { %5232 = vrsqrt.f32 %v4088_v24 }
0x1f4a   :  { %5234 = vrsqrt.f32 %v4087_v26 }
0x1f53   :  { %v5233_v28 = vpop.eup %5232 }
0x1f54   :  { %v5235_v30 = vpop.eup %5234  ;;  %v4092_v31 = vmul.f32 %v5233_v28, %v4076_v5  ;;  %v4480_v5 = vld [vmem:[%s6204_s23] ss:$0 sm:$0xff]  ;;  %s5240_s23 = scalar_lea.vmem %s4347_s28, 256 }
0x1f55   :  { %v4091_v32 = vmul.f32 %v5235_v30, %v4075_v8  ;;  %p5241_p0 = scmp.ne.s32.totalorder %s4347_s28, %s5240_s23  ;;  %p5246_p2 = scmp.lt.s32.totalorder %s5240_s23, %s5240_s23 }
0x1f56   :  { %v4100_v35 = vmul.f32 %v4474_v29, %v4092_v31 }
0x1f57   :  { %v4099_v37 = vmul.f32 %v4474_v29, %v4091_v32  ;;  %p5247_p3 = por %p5246_p2, %p5245_p1 }
0x1f58   :  { %v4108_v41 = vadd.f32 %v4475_v34, %v4100_v35 }
0x1f59   :  { %v4107_v39 = vadd.f32 %v4475_v34, %v4099_v37  ;;  %p5248_p4 = pnand %p5247_p3, %p5241_p0 }
0x1f5b   :  { %4970 = vmatprep.mubr.msk.f32.mxu1 %vm304_vm5, %v4107_v39 }
0x1f5c   :  { %4971 = vmatmul.mubr.msk.f32.vlgmr.msra.gmra.mrb[52].mxu1 %vm304_vm5, %v4108_v41 }
0x1f5d   :  { %5123 = vmatpush3.bf16.msra.mxu1 %v5120_v55 }
0x1f5e   :  { %5125 = vmatprep.subr.bf16.mxu1 %v5124_v57 }
0x1f61   :  { %5127 = vmatpush3.bf16.msra.mxu1 %v5124_v57 }
0x202f   :  { %v4972_v43 = vpop.f32.mrb[52].mxu1 }
0x2030   :  { %v4198_v44 = vadd.f32 %v4972_v43, %v4476_v42  ;;  %v4192_v46 = vpop.f32.mrb[53].mxu1 }
0x2031   :  { %v4193_v23 = vadd.f32 %v4476_v42, %v4192_v46 }
0x2032   :  { %v4202_v6 = vmax.f32 %v4198_v44, 0.0 }
0x2033   :  { %v4201_v40 = vmax.f32 %v4193_v23, 0.0 }
0x2034   :  { %v4208_v47 = vsel %vm304_vm5, %v4202_v6, 0.0 }
0x2035   :  { %4209 = vadd.xlane.f32.xlu0 %v4208_v47  ;;  %v4205_v48 = vsel %vm304_vm5, %v4201_v40, 0.0 }
0x2036   :  { %4206 = vadd.xlane.f32.xlu1 %v4205_v48 }
0x20c2   :  { %v4210_v33 = vpop.xlane.xlu0 %4209 }
0x20c3   :  { %v4212_v20 = vmul.f32 0.03125, %v4210_v33  ;;  %v4207_v27 = vpop.xlane.xlu1 %4206 }
0x20c4   :  { %v4211_v25 = vmul.f32 0.03125, %v4207_v27 }
0x20c5   :  { %v4214_v12 = vsub.f32 %v4202_v6, %v4212_v20 }
0x20c6   :  { %v4213_v49 = vsub.f32 %v4201_v40, %v4211_v25 }
0x20c7   :  { %v4216_v50 = vmul.f32 %v4214_v12, %v4214_v12 }
0x20c8   :  { %v4215_v51 = vmul.f32 %v4213_v49, %v4213_v49 }
0x20c9   :  { %v4220_v52 = vsel %vm304_vm5, %v4216_v50, 0.0 }
0x20ca   :  { %4221 = vadd.xlane.f32.xlu0 %v4220_v52  ;;  %v4217_v53 = vsel %vm304_vm5, %v4215_v51, 0.0 }
0x20cb   :  { %4218 = vadd.xlane.f32.xlu1 %v4217_v53 }
0x2157   :  { %v4222_v58 = vpop.xlane.xlu0 %4221 }
0x2158   :  { %v4224_v59 = vmul.f32 0.03125, %v4222_v58  ;;  %v4219_v60 = vpop.xlane.xlu1 %4218 }
0x2159   :  { %v4223_v7 = vmul.f32 0.03125, %v4219_v60 }
0x215a   :  { %v4226_v61 = vadd.f32 1e-12, %v4224_v59 }
0x215b   :  { %v4225_v62 = vadd.f32 1e-12, %v4223_v7 }
0x215c   :  { %5236 = vrsqrt.f32 %v4226_v61 }
0x215d   :  { %5238 = vrsqrt.f32 %v4225_v62 }
0x2166   :  { %v5237_v1 = vpop.eup %5236 }
0x2167   :  { %v5239_v38 = vpop.eup %5238  ;;  %v4230_v3 = vmul.f32 %v5237_v1, %v4214_v12 }
0x2168   :  { %v4229_v4 = vmul.f32 %v5239_v38, %v4213_v49 }
0x2169   :  { %v4238_v8 = vmul.f32 %v4479_v2, %v4230_v3 }
0x216a   :  { %v4237_v9 = vmul.f32 %v4479_v2, %v4229_v4 }
0x216b   :  { %v4246_v11 = vadd.f32 %v4480_v5, %v4238_v8 }
0x216c   :  { %v4245_v10 = vadd.f32 %v4480_v5, %v4237_v9 }
0x216e   :  { %4981 = vmatprep.mubr.msk.f32.mxu1 %vm304_vm5, %v4245_v10 }
0x216f   :  { %4982 = vmatmul.mubr.msk.f32.vlgmr.msra.gmra.mrb[54].mxu1 %vm304_vm5, %v4246_v11 }
0x2242   :  { %v4983_v14 = vpop.f32.mrb[54].mxu1 }
0x2243   :  { %v4336_v15 = vadd.f32 %v4983_v14, %v4481_v13  ;;  %v4330_v16 = vpop.f32.mrb[55].mxu1 }
0x2244   :  { %v4331_v0 = vadd.f32 %v4481_v13, %v4330_v16 }
0x2245   :  { %4340 = vst [vmem:[#allocation4 + $0x8] sm:$0xff] %v4336_v15 }
0x2246   :  { %4339 = vst [vmem:[#allocation4] sm:$0xff] %v4331_v0 }
0x2247   :  { %5251 = shalt.err (!%p5248_p4)
}
0x2248   :  { %s5252_s25 = scalar_lea.hbm %s6207_s26, 256 }
0x2249   :  { %p5253_p5 = scmp.ne.s32.totalorder %s6207_s26, %s5252_s25  ;;  %p5256_p6 = scmp.lt.u32.totalorder %s5252_s25, %s6207_s26 }
0x224b   :  { %p5258_p7 = pnand %p5256_p6, %p5253_p5 }
0x224d   :  { %5261 = shalt.err (!%p5258_p7)
}
0x224e   :  { %s5283_s20 = smov 128  }
0x224f   :  { %4352 = dma.vmem_to_hbm [thread:$0]  %s4347_s28, 256, %s6207_s26, [#allocation5], %s5283_s20, %s5283_s20, %s5279_s29  }
0x2250   :  { %5262 = dma.done.wait [#allocation5], 256  }
0x2251   :  { %5263 = vsyncadd [#allocation5], 4294967040 }
0x2252   :  { %4356 = vsyncpa [#allocation5], 1 }

</bundles_post_ra>
